<compile_context>
chip_gen: v6e
topology: v6e:2x2x1
jax: 0.10.0
libtpu: 0.0.40
codegen_flags: <defaults>
</compile_context>

<pallas_src>
import functools

import jax
import jax.numpy as jnp
from jax.experimental import pallas as pl
from jax.experimental.pallas import tpu as pltpu

BN_EPS = 1e-5
LANE = 128


def _round_up(x, m):
    return (x + m - 1) // m * m


def _pick_tile(m, target=256):
    """Largest divisor of m that is <= target (rows per tile for BN passes)."""
    t = min(m, target)
    while m % t:
        t -= 1
    return t


# -----------------------------------------------------------------------------
# Conv kernel: grid = (output_row, kernel_row_tap).  Per step, fetch one padded
# input row (all batches / column phases), do k per-column-tap matmuls per batch
# on the MXU and accumulate into a VMEM f32 scratch; write the output row (with
# optional fused ReLU) on the last tap.
# -----------------------------------------------------------------------------
def _make_conv_kernel(k, stride, B, Wo, do_relu):
    def kernel(x_ref, w_ref, o_ref, acc_ref):
        di = pl.program_id(1)  # kernel row tap (reduction axis)

        @pl.when(di == 0)
        def _init():
            acc_ref[...] = jnp.zeros_like(acc_ref)

        for dj in range(k):                       # column taps (static unroll)
            q = dj % stride                       # column phase
            cs = dj // stride                     # column start inside phase
            w_tap = w_ref[di * k + dj]            # (Cin_p, Cout_p) bf16, resident
            for b in range(B):                    # small static batch loop
                xs = x_ref[0, q * B + b, cs:cs + Wo, :]     # (Wo, Cin_p) bf16
                acc_ref[b] += jnp.dot(xs, w_tap,
                                      preferred_element_type=jnp.float32)

        @pl.when(di == k - 1)
        def _finalize():
            y = acc_ref[...]
            if do_relu:
                y = jnp.maximum(y, 0.0)
            o_ref[0] = y.astype(o_ref.dtype)

    return kernel


def conv2d(x, w, *, stride, pad, pad_mode, fuse_relu, out_dtype):
    """x: (H, B, W, Cin_p) bf16 in 'HBWC' layout, Cin_p a multiple of 128.
       w: (k, k, Cin, Cout) f32 (unpadded channels), bias-free.
       Returns (Ho, B, Wo, Cout_p) in out_dtype (Cout_p = round_up(Cout, 128))."""
    k = w.shape[0]
    _, B, _, Cin_p = x.shape
    Cin, Cout = w.shape[2], w.shape[3]
    Cout_p = _round_up(Cout, LANE)

    # Channel-pad and flatten weight to (k*k, Cin_p, Cout_p) bf16 (VMEM resident).
    w_p = jnp.zeros((k, k, Cin_p, Cout_p), jnp.float32)
    w_p = w_p.at[:, :, :Cin, :Cout].set(w)
    w_p = w_p.reshape(k * k, Cin_p, Cout_p).astype(jnp.bfloat16)

    # Spatial padding (H = axis 0, W = axis 2 in HBWC layout).
    if pad > 0:
        x = jnp.pad(x, ((pad, pad), (0, 0), (pad, pad), (0, 0)), mode=pad_mode)
    Hp, _, Wp, _ = x.shape
    Ho = (Hp - k) // stride + 1
    Wo = (Wp - k) // stride + 1

    # Stride handling: split padded width into `stride` column phases and stack
    # them along the batch axis (pure permutation of the data, no inflation).
    if stride == 1:
        xin = x
    else:
        assert Wp % stride == 0, "padded width must be divisible by stride"
        xin = jnp.concatenate([x[:, :, q::stride, :] for q in range(stride)],
                              axis=1)            # (Hp, stride*B, Wc, Cin_p)
    PB, Wc = xin.shape[1], xin.shape[2]

    kernel = _make_conv_kernel(k, stride, B, Wo, fuse_relu)
    return pl.pallas_call(
        kernel,
        out_shape=jax.ShapeDtypeStruct((Ho, B, Wo, Cout_p), out_dtype),
        grid=(Ho, k),
        in_specs=[
            # one padded input row per step, shifted by the tap (element offset
            # because the blocked H dim has size 1)
            pl.BlockSpec((1, PB, Wc, Cin_p),
                         lambda ho, di: (stride * ho + di, 0, 0, 0)),
            # full weight, constant index -> fetched once, stays in VMEM
            pl.BlockSpec((k * k, Cin_p, Cout_p), lambda ho, di: (0, 0, 0)),
        ],
        out_specs=pl.BlockSpec((1, B, Wo, Cout_p), lambda ho, di: (ho, 0, 0, 0)),
        scratch_shapes=[pltpu.VMEM((B, Wo, Cout_p), jnp.float32)],
        compiler_params=pltpu.CompilerParams(
            dimension_semantics=("parallel", "arbitrary")),
    )(xin, w_p)


# -----------------------------------------------------------------------------
# BatchNorm2d (training-mode batch statistics), correct under M-tiling:
#   pass 1: tiled per-channel sum / sum-of-squares reduction
#   pass 2: tiled (y - mean) * rsqrt(var + eps) fused with ReLU / residual-add
# -----------------------------------------------------------------------------
def _bn_stats_kernel(y_ref, sum_ref, ssq_ref):
    i = pl.program_id(0)

    @pl.when(i == 0)
    def _init():
        sum_ref[...] = jnp.zeros_like(sum_ref)
        ssq_ref[...] = jnp.zeros_like(ssq_ref)

    y = y_ref[...]
    sum_ref[...] += jnp.sum(y, axis=0, keepdims=True)
    ssq_ref[...] += jnp.sum(y * y, axis=0, keepdims=True)


def _make_bn_apply_kernel(do_relu, has_res, inv_count):
    def kernel(*refs):
        if has_res:
            y_ref, sum_ref, ssq_ref, r_ref, o_ref = refs
        else:
            y_ref, sum_ref, ssq_ref, o_ref = refs
            r_ref = None
        mean = sum_ref[...] * inv_count                      # (1, Cp) f32
        var = ssq_ref[...] * inv_count - mean * mean         # biased variance
        inv_std = jax.lax.rsqrt(var + BN_EPS)
        y = (y_ref[...] - mean) * inv_std                    # affine = (1, 0)
        if do_relu:
            y = jnp.maximum(y, 0.0)
        if r_ref is not None:
            y = y + r_ref[...].astype(jnp.float32)
        o_ref[...] = y.astype(o_ref.dtype)

    return kernel


def batchnorm2d(y, *, relu, residual=None, out_dtype=jnp.bfloat16):
    """y: (Ho, B, Wo, Cp) f32 pre-BN conv output. Optional fused ReLU / residual."""
    Ho, B, Wo, Cp = y.shape
    M = Ho * B * Wo
    y2 = y.reshape(M, Cp)
    tm = _pick_tile(M, 256)

    # Pass 1: cross-tile per-channel reduction (sum, sum of squares).
    s, ss = pl.pallas_call(
        _bn_stats_kernel,
        out_shape=(jax.ShapeDtypeStruct((1, Cp), jnp.float32),
                   jax.ShapeDtypeStruct((1, Cp), jnp.float32)),
        grid=(M // tm,),
        in_specs=[pl.BlockSpec((tm, Cp), lambda i: (i, 0))],
        out_specs=(pl.BlockSpec((1, Cp), lambda i: (0, 0)),
                   pl.BlockSpec((1, Cp), lambda i: (0, 0))),
        compiler_params=pltpu.CompilerParams(
            dimension_semantics=("arbitrary",)),
    )(y2)

    # Pass 2: normalize (+ ReLU) (+ residual), tiled over rows, bf16 output.
    has_res = residual is not None
    kernel = _make_bn_apply_kernel(relu, has_res, 1.0 / M)
    inputs = [y2, s, ss]
    in_specs = [pl.BlockSpec((tm, Cp), lambda i: (i, 0)),
                pl.BlockSpec((1, Cp), lambda i: (0, 0)),
                pl.BlockSpec((1, Cp), lambda i: (0, 0))]
    if has_res:
        inputs.append(residual.reshape(M, Cp))
        in_specs.append(pl.BlockSpec((tm, Cp), lambda i: (i, 0)))
    out = pl.pallas_call(
        kernel,
        out_shape=jax.ShapeDtypeStruct((M, Cp), out_dtype),
        grid=(M // tm,),
        in_specs=in_specs,
        out_specs=pl.BlockSpec((tm, Cp), lambda i: (i, 0)),
        compiler_params=pltpu.CompilerParams(
            dimension_semantics=("parallel",)),
    )(*inputs)
    return out.reshape(Ho, B, Wo, Cp)


# -----------------------------------------------------------------------------
# Parameters + model driver
# -----------------------------------------------------------------------------
def init_params(key, input_nc, ngf, n_blocks, n_downsampling=2):
    """Deterministic synthetic weights, shapes matching the torch module."""
    params = {}

    def nxt():
        nonlocal key
        key, sub = jax.random.split(key)
        return sub

    def w(k, cin, cout):
        return jax.random.normal(nxt(), (k, k, cin, cout), jnp.float32) * 0.05

    params["stem_w"] = w(7, input_nc, ngf)                 # Conv7x7, bias=False
    c = ngf
    for i in range(n_downsampling):
        params[f"down{i}_w"] = w(3, c, c * 2)              # Conv3x3 s2, bias=False
        c *= 2
    for i in range(n_blocks):
        params[f"res{i}_w1"] = w(3, c, c)
        params[f"res{i}_w2"] = w(3, c, c)
    return params


def resnet_discriminator_forward(x_nchw, params, *, n_blocks, n_downsampling=2):
    assert n_downsampling <= 2  # TODO(synk): n_downsampling == 3 torch branch not implemented.
    B, C, H, W = x_nchw.shape
    assert H >= 4 and W >= 4, "ReflectionPad2d(3) requires spatial dims >= 4"

    # NCHW -> internal HBWC layout; pad channels to a 128-lane multiple (padded
    # channels stay exactly zero through conv / BN / ReLU / residual); bf16.
    h = jnp.transpose(x_nchw, (2, 0, 3, 1)).astype(jnp.float32)
    Cp = _round_up(C, LANE)
    h = jnp.pad(h, ((0, 0), (0, 0), (0, 0), (0, Cp - C))).astype(jnp.bfloat16)

    # ReflectionPad2d(3) + Conv7x7(ngf, bias=False) + ReLU (ReLU fused in kernel).
    h = conv2d(h, params["stem_w"], stride=1, pad=3, pad_mode="reflect",
               fuse_relu=True, out_dtype=jnp.bfloat16)
    c_real = params["stem_w"].shape[3]

    # [Conv3x3 s2 p1 -> BatchNorm(batch stats) -> ReLU] x n_downsampling
    for i in range(n_downsampling):
        y = conv2d(h, params[f"down{i}_w"], stride=2, pad=1, pad_mode="constant",
                   fuse_relu=False, out_dtype=jnp.float32)
        h = batchnorm2d(y, relu=True)
        c_real = params[f"down{i}_w"].shape[3]

    # ResnetBlocks: x + BN(Conv(ReLU(BN(Conv(ReflPad1(x)))))), reflect padding.
    for i in range(n_blocks):
        y1 = conv2d(h, params[f"res{i}_w1"], stride=1, pad=1, pad_mode="reflect",
                    fuse_relu=False, out_dtype=jnp.float32)
        t = batchnorm2d(y1, relu=True)
        y2 = conv2d(t, params[f"res{i}_w2"], stride=1, pad=1, pad_mode="reflect",
                    fuse_relu=False, out_dtype=jnp.float32)
        h = batchnorm2d(y2, relu=False, residual=h)   # residual add fused, tiled

    # use_sigmoid=False -> no final activation.
    # TODO(synk): BatchNorm2d running_mean/running_var state updates (training
    # side effect) are not reproduced; forward output math matches.
    h = h[:, :, :, :c_real].astype(jnp.float32)
    return jnp.transpose(h, (1, 3, 0, 2))             # HBWC -> NCHW


if __name__ == "__main__":
    B, INPUT_NC, H, W = 2, 4, 16, 16
    NGF, N_BLOCKS, N_DOWN = 8, 2, 2

    key = jax.random.PRNGKey(0)
    key, xkey = jax.random.split(key)
    x = jax.random.normal(xkey, (B, INPUT_NC, H, W), jnp.float32)  # NCHW input

    params = init_params(key, INPUT_NC, NGF, N_BLOCKS, N_DOWN)

    fwd = jax.jit(functools.partial(
        resnet_discriminator_forward, n_blocks=N_BLOCKS, n_downsampling=N_DOWN))
    out = jax.block_until_ready(fwd(x, params))

    expected = (B, NGF * 4, H // 4, W // 4)
    assert out.shape == expected, (out.shape, expected)
    assert bool(jnp.all(jnp.isfinite(out)))
    print("KERNEL_OK")
</pallas_src>

<mosaic_0001>
module attributes {stable_mosaic.version = 11 : i64} {
  func.func @kernel(%arg0: i32, %arg1: i32, %arg2: memref<1x2x22x128xbf16, #tpu.memory_space<vmem>>, %arg3: memref<49x128x128xbf16, #tpu.memory_space<vmem>>, %arg4: memref<1x2x16x128xbf16, #tpu.memory_space<vmem>>, %arg5: memref<2x16x128xf32, #tpu.memory_space<vmem>>) attributes {dimension_semantics = [#tpu.dimension_semantics<parallel>, #tpu.dimension_semantics<arbitrary>], iteration_bounds = array<i64: 16, 7>, scalar_prefetch = 0 : i64, scratch_operands = 1 : i64, tpu.core_type = #tpu.core_type<tc>, window_params = [{transform_indices = @transform_0, window_bounds = array<i64: 1, 2, 22, 128>}, {pipeline_mode = #tpu.pipeline_mode<synchronous>, transform_indices = @transform_1, window_bounds = array<i64: 49, 128, 128>}, {transform_indices = @transform_2, window_bounds = array<i64: 1, 2, 16, 128>}]} {
    %c0_i32 = arith.constant 0 : i32
    %0 = arith.cmpi eq, %arg1, %c0_i32 : i32
    %1 = arith.extui %0 : i1 to i32
    %c0_i32_0 = arith.constant 0 : i32
    %2 = arith.cmpi ne, %1, %c0_i32_0 : i32
    scf.if %2 {
      %cst_170 = arith.constant 0.000000e+00 : f32
      %167 = vector.broadcast %cst_170 : f32 to vector<2x16x128xf32>
      %c0_171 = arith.constant 0 : index
      %c0_172 = arith.constant 0 : index
      %c0_173 = arith.constant 0 : index
      %168 = vector.load %arg5[%c0_171, %c0_172, %c0_173] : memref<2x16x128xf32, #tpu.memory_space<vmem>>, vector<2x16x128xf32>
      tpu.vector_store %arg5[%c0_171, %c0_172, %c0_173], %167 {strides = array<i32>} : memref<2x16x128xf32, #tpu.memory_space<vmem>>, vector<2x16x128xf32>,
    } else {
    }
    %c7_i32 = arith.constant 7 : i32
    %3 = arith.muli %arg1, %c7_i32 : i32
    %c0_i32_1 = arith.constant 0 : i32
    %4 = arith.addi %3, %c0_i32_1 : i32
    %5 = arith.index_cast %4 : i32 to index
    %c0 = arith.constant 0 : index
    %c0_2 = arith.constant 0 : index
    %6 = vector.load %arg3[%5, %c0, %c0_2] : memref<49x128x128xbf16, #tpu.memory_space<vmem>>, vector<1x128x128xbf16>
    %7 = vector.shape_cast %6 : vector<1x128x128xbf16> to vector<128x128xbf16>
    %c0_3 = arith.constant 0 : index
    %c0_4 = arith.constant 0 : index
    %c0_5 = arith.constant 0 : index
    %c0_6 = arith.constant 0 : index
    %8 = vector.load %arg2[%c0_3, %c0_4, %c0_5, %c0_6] : memref<1x2x22x128xbf16, #tpu.memory_space<vmem>>, vector<1x1x16x128xbf16>
    %9 = vector.shape_cast %8 : vector<1x1x16x128xbf16> to vector<16x128xbf16>
    %c0_7 = arith.constant 0 : index
    %c0_8 = arith.constant 0 : index
    %c0_9 = arith.constant 0 : index
    %10 = vector.load %arg5[%c0_7, %c0_8, %c0_9] : memref<2x16x128xf32, #tpu.memory_space<vmem>>, vector<1x16x128xf32>
    %11 = vector.shape_cast %10 : vector<1x16x128xf32> to vector<16x128xf32>
    %cst = arith.constant dense<0.000000e+00> : vector<16x128xf32>
    %12 = tpu.matmul %9, %7, %cst {dimension_numbers = #tpu.dot_dimension_numbers<[1], [0], [0], [1], [0, 0, 1, 1], [], []>} : vector<16x128xbf16>, vector<128x128xbf16>, vector<16x128xf32> -> vector<16x128xf32>
    %13 = arith.addf %11, %12 : vector<16x128xf32>
    %c0_10 = arith.constant 0 : index
    %c0_11 = arith.constant 0 : index
    %c0_12 = arith.constant 0 : index
    %14 = vector.load %arg5[%c0_10, %c0_11, %c0_12] : memref<2x16x128xf32, #tpu.memory_space<vmem>>, vector<1x16x128xf32>
    %15 = vector.shape_cast %14 : vector<1x16x128xf32> to vector<16x128xf32>
    %16 = vector.shape_cast %13 : vector<16x128xf32> to vector<1x16x128xf32>
    tpu.vector_store %arg5[%c0_10, %c0_11, %c0_12], %16 {strides = array<i32>} : memref<2x16x128xf32, #tpu.memory_space<vmem>>, vector<1x16x128xf32>,
    %c0_13 = arith.constant 0 : index
    %c1 = arith.constant 1 : index
    %c0_14 = arith.constant 0 : index
    %c0_15 = arith.constant 0 : index
    %17 = vector.load %arg2[%c0_13, %c1, %c0_14, %c0_15] : memref<1x2x22x128xbf16, #tpu.memory_space<vmem>>, vector<1x1x16x128xbf16>
    %18 = vector.shape_cast %17 : vector<1x1x16x128xbf16> to vector<16x128xbf16>
    %c1_16 = arith.constant 1 : index
    %c0_17 = arith.constant 0 : index
    %c0_18 = arith.constant 0 : index
    %19 = vector.load %arg5[%c1_16, %c0_17, %c0_18] : memref<2x16x128xf32, #tpu.memory_space<vmem>>, vector<1x16x128xf32>
    %20 = vector.shape_cast %19 : vector<1x16x128xf32> to vector<16x128xf32>
    %cst_19 = arith.constant dense<0.000000e+00> : vector<16x128xf32>
    %21 = tpu.matmul %18, %7, %cst_19 {dimension_numbers = #tpu.dot_dimension_numbers<[1], [0], [0], [1], [0, 0, 1, 1], [], []>} : vector<16x128xbf16>, vector<128x128xbf16>, vector<16x128xf32> -> vector<16x128xf32>
    %22 = arith.addf %20, %21 : vector<16x128xf32>
    %c1_20 = arith.constant 1 : index
    %c0_21 = arith.constant 0 : index
    %c0_22 = arith.constant 0 : index
    %23 = vector.load %arg5[%c1_20, %c0_21, %c0_22] : memref<2x16x128xf32, #tpu.memory_space<vmem>>, vector<1x16x128xf32>
    %24 = vector.shape_cast %23 : vector<1x16x128xf32> to vector<16x128xf32>
    %25 = vector.shape_cast %22 : vector<16x128xf32> to vector<1x16x128xf32>
    tpu.vector_store %arg5[%c1_20, %c0_21, %c0_22], %25 {strides = array<i32>} : memref<2x16x128xf32, #tpu.memory_space<vmem>>, vector<1x16x128xf32>,
    %c7_i32_23 = arith.constant 7 : i32
    %26 = arith.muli %arg1, %c7_i32_23 : i32
    %c1_i32 = arith.constant 1 : i32
    %27 = arith.addi %26, %c1_i32 : i32
    %28 = arith.index_cast %27 : i32 to index
    %c0_24 = arith.constant 0 : index
    %c0_25 = arith.constant 0 : index
    %29 = vector.load %arg3[%28, %c0_24, %c0_25] : memref<49x128x128xbf16, #tpu.memory_space<vmem>>, vector<1x128x128xbf16>
    %30 = vector.shape_cast %29 : vector<1x128x128xbf16> to vector<128x128xbf16>
    %c0_26 = arith.constant 0 : index
    %c0_27 = arith.constant 0 : index
    %c1_28 = arith.constant 1 : index
    %c0_29 = arith.constant 0 : index
    %31 = vector.load %arg2[%c0_26, %c0_27, %c1_28, %c0_29] : memref<1x2x22x128xbf16, #tpu.memory_space<vmem>>, vector<1x1x16x128xbf16>
    %32 = vector.shape_cast %31 : vector<1x1x16x128xbf16> to vector<16x128xbf16>
    %c0_30 = arith.constant 0 : index
    %c0_31 = arith.constant 0 : index
    %c0_32 = arith.constant 0 : index
    %33 = vector.load %arg5[%c0_30, %c0_31, %c0_32] : memref<2x16x128xf32, #tpu.memory_space<vmem>>, vector<1x16x128xf32>
    %34 = vector.shape_cast %33 : vector<1x16x128xf32> to vector<16x128xf32>
    %cst_33 = arith.constant dense<0.000000e+00> : vector<16x128xf32>
    %35 = tpu.matmul %32, %30, %cst_33 {dimension_numbers = #tpu.dot_dimension_numbers<[1], [0], [0], [1], [0, 0, 1, 1], [], []>} : vector<16x128xbf16>, vector<128x128xbf16>, vector<16x128xf32> -> vector<16x128xf32>
    %36 = arith.addf %34, %35 : vector<16x128xf32>
    %c0_34 = arith.constant 0 : index
    %c0_35 = arith.constant 0 : index
    %c0_36 = arith.constant 0 : index
    %37 = vector.load %arg5[%c0_34, %c0_35, %c0_36] : memref<2x16x128xf32, #tpu.memory_space<vmem>>, vector<1x16x128xf32>
    %38 = vector.shape_cast %37 : vector<1x16x128xf32> to vector<16x128xf32>
    %39 = vector.shape_cast %36 : vector<16x128xf32> to vector<1x16x128xf32>
    tpu.vector_store %arg5[%c0_34, %c0_35, %c0_36], %39 {strides = array<i32>} : memref<2x16x128xf32, #tpu.memory_space<vmem>>, vector<1x16x128xf32>,
    %c0_37 = arith.constant 0 : index
    %c1_38 = arith.constant 1 : index
    %c1_39 = arith.constant 1 : index
    %c0_40 = arith.constant 0 : index
    %40 = vector.load %arg2[%c0_37, %c1_38, %c1_39, %c0_40] : memref<1x2x22x128xbf16, #tpu.memory_space<vmem>>, vector<1x1x16x128xbf16>
    %41 = vector.shape_cast %40 : vector<1x1x16x128xbf16> to vector<16x128xbf16>
    %c1_41 = arith.constant 1 : index
    %c0_42 = arith.constant 0 : index
    %c0_43 = arith.constant 0 : index
    %42 = vector.load %arg5[%c1_41, %c0_42, %c0_43] : memref<2x16x128xf32, #tpu.memory_space<vmem>>, vector<1x16x128xf32>
    %43 = vector.shape_cast %42 : vector<1x16x128xf32> to vector<16x128xf32>
    %cst_44 = arith.constant dense<0.000000e+00> : vector<16x128xf32>
    %44 = tpu.matmul %41, %30, %cst_44 {dimension_numbers = #tpu.dot_dimension_numbers<[1], [0], [0], [1], [0, 0, 1, 1], [], []>} : vector<16x128xbf16>, vector<128x128xbf16>, vector<16x128xf32> -> vector<16x128xf32>
    %45 = arith.addf %43, %44 : vector<16x128xf32>
    %c1_45 = arith.constant 1 : index
    %c0_46 = arith.constant 0 : index
    %c0_47 = arith.constant 0 : index
    %46 = vector.load %arg5[%c1_45, %c0_46, %c0_47] : memref<2x16x128xf32, #tpu.memory_space<vmem>>, vector<1x16x128xf32>
    %47 = vector.shape_cast %46 : vector<1x16x128xf32> to vector<16x128xf32>
    %48 = vector.shape_cast %45 : vector<16x128xf32> to vector<1x16x128xf32>
    tpu.vector_store %arg5[%c1_45, %c0_46, %c0_47], %48 {strides = array<i32>} : memref<2x16x128xf32, #tpu.memory_space<vmem>>, vector<1x16x128xf32>,
    %c7_i32_48 = arith.constant 7 : i32
    %49 = arith.muli %arg1, %c7_i32_48 : i32
    %c2_i32 = arith.constant 2 : i32
    %50 = arith.addi %49, %c2_i32 : i32
    %51 = arith.index_cast %50 : i32 to index
    %c0_49 = arith.constant 0 : index
    %c0_50 = arith.constant 0 : index
    %52 = vector.load %arg3[%51, %c0_49, %c0_50] : memref<49x128x128xbf16, #tpu.memory_space<vmem>>, vector<1x128x128xbf16>
    %53 = vector.shape_cast %52 : vector<1x128x128xbf16> to vector<128x128xbf16>
    %c0_51 = arith.constant 0 : index
    %c0_52 = arith.constant 0 : index
    %c2 = arith.constant 2 : index
    %c0_53 = arith.constant 0 : index
    %54 = vector.load %arg2[%c0_51, %c0_52, %c2, %c0_53] : memref<1x2x22x128xbf16, #tpu.memory_space<vmem>>, vector<1x1x16x128xbf16>
    %55 = vector.shape_cast %54 : vector<1x1x16x128xbf16> to vector<16x128xbf16>
    %c0_54 = arith.constant 0 : index
    %c0_55 = arith.constant 0 : index
    %c0_56 = arith.constant 0 : index
    %56 = vector.load %arg5[%c0_54, %c0_55, %c0_56] : memref<2x16x128xf32, #tpu.memory_space<vmem>>, vector<1x16x128xf32>
    %57 = vector.shape_cast %56 : vector<1x16x128xf32> to vector<16x128xf32>
    %cst_57 = arith.constant dense<0.000000e+00> : vector<16x128xf32>
    %58 = tpu.matmul %55, %53, %cst_57 {dimension_numbers = #tpu.dot_dimension_numbers<[1], [0], [0], [1], [0, 0, 1, 1], [], []>} : vector<16x128xbf16>, vector<128x128xbf16>, vector<16x128xf32> -> vector<16x128xf32>
    %59 = arith.addf %57, %58 : vector<16x128xf32>
    %c0_58 = arith.constant 0 : index
    %c0_59 = arith.constant 0 : index
    %c0_60 = arith.constant 0 : index
    %60 = vector.load %arg5[%c0_58, %c0_59, %c0_60] : memref<2x16x128xf32, #tpu.memory_space<vmem>>, vector<1x16x128xf32>
    %61 = vector.shape_cast %60 : vector<1x16x128xf32> to vector<16x128xf32>
    %62 = vector.shape_cast %59 : vector<16x128xf32> to vector<1x16x128xf32>
    tpu.vector_store %arg5[%c0_58, %c0_59, %c0_60], %62 {strides = array<i32>} : memref<2x16x128xf32, #tpu.memory_space<vmem>>, vector<1x16x128xf32>,
    %c0_61 = arith.constant 0 : index
    %c1_62 = arith.constant 1 : index
    %c2_63 = arith.constant 2 : index
    %c0_64 = arith.constant 0 : index
    %63 = vector.load %arg2[%c0_61, %c1_62, %c2_63, %c0_64] : memref<1x2x22x128xbf16, #tpu.memory_space<vmem>>, vector<1x1x16x128xbf16>
    %64 = vector.shape_cast %63 : vector<1x1x16x128xbf16> to vector<16x128xbf16>
    %c1_65 = arith.constant 1 : index
    %c0_66 = arith.constant 0 : index
    %c0_67 = arith.constant 0 : index
    %65 = vector.load %arg5[%c1_65, %c0_66, %c0_67] : memref<2x16x128xf32, #tpu.memory_space<vmem>>, vector<1x16x128xf32>
    %66 = vector.shape_cast %65 : vector<1x16x128xf32> to vector<16x128xf32>
    %cst_68 = arith.constant dense<0.000000e+00> : vector<16x128xf32>
    %67 = tpu.matmul %64, %53, %cst_68 {dimension_numbers = #tpu.dot_dimension_numbers<[1], [0], [0], [1], [0, 0, 1, 1], [], []>} : vector<16x128xbf16>, vector<128x128xbf16>, vector<16x128xf32> -> vector<16x128xf32>
    %68 = arith.addf %66, %67 : vector<16x128xf32>
    %c1_69 = arith.constant 1 : index
    %c0_70 = arith.constant 0 : index
    %c0_71 = arith.constant 0 : index
    %69 = vector.load %arg5[%c1_69, %c0_70, %c0_71] : memref<2x16x128xf32, #tpu.memory_space<vmem>>, vector<1x16x128xf32>
    %70 = vector.shape_cast %69 : vector<1x16x128xf32> to vector<16x128xf32>
    %71 = vector.shape_cast %68 : vector<16x128xf32> to vector<1x16x128xf32>
    tpu.vector_store %arg5[%c1_69, %c0_70, %c0_71], %71 {strides = array<i32>} : memref<2x16x128xf32, #tpu.memory_space<vmem>>, vector<1x16x128xf32>,
    %c7_i32_72 = arith.constant 7 : i32
    %72 = arith.muli %arg1, %c7_i32_72 : i32
    %c3_i32 = arith.constant 3 : i32
    %73 = arith.addi %72, %c3_i32 : i32
    %74 = arith.index_cast %73 : i32 to index
    %c0_73 = arith.constant 0 : index
    %c0_74 = arith.constant 0 : index
    %75 = vector.load %arg3[%74, %c0_73, %c0_74] : memref<49x128x128xbf16, #tpu.memory_space<vmem>>, vector<1x128x128xbf16>
    %76 = vector.shape_cast %75 : vector<1x128x128xbf16> to vector<128x128xbf16>
    %c0_75 = arith.constant 0 : index
    %c0_76 = arith.constant 0 : index
    %c3 = arith.constant 3 : index
    %c0_77 = arith.constant 0 : index
    %77 = vector.load %arg2[%c0_75, %c0_76, %c3, %c0_77] : memref<1x2x22x128xbf16, #tpu.memory_space<vmem>>, vector<1x1x16x128xbf16>
    %78 = vector.shape_cast %77 : vector<1x1x16x128xbf16> to vector<16x128xbf16>
    %c0_78 = arith.constant 0 : index
    %c0_79 = arith.constant 0 : index
    %c0_80 = arith.constant 0 : index
    %79 = vector.load %arg5[%c0_78, %c0_79, %c0_80] : memref<2x16x128xf32, #tpu.memory_space<vmem>>, vector<1x16x128xf32>
    %80 = vector.shape_cast %79 : vector<1x16x128xf32> to vector<16x128xf32>
    %cst_81 = arith.constant dense<0.000000e+00> : vector<16x128xf32>
    %81 = tpu.matmul %78, %76, %cst_81 {dimension_numbers = #tpu.dot_dimension_numbers<[1], [0], [0], [1], [0, 0, 1, 1], [], []>} : vector<16x128xbf16>, vector<128x128xbf16>, vector<16x128xf32> -> vector<16x128xf32>
    %82 = arith.addf %80, %81 : vector<16x128xf32>
    %c0_82 = arith.constant 0 : index
    %c0_83 = arith.constant 0 : index
    %c0_84 = arith.constant 0 : index
    %83 = vector.load %arg5[%c0_82, %c0_83, %c0_84] : memref<2x16x128xf32, #tpu.memory_space<vmem>>, vector<1x16x128xf32>
    %84 = vector.shape_cast %83 : vector<1x16x128xf32> to vector<16x128xf32>
    %85 = vector.shape_cast %82 : vector<16x128xf32> to vector<1x16x128xf32>
    tpu.vector_store %arg5[%c0_82, %c0_83, %c0_84], %85 {strides = array<i32>} : memref<2x16x128xf32, #tpu.memory_space<vmem>>, vector<1x16x128xf32>,
    %c0_85 = arith.constant 0 : index
    %c1_86 = arith.constant 1 : index
    %c3_87 = arith.constant 3 : index
    %c0_88 = arith.constant 0 : index
    %86 = vector.load %arg2[%c0_85, %c1_86, %c3_87, %c0_88] : memref<1x2x22x128xbf16, #tpu.memory_space<vmem>>, vector<1x1x16x128xbf16>
    %87 = vector.shape_cast %86 : vector<1x1x16x128xbf16> to vector<16x128xbf16>
    %c1_89 = arith.constant 1 : index
    %c0_90 = arith.constant 0 : index
    %c0_91 = arith.constant 0 : index
    %88 = vector.load %arg5[%c1_89, %c0_90, %c0_91] : memref<2x16x128xf32, #tpu.memory_space<vmem>>, vector<1x16x128xf32>
    %89 = vector.shape_cast %88 : vector<1x16x128xf32> to vector<16x128xf32>
    %cst_92 = arith.constant dense<0.000000e+00> : vector<16x128xf32>
    %90 = tpu.matmul %87, %76, %cst_92 {dimension_numbers = #tpu.dot_dimension_numbers<[1], [0], [0], [1], [0, 0, 1, 1], [], []>} : vector<16x128xbf16>, vector<128x128xbf16>, vector<16x128xf32> -> vector<16x128xf32>
    %91 = arith.addf %89, %90 : vector<16x128xf32>
    %c1_93 = arith.constant 1 : index
    %c0_94 = arith.constant 0 : index
    %c0_95 = arith.constant 0 : index
    %92 = vector.load %arg5[%c1_93, %c0_94, %c0_95] : memref<2x16x128xf32, #tpu.memory_space<vmem>>, vector<1x16x128xf32>
    %93 = vector.shape_cast %92 : vector<1x16x128xf32> to vector<16x128xf32>
    %94 = vector.shape_cast %91 : vector<16x128xf32> to vector<1x16x128xf32>
    tpu.vector_store %arg5[%c1_93, %c0_94, %c0_95], %94 {strides = array<i32>} : memref<2x16x128xf32, #tpu.memory_space<vmem>>, vector<1x16x128xf32>,
    %c7_i32_96 = arith.constant 7 : i32
    %95 = arith.muli %arg1, %c7_i32_96 : i32
    %c4_i32 = arith.constant 4 : i32
    %96 = arith.addi %95, %c4_i32 : i32
    %97 = arith.index_cast %96 : i32 to index
    %c0_97 = arith.constant 0 : index
    %c0_98 = arith.constant 0 : index
    %98 = vector.load %arg3[%97, %c0_97, %c0_98] : memref<49x128x128xbf16, #tpu.memory_space<vmem>>, vector<1x128x128xbf16>
    %99 = vector.shape_cast %98 : vector<1x128x128xbf16> to vector<128x128xbf16>
    %c0_99 = arith.constant 0 : index
    %c0_100 = arith.constant 0 : index
    %c4 = arith.constant 4 : index
    %c0_101 = arith.constant 0 : index
    %100 = vector.load %arg2[%c0_99, %c0_100, %c4, %c0_101] : memref<1x2x22x128xbf16, #tpu.memory_space<vmem>>, vector<1x1x16x128xbf16>
    %101 = vector.shape_cast %100 : vector<1x1x16x128xbf16> to vector<16x128xbf16>
    %c0_102 = arith.constant 0 : index
    %c0_103 = arith.constant 0 : index
    %c0_104 = arith.constant 0 : index
    %102 = vector.load %arg5[%c0_102, %c0_103, %c0_104] : memref<2x16x128xf32, #tpu.memory_space<vmem>>, vector<1x16x128xf32>
    %103 = vector.shape_cast %102 : vector<1x16x128xf32> to vector<16x128xf32>
    %cst_105 = arith.constant dense<0.000000e+00> : vector<16x128xf32>
    %104 = tpu.matmul %101, %99, %cst_105 {dimension_numbers = #tpu.dot_dimension_numbers<[1], [0], [0], [1], [0, 0, 1, 1], [], []>} : vector<16x128xbf16>, vector<128x128xbf16>, vector<16x128xf32> -> vector<16x128xf32>
    %105 = arith.addf %103, %104 : vector<16x128xf32>
    %c0_106 = arith.constant 0 : index
    %c0_107 = arith.constant 0 : index
    %c0_108 = arith.constant 0 : index
    %106 = vector.load %arg5[%c0_106, %c0_107, %c0_108] : memref<2x16x128xf32, #tpu.memory_space<vmem>>, vector<1x16x128xf32>
    %107 = vector.shape_cast %106 : vector<1x16x128xf32> to vector<16x128xf32>
    %108 = vector.shape_cast %105 : vector<16x128xf32> to vector<1x16x128xf32>
    tpu.vector_store %arg5[%c0_106, %c0_107, %c0_108], %108 {strides = array<i32>} : memref<2x16x128xf32, #tpu.memory_space<vmem>>, vector<1x16x128xf32>,
    %c0_109 = arith.constant 0 : index
    %c1_110 = arith.constant 1 : index
    %c4_111 = arith.constant 4 : index
    %c0_112 = arith.constant 0 : index
    %109 = vector.load %arg2[%c0_109, %c1_110, %c4_111, %c0_112] : memref<1x2x22x128xbf16, #tpu.memory_space<vmem>>, vector<1x1x16x128xbf16>
    %110 = vector.shape_cast %109 : vector<1x1x16x128xbf16> to vector<16x128xbf16>
    %c1_113 = arith.constant 1 : index
    %c0_114 = arith.constant 0 : index
    %c0_115 = arith.constant 0 : index
    %111 = vector.load %arg5[%c1_113, %c0_114, %c0_115] : memref<2x16x128xf32, #tpu.memory_space<vmem>>, vector<1x16x128xf32>
    %112 = vector.shape_cast %111 : vector<1x16x128xf32> to vector<16x128xf32>
    %cst_116 = arith.constant dense<0.000000e+00> : vector<16x128xf32>
    %113 = tpu.matmul %110, %99, %cst_116 {dimension_numbers = #tpu.dot_dimension_numbers<[1], [0], [0], [1], [0, 0, 1, 1], [], []>} : vector<16x128xbf16>, vector<128x128xbf16>, vector<16x128xf32> -> vector<16x128xf32>
    %114 = arith.addf %112, %113 : vector<16x128xf32>
    %c1_117 = arith.constant 1 : index
    %c0_118 = arith.constant 0 : index
    %c0_119 = arith.constant 0 : index
    %115 = vector.load %arg5[%c1_117, %c0_118, %c0_119] : memref<2x16x128xf32, #tpu.memory_space<vmem>>, vector<1x16x128xf32>
    %116 = vector.shape_cast %115 : vector<1x16x128xf32> to vector<16x128xf32>
    %117 = vector.shape_cast %114 : vector<16x128xf32> to vector<1x16x128xf32>
    tpu.vector_store %arg5[%c1_117, %c0_118, %c0_119], %117 {strides = array<i32>} : memref<2x16x128xf32, #tpu.memory_space<vmem>>, vector<1x16x128xf32>,
    %c7_i32_120 = arith.constant 7 : i32
    %118 = arith.muli %arg1, %c7_i32_120 : i32
    %c5_i32 = arith.constant 5 : i32
    %119 = arith.addi %118, %c5_i32 : i32
    %120 = arith.index_cast %119 : i32 to index
    %c0_121 = arith.constant 0 : index
    %c0_122 = arith.constant 0 : index
    %121 = vector.load %arg3[%120, %c0_121, %c0_122] : memref<49x128x128xbf16, #tpu.memory_space<vmem>>, vector<1x128x128xbf16>
    %122 = vector.shape_cast %121 : vector<1x128x128xbf16> to vector<128x128xbf16>
    %c0_123 = arith.constant 0 : index
    %c0_124 = arith.constant 0 : index
    %c5 = arith.constant 5 : index
    %c0_125 = arith.constant 0 : index
    %123 = vector.load %arg2[%c0_123, %c0_124, %c5, %c0_125] : memref<1x2x22x128xbf16, #tpu.memory_space<vmem>>, vector<1x1x16x128xbf16>
    %124 = vector.shape_cast %123 : vector<1x1x16x128xbf16> to vector<16x128xbf16>
    %c0_126 = arith.constant 0 : index
    %c0_127 = arith.constant 0 : index
    %c0_128 = arith.constant 0 : index
    %125 = vector.load %arg5[%c0_126, %c0_127, %c0_128] : memref<2x16x128xf32, #tpu.memory_space<vmem>>, vector<1x16x128xf32>
    %126 = vector.shape_cast %125 : vector<1x16x128xf32> to vector<16x128xf32>
    %cst_129 = arith.constant dense<0.000000e+00> : vector<16x128xf32>
    %127 = tpu.matmul %124, %122, %cst_129 {dimension_numbers = #tpu.dot_dimension_numbers<[1], [0], [0], [1], [0, 0, 1, 1], [], []>} : vector<16x128xbf16>, vector<128x128xbf16>, vector<16x128xf32> -> vector<16x128xf32>
    %128 = arith.addf %126, %127 : vector<16x128xf32>
    %c0_130 = arith.constant 0 : index
    %c0_131 = arith.constant 0 : index
    %c0_132 = arith.constant 0 : index
    %129 = vector.load %arg5[%c0_130, %c0_131, %c0_132] : memref<2x16x128xf32, #tpu.memory_space<vmem>>, vector<1x16x128xf32>
    %130 = vector.shape_cast %129 : vector<1x16x128xf32> to vector<16x128xf32>
    %131 = vector.shape_cast %128 : vector<16x128xf32> to vector<1x16x128xf32>
    tpu.vector_store %arg5[%c0_130, %c0_131, %c0_132], %131 {strides = array<i32>} : memref<2x16x128xf32, #tpu.memory_space<vmem>>, vector<1x16x128xf32>,
    %c0_133 = arith.constant 0 : index
    %c1_134 = arith.constant 1 : index
    %c5_135 = arith.constant 5 : index
    %c0_136 = arith.constant 0 : index
    %132 = vector.load %arg2[%c0_133, %c1_134, %c5_135, %c0_136] : memref<1x2x22x128xbf16, #tpu.memory_space<vmem>>, vector<1x1x16x128xbf16>
    %133 = vector.shape_cast %132 : vector<1x1x16x128xbf16> to vector<16x128xbf16>
    %c1_137 = arith.constant 1 : index
    %c0_138 = arith.constant 0 : index
    %c0_139 = arith.constant 0 : index
    %134 = vector.load %arg5[%c1_137, %c0_138, %c0_139] : memref<2x16x128xf32, #tpu.memory_space<vmem>>, vector<1x16x128xf32>
    %135 = vector.shape_cast %134 : vector<1x16x128xf32> to vector<16x128xf32>
    %cst_140 = arith.constant dense<0.000000e+00> : vector<16x128xf32>
    %136 = tpu.matmul %133, %122, %cst_140 {dimension_numbers = #tpu.dot_dimension_numbers<[1], [0], [0], [1], [0, 0, 1, 1], [], []>} : vector<16x128xbf16>, vector<128x128xbf16>, vector<16x128xf32> -> vector<16x128xf32>
    %137 = arith.addf %135, %136 : vector<16x128xf32>
    %c1_141 = arith.constant 1 : index
    %c0_142 = arith.constant 0 : index
    %c0_143 = arith.constant 0 : index
    %138 = vector.load %arg5[%c1_141, %c0_142, %c0_143] : memref<2x16x128xf32, #tpu.memory_space<vmem>>, vector<1x16x128xf32>
    %139 = vector.shape_cast %138 : vector<1x16x128xf32> to vector<16x128xf32>
    %140 = vector.shape_cast %137 : vector<16x128xf32> to vector<1x16x128xf32>
    tpu.vector_store %arg5[%c1_141, %c0_142, %c0_143], %140 {strides = array<i32>} : memref<2x16x128xf32, #tpu.memory_space<vmem>>, vector<1x16x128xf32>,
    %c7_i32_144 = arith.constant 7 : i32
    %141 = arith.muli %arg1, %c7_i32_144 : i32
    %c6_i32 = arith.constant 6 : i32
    %142 = arith.addi %141, %c6_i32 : i32
    %143 = arith.index_cast %142 : i32 to index
    %c0_145 = arith.constant 0 : index
    %c0_146 = arith.constant 0 : index
    %144 = vector.load %arg3[%143, %c0_145, %c0_146] : memref<49x128x128xbf16, #tpu.memory_space<vmem>>, vector<1x128x128xbf16>
    %145 = vector.shape_cast %144 : vector<1x128x128xbf16> to vector<128x128xbf16>
    %c0_147 = arith.constant 0 : index
    %c0_148 = arith.constant 0 : index
    %c6 = arith.constant 6 : index
    %c0_149 = arith.constant 0 : index
    %146 = vector.load %arg2[%c0_147, %c0_148, %c6, %c0_149] : memref<1x2x22x128xbf16, #tpu.memory_space<vmem>>, vector<1x1x16x128xbf16>
    %147 = vector.shape_cast %146 : vector<1x1x16x128xbf16> to vector<16x128xbf16>
    %c0_150 = arith.constant 0 : index
    %c0_151 = arith.constant 0 : index
    %c0_152 = arith.constant 0 : index
    %148 = vector.load %arg5[%c0_150, %c0_151, %c0_152] : memref<2x16x128xf32, #tpu.memory_space<vmem>>, vector<1x16x128xf32>
    %149 = vector.shape_cast %148 : vector<1x16x128xf32> to vector<16x128xf32>
    %cst_153 = arith.constant dense<0.000000e+00> : vector<16x128xf32>
    %150 = tpu.matmul %147, %145, %cst_153 {dimension_numbers = #tpu.dot_dimension_numbers<[1], [0], [0], [1], [0, 0, 1, 1], [], []>} : vector<16x128xbf16>, vector<128x128xbf16>, vector<16x128xf32> -> vector<16x128xf32>
    %151 = arith.addf %149, %150 : vector<16x128xf32>
    %c0_154 = arith.constant 0 : index
    %c0_155 = arith.constant 0 : index
    %c0_156 = arith.constant 0 : index
    %152 = vector.load %arg5[%c0_154, %c0_155, %c0_156] : memref<2x16x128xf32, #tpu.memory_space<vmem>>, vector<1x16x128xf32>
    %153 = vector.shape_cast %152 : vector<1x16x128xf32> to vector<16x128xf32>
    %154 = vector.shape_cast %151 : vector<16x128xf32> to vector<1x16x128xf32>
    tpu.vector_store %arg5[%c0_154, %c0_155, %c0_156], %154 {strides = array<i32>} : memref<2x16x128xf32, #tpu.memory_space<vmem>>, vector<1x16x128xf32>,
    %c0_157 = arith.constant 0 : index
    %c1_158 = arith.constant 1 : index
    %c6_159 = arith.constant 6 : index
    %c0_160 = arith.constant 0 : index
    %155 = vector.load %arg2[%c0_157, %c1_158, %c6_159, %c0_160] : memref<1x2x22x128xbf16, #tpu.memory_space<vmem>>, vector<1x1x16x128xbf16>
    %156 = vector.shape_cast %155 : vector<1x1x16x128xbf16> to vector<16x128xbf16>
    %c1_161 = arith.constant 1 : index
    %c0_162 = arith.constant 0 : index
    %c0_163 = arith.constant 0 : index
    %157 = vector.load %arg5[%c1_161, %c0_162, %c0_163] : memref<2x16x128xf32, #tpu.memory_space<vmem>>, vector<1x16x128xf32>
    %158 = vector.shape_cast %157 : vector<1x16x128xf32> to vector<16x128xf32>
    %cst_164 = arith.constant dense<0.000000e+00> : vector<16x128xf32>
    %159 = tpu.matmul %156, %145, %cst_164 {dimension_numbers = #tpu.dot_dimension_numbers<[1], [0], [0], [1], [0, 0, 1, 1], [], []>} : vector<16x128xbf16>, vector<128x128xbf16>, vector<16x128xf32> -> vector<16x128xf32>
    %160 = arith.addf %158, %159 : vector<16x128xf32>
    %c1_165 = arith.constant 1 : index
    %c0_166 = arith.constant 0 : index
    %c0_167 = arith.constant 0 : index
    %161 = vector.load %arg5[%c1_165, %c0_166, %c0_167] : memref<2x16x128xf32, #tpu.memory_space<vmem>>, vector<1x16x128xf32>
    %162 = vector.shape_cast %161 : vector<1x16x128xf32> to vector<16x128xf32>
    %163 = vector.shape_cast %160 : vector<16x128xf32> to vector<1x16x128xf32>
    tpu.vector_store %arg5[%c1_165, %c0_166, %c0_167], %163 {strides = array<i32>} : memref<2x16x128xf32, #tpu.memory_space<vmem>>, vector<1x16x128xf32>,
    %c6_i32_168 = arith.constant 6 : i32
    %164 = arith.cmpi eq, %arg1, %c6_i32_168 : i32
    %165 = arith.extui %164 : i1 to i32
    %c0_i32_169 = arith.constant 0 : i32
    %166 = arith.cmpi ne, %165, %c0_i32_169 : i32
    scf.if %166 {
      %c0_170 = arith.constant 0 : index
      %c0_171 = arith.constant 0 : index
      %c0_172 = arith.constant 0 : index
      %167 = vector.load %arg5[%c0_170, %c0_171, %c0_172] : memref<2x16x128xf32, #tpu.memory_space<vmem>>, vector<2x16x128xf32>
      %cst_173 = arith.constant 0.000000e+00 : f32
      %168 = vector.broadcast %cst_173 : f32 to vector<2x16x128xf32>
      %169 = arith.maximumf %167, %168 : vector<2x16x128xf32>
      %170 = arith.truncf %169 : vector<2x16x128xf32> to vector<2x16x128xbf16>
      %c0_174 = arith.constant 0 : index
      %c0_175 = arith.constant 0 : index
      %c0_176 = arith.constant 0 : index
      %c0_177 = arith.constant 0 : index
      %171 = vector.load %arg4[%c0_174, %c0_175, %c0_176, %c0_177] : memref<1x2x16x128xbf16, #tpu.memory_space<vmem>>, vector<1x2x16x128xbf16>
      %172 = vector.shape_cast %171 : vector<1x2x16x128xbf16> to vector<2x16x128xbf16>
      %173 = vector.shape_cast %170 : vector<2x16x128xbf16> to vector<1x2x16x128xbf16>
      tpu.vector_store %arg4[%c0_174, %c0_175, %c0_176, %c0_177], %173 {strides = array<i32>} : memref<1x2x16x128xbf16, #tpu.memory_space<vmem>>, vector<1x2x16x128xbf16>,
    } else {
    }
    return
  }
  func.func @transform_0(%arg0: i32, %arg1: i32) -> (i32, i32, i32, i32) {
    %c1_i32 = arith.constant 1 : i32
    %0 = arith.muli %c1_i32, %arg0 : i32
    %1 = arith.addi %0, %arg1 : i32
    %c0_i32 = arith.constant 0 : i32
    %c0_i32_0 = arith.constant 0 : i32
    %c0_i32_1 = arith.constant 0 : i32
    %c0_i32_2 = arith.constant 0 : i32
    return %1, %c0_i32, %c0_i32_0, %c0_i32_1 : i32, i32, i32, i32
  }
  func.func @transform_1(%arg0: i32, %arg1: i32) -> (i32, i32, i32) {
    %c0_i32 = arith.constant 0 : i32
    %c0_i32_0 = arith.constant 0 : i32
    %c0_i32_1 = arith.constant 0 : i32
    %c0_i32_2 = arith.constant 0 : i32
    return %c0_i32, %c0_i32_0, %c0_i32_1 : i32, i32, i32
  }
  func.func @transform_2(%arg0: i32, %arg1: i32) -> (i32, i32, i32, i32) {
    %c0_i32 = arith.constant 0 : i32
    %c0_i32_0 = arith.constant 0 : i32
    %c0_i32_1 = arith.constant 0 : i32
    %c0_i32_2 = arith.constant 0 : i32
    return %arg0, %c0_i32, %c0_i32_0, %c0_i32_1 : i32, i32, i32, i32
  }
}

module attributes {stable_mosaic.version = 11 : i64} {
  func.func @kernel(%arg0: i32, %arg1: i32, %arg2: memref<1x4x9x128xbf16, #tpu.memory_space<vmem>>, %arg3: memref<9x128x128xbf16, #tpu.memory_space<vmem>>, %arg4: memref<1x2x8x128xf32, #tpu.memory_space<vmem>>, %arg5: memref<2x8x128xf32, #tpu.memory_space<vmem>>) attributes {dimension_semantics = [#tpu.dimension_semantics<parallel>, #tpu.dimension_semantics<arbitrary>], iteration_bounds = array<i64: 8, 3>, scalar_prefetch = 0 : i64, scratch_operands = 1 : i64, tpu.core_type = #tpu.core_type<tc>, window_params = [{transform_indices = @transform_0, window_bounds = array<i64: 1, 4, 9, 128>}, {pipeline_mode = #tpu.pipeline_mode<synchronous>, transform_indices = @transform_1, window_bounds = array<i64: 9, 128, 128>}, {transform_indices = @transform_2, window_bounds = array<i64: 1, 2, 8, 128>}]} {
    %c0_i32 = arith.constant 0 : i32
    %0 = arith.cmpi eq, %arg1, %c0_i32 : i32
    %1 = arith.extui %0 : i1 to i32
    %c0_i32_0 = arith.constant 0 : i32
    %2 = arith.cmpi ne, %1, %c0_i32_0 : i32
    scf.if %2 {
      %cst_73 = arith.constant 0.000000e+00 : f32
      %75 = vector.broadcast %cst_73 : f32 to vector<2x8x128xf32>
      %c0_74 = arith.constant 0 : index
      %c0_75 = arith.constant 0 : index
      %c0_76 = arith.constant 0 : index
      %76 = vector.load %arg5[%c0_74, %c0_75, %c0_76] : memref<2x8x128xf32, #tpu.memory_space<vmem>>, vector<2x8x128xf32>
      tpu.vector_store %arg5[%c0_74, %c0_75, %c0_76], %75 {strides = array<i32>} : memref<2x8x128xf32, #tpu.memory_space<vmem>>, vector<2x8x128xf32>,
    } else {
    }
    %c3_i32 = arith.constant 3 : i32
    %3 = arith.muli %arg1, %c3_i32 : i32
    %c0_i32_1 = arith.constant 0 : i32
    %4 = arith.addi %3, %c0_i32_1 : i32
    %5 = arith.index_cast %4 : i32 to index
    %c0 = arith.constant 0 : index
    %c0_2 = arith.constant 0 : index
    %6 = vector.load %arg3[%5, %c0, %c0_2] : memref<9x128x128xbf16, #tpu.memory_space<vmem>>, vector<1x128x128xbf16>
    %7 = vector.shape_cast %6 : vector<1x128x128xbf16> to vector<128x128xbf16>
    %c0_3 = arith.constant 0 : index
    %c0_4 = arith.constant 0 : index
    %c0_5 = arith.constant 0 : index
    %c0_6 = arith.constant 0 : index
    %8 = vector.load %arg2[%c0_3, %c0_4, %c0_5, %c0_6] : memref<1x4x9x128xbf16, #tpu.memory_space<vmem>>, vector<1x1x8x128xbf16>
    %9 = vector.shape_cast %8 : vector<1x1x8x128xbf16> to vector<8x128xbf16>
    %c0_7 = arith.constant 0 : index
    %c0_8 = arith.constant 0 : index
    %c0_9 = arith.constant 0 : index
    %10 = vector.load %arg5[%c0_7, %c0_8, %c0_9] : memref<2x8x128xf32, #tpu.memory_space<vmem>>, vector<1x8x128xf32>
    %11 = vector.shape_cast %10 : vector<1x8x128xf32> to vector<8x128xf32>
    %cst = arith.constant dense<0.000000e+00> : vector<8x128xf32>
    %12 = tpu.matmul %9, %7, %cst {dimension_numbers = #tpu.dot_dimension_numbers<[1], [0], [0], [1], [0, 0, 1, 1], [], []>} : vector<8x128xbf16>, vector<128x128xbf16>, vector<8x128xf32> -> vector<8x128xf32>
    %13 = arith.addf %11, %12 : vector<8x128xf32>
    %c0_10 = arith.constant 0 : index
    %c0_11 = arith.constant 0 : index
    %c0_12 = arith.constant 0 : index
    %14 = vector.load %arg5[%c0_10, %c0_11, %c0_12] : memref<2x8x128xf32, #tpu.memory_space<vmem>>, vector<1x8x128xf32>
    %15 = vector.shape_cast %14 : vector<1x8x128xf32> to vector<8x128xf32>
    %16 = vector.shape_cast %13 : vector<8x128xf32> to vector<1x8x128xf32>
    tpu.vector_store %arg5[%c0_10, %c0_11, %c0_12], %16 {strides = array<i32>} : memref<2x8x128xf32, #tpu.memory_space<vmem>>, vector<1x8x128xf32>,
    %c0_13 = arith.constant 0 : index
    %c1 = arith.constant 1 : index
    %c0_14 = arith.constant 0 : index
    %c0_15 = arith.constant 0 : index
    %17 = vector.load %arg2[%c0_13, %c1, %c0_14, %c0_15] : memref<1x4x9x128xbf16, #tpu.memory_space<vmem>>, vector<1x1x8x128xbf16>
    %18 = vector.shape_cast %17 : vector<1x1x8x128xbf16> to vector<8x128xbf16>
    %c1_16 = arith.constant 1 : index
    %c0_17 = arith.constant 0 : index
    %c0_18 = arith.constant 0 : index
    %19 = vector.load %arg5[%c1_16, %c0_17, %c0_18] : memref<2x8x128xf32, #tpu.memory_space<vmem>>, vector<1x8x128xf32>
    %20 = vector.shape_cast %19 : vector<1x8x128xf32> to vector<8x128xf32>
    %cst_19 = arith.constant dense<0.000000e+00> : vector<8x128xf32>
    %21 = tpu.matmul %18, %7, %cst_19 {dimension_numbers = #tpu.dot_dimension_numbers<[1], [0], [0], [1], [0, 0, 1, 1], [], []>} : vector<8x128xbf16>, vector<128x128xbf16>, vector<8x128xf32> -> vector<8x128xf32>
    %22 = arith.addf %20, %21 : vector<8x128xf32>
    %c1_20 = arith.constant 1 : index
    %c0_21 = arith.constant 0 : index
    %c0_22 = arith.constant 0 : index
    %23 = vector.load %arg5[%c1_20, %c0_21, %c0_22] : memref<2x8x128xf32, #tpu.memory_space<vmem>>, vector<1x8x128xf32>
    %24 = vector.shape_cast %23 : vector<1x8x128xf32> to vector<8x128xf32>
    %25 = vector.shape_cast %22 : vector<8x128xf32> to vector<1x8x128xf32>
    tpu.vector_store %arg5[%c1_20, %c0_21, %c0_22], %25 {strides = array<i32>} : memref<2x8x128xf32, #tpu.memory_space<vmem>>, vector<1x8x128xf32>,
    %c3_i32_23 = arith.constant 3 : i32
    %26 = arith.muli %arg1, %c3_i32_23 : i32
    %c1_i32 = arith.constant 1 : i32
    %27 = arith.addi %26, %c1_i32 : i32
    %28 = arith.index_cast %27 : i32 to index
    %c0_24 = arith.constant 0 : index
    %c0_25 = arith.constant 0 : index
    %29 = vector.load %arg3[%28, %c0_24, %c0_25] : memref<9x128x128xbf16, #tpu.memory_space<vmem>>, vector<1x128x128xbf16>
    %30 = vector.shape_cast %29 : vector<1x128x128xbf16> to vector<128x128xbf16>
    %c0_26 = arith.constant 0 : index
    %c2 = arith.constant 2 : index
    %c0_27 = arith.constant 0 : index
    %c0_28 = arith.constant 0 : index
    %31 = vector.load %arg2[%c0_26, %c2, %c0_27, %c0_28] : memref<1x4x9x128xbf16, #tpu.memory_space<vmem>>, vector<1x1x8x128xbf16>
    %32 = vector.shape_cast %31 : vector<1x1x8x128xbf16> to vector<8x128xbf16>
    %c0_29 = arith.constant 0 : index
    %c0_30 = arith.constant 0 : index
    %c0_31 = arith.constant 0 : index
    %33 = vector.load %arg5[%c0_29, %c0_30, %c0_31] : memref<2x8x128xf32, #tpu.memory_space<vmem>>, vector<1x8x128xf32>
    %34 = vector.shape_cast %33 : vector<1x8x128xf32> to vector<8x128xf32>
    %cst_32 = arith.constant dense<0.000000e+00> : vector<8x128xf32>
    %35 = tpu.matmul %32, %30, %cst_32 {dimension_numbers = #tpu.dot_dimension_numbers<[1], [0], [0], [1], [0, 0, 1, 1], [], []>} : vector<8x128xbf16>, vector<128x128xbf16>, vector<8x128xf32> -> vector<8x128xf32>
    %36 = arith.addf %34, %35 : vector<8x128xf32>
    %c0_33 = arith.constant 0 : index
    %c0_34 = arith.constant 0 : index
    %c0_35 = arith.constant 0 : index
    %37 = vector.load %arg5[%c0_33, %c0_34, %c0_35] : memref<2x8x128xf32, #tpu.memory_space<vmem>>, vector<1x8x128xf32>
    %38 = vector.shape_cast %37 : vector<1x8x128xf32> to vector<8x128xf32>
    %39 = vector.shape_cast %36 : vector<8x128xf32> to vector<1x8x128xf32>
    tpu.vector_store %arg5[%c0_33, %c0_34, %c0_35], %39 {strides = array<i32>} : memref<2x8x128xf32, #tpu.memory_space<vmem>>, vector<1x8x128xf32>,
    %c0_36 = arith.constant 0 : index
    %c3 = arith.constant 3 : index
    %c0_37 = arith.constant 0 : index
    %c0_38 = arith.constant 0 : index
    %40 = vector.load %arg2[%c0_36, %c3, %c0_37, %c0_38] : memref<1x4x9x128xbf16, #tpu.memory_space<vmem>>, vector<1x1x8x128xbf16>
    %41 = vector.shape_cast %40 : vector<1x1x8x128xbf16> to vector<8x128xbf16>
    %c1_39 = arith.constant 1 : index
    %c0_40 = arith.constant 0 : index
    %c0_41 = arith.constant 0 : index
    %42 = vector.load %arg5[%c1_39, %c0_40, %c0_41] : memref<2x8x128xf32, #tpu.memory_space<vmem>>, vector<1x8x128xf32>
    %43 = vector.shape_cast %42 : vector<1x8x128xf32> to vector<8x128xf32>
    %cst_42 = arith.constant dense<0.000000e+00> : vector<8x128xf32>
    %44 = tpu.matmul %41, %30, %cst_42 {dimension_numbers = #tpu.dot_dimension_numbers<[1], [0], [0], [1], [0, 0, 1, 1], [], []>} : vector<8x128xbf16>, vector<128x128xbf16>, vector<8x128xf32> -> vector<8x128xf32>
    %45 = arith.addf %43, %44 : vector<8x128xf32>
    %c1_43 = arith.constant 1 : index
    %c0_44 = arith.constant 0 : index
    %c0_45 = arith.constant 0 : index
    %46 = vector.load %arg5[%c1_43, %c0_44, %c0_45] : memref<2x8x128xf32, #tpu.memory_space<vmem>>, vector<1x8x128xf32>
    %47 = vector.shape_cast %46 : vector<1x8x128xf32> to vector<8x128xf32>
    %48 = vector.shape_cast %45 : vector<8x128xf32> to vector<1x8x128xf32>
    tpu.vector_store %arg5[%c1_43, %c0_44, %c0_45], %48 {strides = array<i32>} : memref<2x8x128xf32, #tpu.memory_space<vmem>>, vector<1x8x128xf32>,
    %c3_i32_46 = arith.constant 3 : i32
    %49 = arith.muli %arg1, %c3_i32_46 : i32
    %c2_i32 = arith.constant 2 : i32
    %50 = arith.addi %49, %c2_i32 : i32
    %51 = arith.index_cast %50 : i32 to index
    %c0_47 = arith.constant 0 : index
    %c0_48 = arith.constant 0 : index
    %52 = vector.load %arg3[%51, %c0_47, %c0_48] : memref<9x128x128xbf16, #tpu.memory_space<vmem>>, vector<1x128x128xbf16>
    %53 = vector.shape_cast %52 : vector<1x128x128xbf16> to vector<128x128xbf16>
    %c0_49 = arith.constant 0 : index
    %c0_50 = arith.constant 0 : index
    %c1_51 = arith.constant 1 : index
    %c0_52 = arith.constant 0 : index
    %54 = vector.load %arg2[%c0_49, %c0_50, %c1_51, %c0_52] : memref<1x4x9x128xbf16, #tpu.memory_space<vmem>>, vector<1x1x8x128xbf16>
    %55 = vector.shape_cast %54 : vector<1x1x8x128xbf16> to vector<8x128xbf16>
    %c0_53 = arith.constant 0 : index
    %c0_54 = arith.constant 0 : index
    %c0_55 = arith.constant 0 : index
    %56 = vector.load %arg5[%c0_53, %c0_54, %c0_55] : memref<2x8x128xf32, #tpu.memory_space<vmem>>, vector<1x8x128xf32>
    %57 = vector.shape_cast %56 : vector<1x8x128xf32> to vector<8x128xf32>
    %cst_56 = arith.constant dense<0.000000e+00> : vector<8x128xf32>
    %58 = tpu.matmul %55, %53, %cst_56 {dimension_numbers = #tpu.dot_dimension_numbers<[1], [0], [0], [1], [0, 0, 1, 1], [], []>} : vector<8x128xbf16>, vector<128x128xbf16>, vector<8x128xf32> -> vector<8x128xf32>
    %59 = arith.addf %57, %58 : vector<8x128xf32>
    %c0_57 = arith.constant 0 : index
    %c0_58 = arith.constant 0 : index
    %c0_59 = arith.constant 0 : index
    %60 = vector.load %arg5[%c0_57, %c0_58, %c0_59] : memref<2x8x128xf32, #tpu.memory_space<vmem>>, vector<1x8x128xf32>
    %61 = vector.shape_cast %60 : vector<1x8x128xf32> to vector<8x128xf32>
    %62 = vector.shape_cast %59 : vector<8x128xf32> to vector<1x8x128xf32>
    tpu.vector_store %arg5[%c0_57, %c0_58, %c0_59], %62 {strides = array<i32>} : memref<2x8x128xf32, #tpu.memory_space<vmem>>, vector<1x8x128xf32>,
    %c0_60 = arith.constant 0 : index
    %c1_61 = arith.constant 1 : index
    %c1_62 = arith.constant 1 : index
    %c0_63 = arith.constant 0 : index
    %63 = vector.load %arg2[%c0_60, %c1_61, %c1_62, %c0_63] : memref<1x4x9x128xbf16, #tpu.memory_space<vmem>>, vector<1x1x8x128xbf16>
    %64 = vector.shape_cast %63 : vector<1x1x8x128xbf16> to vector<8x128xbf16>
    %c1_64 = arith.constant 1 : index
    %c0_65 = arith.constant 0 : index
    %c0_66 = arith.constant 0 : index
    %65 = vector.load %arg5[%c1_64, %c0_65, %c0_66] : memref<2x8x128xf32, #tpu.memory_space<vmem>>, vector<1x8x128xf32>
    %66 = vector.shape_cast %65 : vector<1x8x128xf32> to vector<8x128xf32>
    %cst_67 = arith.constant dense<0.000000e+00> : vector<8x128xf32>
    %67 = tpu.matmul %64, %53, %cst_67 {dimension_numbers = #tpu.dot_dimension_numbers<[1], [0], [0], [1], [0, 0, 1, 1], [], []>} : vector<8x128xbf16>, vector<128x128xbf16>, vector<8x128xf32> -> vector<8x128xf32>
    %68 = arith.addf %66, %67 : vector<8x128xf32>
    %c1_68 = arith.constant 1 : index
    %c0_69 = arith.constant 0 : index
    %c0_70 = arith.constant 0 : index
    %69 = vector.load %arg5[%c1_68, %c0_69, %c0_70] : memref<2x8x128xf32, #tpu.memory_space<vmem>>, vector<1x8x128xf32>
    %70 = vector.shape_cast %69 : vector<1x8x128xf32> to vector<8x128xf32>
    %71 = vector.shape_cast %68 : vector<8x128xf32> to vector<1x8x128xf32>
    tpu.vector_store %arg5[%c1_68, %c0_69, %c0_70], %71 {strides = array<i32>} : memref<2x8x128xf32, #tpu.memory_space<vmem>>, vector<1x8x128xf32>,
    %c2_i32_71 = arith.constant 2 : i32
    %72 = arith.cmpi eq, %arg1, %c2_i32_71 : i32
    %73 = arith.extui %72 : i1 to i32
    %c0_i32_72 = arith.constant 0 : i32
    %74 = arith.cmpi ne, %73, %c0_i32_72 : i32
    scf.if %74 {
      %c0_73 = arith.constant 0 : index
      %c0_74 = arith.constant 0 : index
      %c0_75 = arith.constant 0 : index
      %75 = vector.load %arg5[%c0_73, %c0_74, %c0_75] : memref<2x8x128xf32, #tpu.memory_space<vmem>>, vector<2x8x128xf32>
      %c0_76 = arith.constant 0 : index
      %c0_77 = arith.constant 0 : index
      %c0_78 = arith.constant 0 : index
      %c0_79 = arith.constant 0 : index
      %76 = vector.load %arg4[%c0_76, %c0_77, %c0_78, %c0_79] : memref<1x2x8x128xf32, #tpu.memory_space<vmem>>, vector<1x2x8x128xf32>
      %77 = vector.shape_cast %76 : vector<1x2x8x128xf32> to vector<2x8x128xf32>
      %78 = vector.shape_cast %75 : vector<2x8x128xf32> to vector<1x2x8x128xf32>
      tpu.vector_store %arg4[%c0_76, %c0_77, %c0_78, %c0_79], %78 {strides = array<i32>} : memref<1x2x8x128xf32, #tpu.memory_space<vmem>>, vector<1x2x8x128xf32>,
    } else {
    }
    return
  }
  func.func @transform_0(%arg0: i32, %arg1: i32) -> (i32, i32, i32, i32) {
    %c2_i32 = arith.constant 2 : i32
    %0 = arith.muli %c2_i32, %arg0 : i32
    %1 = arith.addi %0, %arg1 : i32
    %c0_i32 = arith.constant 0 : i32
    %c0_i32_0 = arith.constant 0 : i32
    %c0_i32_1 = arith.constant 0 : i32
    %c0_i32_2 = arith.constant 0 : i32
    return %1, %c0_i32, %c0_i32_0, %c0_i32_1 : i32, i32, i32, i32
  }
  func.func @transform_1(%arg0: i32, %arg1: i32) -> (i32, i32, i32) {
    %c0_i32 = arith.constant 0 : i32
    %c0_i32_0 = arith.constant 0 : i32
    %c0_i32_1 = arith.constant 0 : i32
    %c0_i32_2 = arith.constant 0 : i32
    return %c0_i32, %c0_i32_0, %c0_i32_1 : i32, i32, i32
  }
  func.func @transform_2(%arg0: i32, %arg1: i32) -> (i32, i32, i32, i32) {
    %c0_i32 = arith.constant 0 : i32
    %c0_i32_0 = arith.constant 0 : i32
    %c0_i32_1 = arith.constant 0 : i32
    %c0_i32_2 = arith.constant 0 : i32
    return %arg0, %c0_i32, %c0_i32_0, %c0_i32_1 : i32, i32, i32, i32
  }
}

module attributes {stable_mosaic.version = 11 : i64} {
  func.func @kernel(%arg0: i32, %arg1: memref<128x128xf32, #tpu.memory_space<vmem>>, %arg2: memref<1x128xf32, #tpu.memory_space<vmem>>, %arg3: memref<1x128xf32, #tpu.memory_space<vmem>>, %arg4: memref<128x128xbf16, #tpu.memory_space<vmem>>) attributes {dimension_semantics = [#tpu.dimension_semantics<parallel>], iteration_bounds = array<i64: 1>, scalar_prefetch = 0 : i64, scratch_operands = 0 : i64, tpu.core_type = #tpu.core_type<tc>, window_params = [{transform_indices = @transform_0, window_bounds = array<i64: 128, 128>}, {pipeline_mode = #tpu.pipeline_mode<synchronous>, transform_indices = @transform_1, window_bounds = array<i64: 1, 128>}, {pipeline_mode = #tpu.pipeline_mode<synchronous>, transform_indices = @transform_2, window_bounds = array<i64: 1, 128>}, {transform_indices = @transform_3, window_bounds = array<i64: 128, 128>}]} {
    %c0 = arith.constant 0 : index
    %c0_0 = arith.constant 0 : index
    %0 = vector.load %arg2[%c0, %c0_0] : memref<1x128xf32, #tpu.memory_space<vmem>>, vector<1x128xf32>
    %cst = arith.constant 7.812500e-03 : f32
    %1 = vector.broadcast %cst : f32 to vector<1x128xf32>
    %2 = arith.mulf %0, %1 : vector<1x128xf32>
    %c0_1 = arith.constant 0 : index
    %c0_2 = arith.constant 0 : index
    %3 = vector.load %arg3[%c0_1, %c0_2] : memref<1x128xf32, #tpu.memory_space<vmem>>, vector<1x128xf32>
    %cst_3 = arith.constant 7.812500e-03 : f32
    %4 = vector.broadcast %cst_3 : f32 to vector<1x128xf32>
    %5 = arith.mulf %3, %4 : vector<1x128xf32>
    %6 = arith.mulf %2, %2 : vector<1x128xf32>
    %7 = arith.subf %5, %6 : vector<1x128xf32>
    %cst_4 = arith.constant 9.99999974E-6 : f32
    %8 = vector.broadcast %cst_4 : f32 to vector<1x128xf32>
    %9 = arith.addf %7, %8 : vector<1x128xf32>
    %10 = math.rsqrt %9 : vector<1x128xf32>
    %c0_5 = arith.constant 0 : index
    %c0_6 = arith.constant 0 : index
    %11 = vector.load %arg1[%c0_5, %c0_6] : memref<128x128xf32, #tpu.memory_space<vmem>>, vector<128x128xf32>
    %12 = vector.broadcast %2 : vector<1x128xf32> to vector<128x128xf32>
    %13 = arith.subf %11, %12 : vector<128x128xf32>
    %14 = vector.broadcast %10 : vector<1x128xf32> to vector<128x128xf32>
    %15 = arith.mulf %13, %14 : vector<128x128xf32>
    %cst_7 = arith.constant 0.000000e+00 : f32
    %16 = vector.broadcast %cst_7 : f32 to vector<128x128xf32>
    %17 = arith.maximumf %15, %16 : vector<128x128xf32>
    %18 = arith.truncf %17 : vector<128x128xf32> to vector<128x128xbf16>
    %c0_8 = arith.constant 0 : index
    %c0_9 = arith.constant 0 : index
    %19 = vector.load %arg4[%c0_8, %c0_9] : memref<128x128xbf16, #tpu.memory_space<vmem>>, vector<128x128xbf16>
    tpu.vector_store %arg4[%c0_8, %c0_9], %18 {strides = array<i32>} : memref<128x128xbf16, #tpu.memory_space<vmem>>, vector<128x128xbf16>,
    return
  }
  func.func @transform_0(%arg0: i32) -> (i32, i32) {
    %c0_i32 = arith.constant 0 : i32
    %c0_i32_0 = arith.constant 0 : i32
    return %arg0, %c0_i32 : i32, i32
  }
  func.func @transform_1(%arg0: i32) -> (i32, i32) {
    %c0_i32 = arith.constant 0 : i32
    %c0_i32_0 = arith.constant 0 : i32
    %c0_i32_1 = arith.constant 0 : i32
    return %c0_i32, %c0_i32_0 : i32, i32
  }
  func.func @transform_2(%arg0: i32) -> (i32, i32) {
    %c0_i32 = arith.constant 0 : i32
    %c0_i32_0 = arith.constant 0 : i32
    %c0_i32_1 = arith.constant 0 : i32
    return %c0_i32, %c0_i32_0 : i32, i32
  }
  func.func @transform_3(%arg0: i32) -> (i32, i32) {
    %c0_i32 = arith.constant 0 : i32
    %c0_i32_0 = arith.constant 0 : i32
    return %arg0, %c0_i32 : i32, i32
  }
}

module attributes {stable_mosaic.version = 11 : i64} {
  func.func @_bn_stats_kernel(%arg0: i32, %arg1: memref<128x128xf32, #tpu.memory_space<vmem>>, %arg2: memref<1x128xf32, #tpu.memory_space<vmem>>, %arg3: memref<1x128xf32, #tpu.memory_space<vmem>>) attributes {dimension_semantics = [#tpu.dimension_semantics<arbitrary>], iteration_bounds = array<i64: 1>, scalar_prefetch = 0 : i64, scratch_operands = 0 : i64, tpu.core_type = #tpu.core_type<tc>, window_params = [{transform_indices = @transform_0, window_bounds = array<i64: 128, 128>}, {pipeline_mode = #tpu.pipeline_mode<synchronous>, transform_indices = @transform_1, window_bounds = array<i64: 1, 128>}, {pipeline_mode = #tpu.pipeline_mode<synchronous>, transform_indices = @transform_2, window_bounds = array<i64: 1, 128>}]} {
    %c0_i32 = arith.constant 0 : i32
    %0 = arith.cmpi eq, %arg0, %c0_i32 : i32
    %1 = arith.extui %0 : i1 to i32
    %c0_i32_0 = arith.constant 0 : i32
    %2 = arith.cmpi ne, %1, %c0_i32_0 : i32
    scf.if %2 {
      %cst_11 = arith.constant 0.000000e+00 : f32
      %15 = vector.broadcast %cst_11 : f32 to vector<1x128xf32>
      %c0_12 = arith.constant 0 : index
      %c0_13 = arith.constant 0 : index
      %16 = vector.load %arg2[%c0_12, %c0_13] : memref<1x128xf32, #tpu.memory_space<vmem>>, vector<1x128xf32>
      tpu.vector_store %arg2[%c0_12, %c0_13], %15 {strides = array<i32>} : memref<1x128xf32, #tpu.memory_space<vmem>>, vector<1x128xf32>,
      %cst_14 = arith.constant 0.000000e+00 : f32
      %17 = vector.broadcast %cst_14 : f32 to vector<1x128xf32>
      %c0_15 = arith.constant 0 : index
      %c0_16 = arith.constant 0 : index
      %18 = vector.load %arg3[%c0_15, %c0_16] : memref<1x128xf32, #tpu.memory_space<vmem>>, vector<1x128xf32>
      tpu.vector_store %arg3[%c0_15, %c0_16], %17 {strides = array<i32>} : memref<1x128xf32, #tpu.memory_space<vmem>>, vector<1x128xf32>,
    } else {
    }
    %c0 = arith.constant 0 : index
    %c0_1 = arith.constant 0 : index
    %3 = vector.load %arg1[%c0, %c0_1] : memref<128x128xf32, #tpu.memory_space<vmem>>, vector<128x128xf32>
    %c0_2 = arith.constant 0 : index
    %c0_3 = arith.constant 0 : index
    %4 = vector.load %arg2[%c0_2, %c0_3] : memref<1x128xf32, #tpu.memory_space<vmem>>, vector<1x128xf32>
    %cst = arith.constant dense<0.000000e+00> : vector<128xf32>
    %5 = vector.multi_reduction <add>, %3, %cst [0] : vector<128x128xf32> to vector<128xf32>
    %6 = vector.shape_cast %5 : vector<128xf32> to vector<1x128xf32>
    %7 = arith.addf %4, %6 : vector<1x128xf32>
    %c0_4 = arith.constant 0 : index
    %c0_5 = arith.constant 0 : index
    %8 = vector.load %arg2[%c0_4, %c0_5] : memref<1x128xf32, #tpu.memory_space<vmem>>, vector<1x128xf32>
    tpu.vector_store %arg2[%c0_4, %c0_5], %7 {strides = array<i32>} : memref<1x128xf32, #tpu.memory_space<vmem>>, vector<1x128xf32>,
    %c0_6 = arith.constant 0 : index
    %c0_7 = arith.constant 0 : index
    %9 = vector.load %arg3[%c0_6, %c0_7] : memref<1x128xf32, #tpu.memory_space<vmem>>, vector<1x128xf32>
    %10 = arith.mulf %3, %3 : vector<128x128xf32>
    %cst_8 = arith.constant dense<0.000000e+00> : vector<128xf32>
    %11 = vector.multi_reduction <add>, %10, %cst_8 [0] : vector<128x128xf32> to vector<128xf32>
    %12 = vector.shape_cast %11 : vector<128xf32> to vector<1x128xf32>
    %13 = arith.addf %9, %12 : vector<1x128xf32>
    %c0_9 = arith.constant 0 : index
    %c0_10 = arith.constant 0 : index
    %14 = vector.load %arg3[%c0_9, %c0_10] : memref<1x128xf32, #tpu.memory_space<vmem>>, vector<1x128xf32>
    tpu.vector_store %arg3[%c0_9, %c0_10], %13 {strides = array<i32>} : memref<1x128xf32, #tpu.memory_space<vmem>>, vector<1x128xf32>,
    return
  }
  func.func @transform_0(%arg0: i32) -> (i32, i32) {
    %c0_i32 = arith.constant 0 : i32
    %c0_i32_0 = arith.constant 0 : i32
    return %arg0, %c0_i32 : i32, i32
  }
  func.func @transform_1(%arg0: i32) -> (i32, i32) {
    %c0_i32 = arith.constant 0 : i32
    %c0_i32_0 = arith.constant 0 : i32
    %c0_i32_1 = arith.constant 0 : i32
    return %c0_i32, %c0_i32_0 : i32, i32
  }
  func.func @transform_2(%arg0: i32) -> (i32, i32) {
    %c0_i32 = arith.constant 0 : i32
    %c0_i32_0 = arith.constant 0 : i32
    %c0_i32_1 = arith.constant 0 : i32
    return %c0_i32, %c0_i32_0 : i32, i32
  }
}

module attributes {stable_mosaic.version = 11 : i64} {
  func.func @kernel(%arg0: i32, %arg1: i32, %arg2: memref<1x4x5x128xbf16, #tpu.memory_space<vmem>>, %arg3: memref<9x128x128xbf16, #tpu.memory_space<vmem>>, %arg4: memref<1x2x4x128xf32, #tpu.memory_space<vmem>>, %arg5: memref<2x4x128xf32, #tpu.memory_space<vmem>>) attributes {dimension_semantics = [#tpu.dimension_semantics<parallel>, #tpu.dimension_semantics<arbitrary>], iteration_bounds = array<i64: 4, 3>, scalar_prefetch = 0 : i64, scratch_operands = 1 : i64, tpu.core_type = #tpu.core_type<tc>, window_params = [{transform_indices = @transform_0, window_bounds = array<i64: 1, 4, 5, 128>}, {pipeline_mode = #tpu.pipeline_mode<synchronous>, transform_indices = @transform_1, window_bounds = array<i64: 9, 128, 128>}, {transform_indices = @transform_2, window_bounds = array<i64: 1, 2, 4, 128>}]} {
    %c0_i32 = arith.constant 0 : i32
    %0 = arith.cmpi eq, %arg1, %c0_i32 : i32
    %1 = arith.extui %0 : i1 to i32
    %c0_i32_0 = arith.constant 0 : i32
    %2 = arith.cmpi ne, %1, %c0_i32_0 : i32
    scf.if %2 {
      %cst_73 = arith.constant 0.000000e+00 : f32
      %75 = vector.broadcast %cst_73 : f32 to vector<2x4x128xf32>
      %c0_74 = arith.constant 0 : index
      %c0_75 = arith.constant 0 : index
      %c0_76 = arith.constant 0 : index
      %76 = vector.load %arg5[%c0_74, %c0_75, %c0_76] : memref<2x4x128xf32, #tpu.memory_space<vmem>>, vector<2x4x128xf32>
      tpu.vector_store %arg5[%c0_74, %c0_75, %c0_76], %75 {strides = array<i32>} : memref<2x4x128xf32, #tpu.memory_space<vmem>>, vector<2x4x128xf32>,
    } else {
    }
    %c3_i32 = arith.constant 3 : i32
    %3 = arith.muli %arg1, %c3_i32 : i32
    %c0_i32_1 = arith.constant 0 : i32
    %4 = arith.addi %3, %c0_i32_1 : i32
    %5 = arith.index_cast %4 : i32 to index
    %c0 = arith.constant 0 : index
    %c0_2 = arith.constant 0 : index
    %6 = vector.load %arg3[%5, %c0, %c0_2] : memref<9x128x128xbf16, #tpu.memory_space<vmem>>, vector<1x128x128xbf16>
    %7 = vector.shape_cast %6 : vector<1x128x128xbf16> to vector<128x128xbf16>
    %c0_3 = arith.constant 0 : index
    %c0_4 = arith.constant 0 : index
    %c0_5 = arith.constant 0 : index
    %c0_6 = arith.constant 0 : index
    %8 = vector.load %arg2[%c0_3, %c0_4, %c0_5, %c0_6] : memref<1x4x5x128xbf16, #tpu.memory_space<vmem>>, vector<1x1x4x128xbf16>
    %9 = vector.shape_cast %8 : vector<1x1x4x128xbf16> to vector<4x128xbf16>
    %c0_7 = arith.constant 0 : index
    %c0_8 = arith.constant 0 : index
    %c0_9 = arith.constant 0 : index
    %10 = vector.load %arg5[%c0_7, %c0_8, %c0_9] : memref<2x4x128xf32, #tpu.memory_space<vmem>>, vector<1x4x128xf32>
    %11 = vector.shape_cast %10 : vector<1x4x128xf32> to vector<4x128xf32>
    %cst = arith.constant dense<0.000000e+00> : vector<4x128xf32>
    %12 = tpu.matmul %9, %7, %cst {dimension_numbers = #tpu.dot_dimension_numbers<[1], [0], [0], [1], [0, 0, 1, 1], [], []>} : vector<4x128xbf16>, vector<128x128xbf16>, vector<4x128xf32> -> vector<4x128xf32>
    %13 = arith.addf %11, %12 : vector<4x128xf32>
    %c0_10 = arith.constant 0 : index
    %c0_11 = arith.constant 0 : index
    %c0_12 = arith.constant 0 : index
    %14 = vector.load %arg5[%c0_10, %c0_11, %c0_12] : memref<2x4x128xf32, #tpu.memory_space<vmem>>, vector<1x4x128xf32>
    %15 = vector.shape_cast %14 : vector<1x4x128xf32> to vector<4x128xf32>
    %16 = vector.shape_cast %13 : vector<4x128xf32> to vector<1x4x128xf32>
    tpu.vector_store %arg5[%c0_10, %c0_11, %c0_12], %16 {strides = array<i32>} : memref<2x4x128xf32, #tpu.memory_space<vmem>>, vector<1x4x128xf32>,
    %c0_13 = arith.constant 0 : index
    %c1 = arith.constant 1 : index
    %c0_14 = arith.constant 0 : index
    %c0_15 = arith.constant 0 : index
    %17 = vector.load %arg2[%c0_13, %c1, %c0_14, %c0_15] : memref<1x4x5x128xbf16, #tpu.memory_space<vmem>>, vector<1x1x4x128xbf16>
    %18 = vector.shape_cast %17 : vector<1x1x4x128xbf16> to vector<4x128xbf16>
    %c1_16 = arith.constant 1 : index
    %c0_17 = arith.constant 0 : index
    %c0_18 = arith.constant 0 : index
    %19 = vector.load %arg5[%c1_16, %c0_17, %c0_18] : memref<2x4x128xf32, #tpu.memory_space<vmem>>, vector<1x4x128xf32>
    %20 = vector.shape_cast %19 : vector<1x4x128xf32> to vector<4x128xf32>
    %cst_19 = arith.constant dense<0.000000e+00> : vector<4x128xf32>
    %21 = tpu.matmul %18, %7, %cst_19 {dimension_numbers = #tpu.dot_dimension_numbers<[1], [0], [0], [1], [0, 0, 1, 1], [], []>} : vector<4x128xbf16>, vector<128x128xbf16>, vector<4x128xf32> -> vector<4x128xf32>
    %22 = arith.addf %20, %21 : vector<4x128xf32>
    %c1_20 = arith.constant 1 : index
    %c0_21 = arith.constant 0 : index
    %c0_22 = arith.constant 0 : index
    %23 = vector.load %arg5[%c1_20, %c0_21, %c0_22] : memref<2x4x128xf32, #tpu.memory_space<vmem>>, vector<1x4x128xf32>
    %24 = vector.shape_cast %23 : vector<1x4x128xf32> to vector<4x128xf32>
    %25 = vector.shape_cast %22 : vector<4x128xf32> to vector<1x4x128xf32>
    tpu.vector_store %arg5[%c1_20, %c0_21, %c0_22], %25 {strides = array<i32>} : memref<2x4x128xf32, #tpu.memory_space<vmem>>, vector<1x4x128xf32>,
    %c3_i32_23 = arith.constant 3 : i32
    %26 = arith.muli %arg1, %c3_i32_23 : i32
    %c1_i32 = arith.constant 1 : i32
    %27 = arith.addi %26, %c1_i32 : i32
    %28 = arith.index_cast %27 : i32 to index
    %c0_24 = arith.constant 0 : index
    %c0_25 = arith.constant 0 : index
    %29 = vector.load %arg3[%28, %c0_24, %c0_25] : memref<9x128x128xbf16, #tpu.memory_space<vmem>>, vector<1x128x128xbf16>
    %30 = vector.shape_cast %29 : vector<1x128x128xbf16> to vector<128x128xbf16>
    %c0_26 = arith.constant 0 : index
    %c2 = arith.constant 2 : index
    %c0_27 = arith.constant 0 : index
    %c0_28 = arith.constant 0 : index
    %31 = vector.load %arg2[%c0_26, %c2, %c0_27, %c0_28] : memref<1x4x5x128xbf16, #tpu.memory_space<vmem>>, vector<1x1x4x128xbf16>
    %32 = vector.shape_cast %31 : vector<1x1x4x128xbf16> to vector<4x128xbf16>
    %c0_29 = arith.constant 0 : index
    %c0_30 = arith.constant 0 : index
    %c0_31 = arith.constant 0 : index
    %33 = vector.load %arg5[%c0_29, %c0_30, %c0_31] : memref<2x4x128xf32, #tpu.memory_space<vmem>>, vector<1x4x128xf32>
    %34 = vector.shape_cast %33 : vector<1x4x128xf32> to vector<4x128xf32>
    %cst_32 = arith.constant dense<0.000000e+00> : vector<4x128xf32>
    %35 = tpu.matmul %32, %30, %cst_32 {dimension_numbers = #tpu.dot_dimension_numbers<[1], [0], [0], [1], [0, 0, 1, 1], [], []>} : vector<4x128xbf16>, vector<128x128xbf16>, vector<4x128xf32> -> vector<4x128xf32>
    %36 = arith.addf %34, %35 : vector<4x128xf32>
    %c0_33 = arith.constant 0 : index
    %c0_34 = arith.constant 0 : index
    %c0_35 = arith.constant 0 : index
    %37 = vector.load %arg5[%c0_33, %c0_34, %c0_35] : memref<2x4x128xf32, #tpu.memory_space<vmem>>, vector<1x4x128xf32>
    %38 = vector.shape_cast %37 : vector<1x4x128xf32> to vector<4x128xf32>
    %39 = vector.shape_cast %36 : vector<4x128xf32> to vector<1x4x128xf32>
    tpu.vector_store %arg5[%c0_33, %c0_34, %c0_35], %39 {strides = array<i32>} : memref<2x4x128xf32, #tpu.memory_space<vmem>>, vector<1x4x128xf32>,
    %c0_36 = arith.constant 0 : index
    %c3 = arith.constant 3 : index
    %c0_37 = arith.constant 0 : index
    %c0_38 = arith.constant 0 : index
    %40 = vector.load %arg2[%c0_36, %c3, %c0_37, %c0_38] : memref<1x4x5x128xbf16, #tpu.memory_space<vmem>>, vector<1x1x4x128xbf16>
    %41 = vector.shape_cast %40 : vector<1x1x4x128xbf16> to vector<4x128xbf16>
    %c1_39 = arith.constant 1 : index
    %c0_40 = arith.constant 0 : index
    %c0_41 = arith.constant 0 : index
    %42 = vector.load %arg5[%c1_39, %c0_40, %c0_41] : memref<2x4x128xf32, #tpu.memory_space<vmem>>, vector<1x4x128xf32>
    %43 = vector.shape_cast %42 : vector<1x4x128xf32> to vector<4x128xf32>
    %cst_42 = arith.constant dense<0.000000e+00> : vector<4x128xf32>
    %44 = tpu.matmul %41, %30, %cst_42 {dimension_numbers = #tpu.dot_dimension_numbers<[1], [0], [0], [1], [0, 0, 1, 1], [], []>} : vector<4x128xbf16>, vector<128x128xbf16>, vector<4x128xf32> -> vector<4x128xf32>
    %45 = arith.addf %43, %44 : vector<4x128xf32>
    %c1_43 = arith.constant 1 : index
    %c0_44 = arith.constant 0 : index
    %c0_45 = arith.constant 0 : index
    %46 = vector.load %arg5[%c1_43, %c0_44, %c0_45] : memref<2x4x128xf32, #tpu.memory_space<vmem>>, vector<1x4x128xf32>
    %47 = vector.shape_cast %46 : vector<1x4x128xf32> to vector<4x128xf32>
    %48 = vector.shape_cast %45 : vector<4x128xf32> to vector<1x4x128xf32>
    tpu.vector_store %arg5[%c1_43, %c0_44, %c0_45], %48 {strides = array<i32>} : memref<2x4x128xf32, #tpu.memory_space<vmem>>, vector<1x4x128xf32>,
    %c3_i32_46 = arith.constant 3 : i32
    %49 = arith.muli %arg1, %c3_i32_46 : i32
    %c2_i32 = arith.constant 2 : i32
    %50 = arith.addi %49, %c2_i32 : i32
    %51 = arith.index_cast %50 : i32 to index
    %c0_47 = arith.constant 0 : index
    %c0_48 = arith.constant 0 : index
    %52 = vector.load %arg3[%51, %c0_47, %c0_48] : memref<9x128x128xbf16, #tpu.memory_space<vmem>>, vector<1x128x128xbf16>
    %53 = vector.shape_cast %52 : vector<1x128x128xbf16> to vector<128x128xbf16>
    %c0_49 = arith.constant 0 : index
    %c0_50 = arith.constant 0 : index
    %c1_51 = arith.constant 1 : index
    %c0_52 = arith.constant 0 : index
    %54 = vector.load %arg2[%c0_49, %c0_50, %c1_51, %c0_52] : memref<1x4x5x128xbf16, #tpu.memory_space<vmem>>, vector<1x1x4x128xbf16>
    %55 = vector.shape_cast %54 : vector<1x1x4x128xbf16> to vector<4x128xbf16>
    %c0_53 = arith.constant 0 : index
    %c0_54 = arith.constant 0 : index
    %c0_55 = arith.constant 0 : index
    %56 = vector.load %arg5[%c0_53, %c0_54, %c0_55] : memref<2x4x128xf32, #tpu.memory_space<vmem>>, vector<1x4x128xf32>
    %57 = vector.shape_cast %56 : vector<1x4x128xf32> to vector<4x128xf32>
    %cst_56 = arith.constant dense<0.000000e+00> : vector<4x128xf32>
    %58 = tpu.matmul %55, %53, %cst_56 {dimension_numbers = #tpu.dot_dimension_numbers<[1], [0], [0], [1], [0, 0, 1, 1], [], []>} : vector<4x128xbf16>, vector<128x128xbf16>, vector<4x128xf32> -> vector<4x128xf32>
    %59 = arith.addf %57, %58 : vector<4x128xf32>
    %c0_57 = arith.constant 0 : index
    %c0_58 = arith.constant 0 : index
    %c0_59 = arith.constant 0 : index
    %60 = vector.load %arg5[%c0_57, %c0_58, %c0_59] : memref<2x4x128xf32, #tpu.memory_space<vmem>>, vector<1x4x128xf32>
    %61 = vector.shape_cast %60 : vector<1x4x128xf32> to vector<4x128xf32>
    %62 = vector.shape_cast %59 : vector<4x128xf32> to vector<1x4x128xf32>
    tpu.vector_store %arg5[%c0_57, %c0_58, %c0_59], %62 {strides = array<i32>} : memref<2x4x128xf32, #tpu.memory_space<vmem>>, vector<1x4x128xf32>,
    %c0_60 = arith.constant 0 : index
    %c1_61 = arith.constant 1 : index
    %c1_62 = arith.constant 1 : index
    %c0_63 = arith.constant 0 : index
    %63 = vector.load %arg2[%c0_60, %c1_61, %c1_62, %c0_63] : memref<1x4x5x128xbf16, #tpu.memory_space<vmem>>, vector<1x1x4x128xbf16>
    %64 = vector.shape_cast %63 : vector<1x1x4x128xbf16> to vector<4x128xbf16>
    %c1_64 = arith.constant 1 : index
    %c0_65 = arith.constant 0 : index
    %c0_66 = arith.constant 0 : index
    %65 = vector.load %arg5[%c1_64, %c0_65, %c0_66] : memref<2x4x128xf32, #tpu.memory_space<vmem>>, vector<1x4x128xf32>
    %66 = vector.shape_cast %65 : vector<1x4x128xf32> to vector<4x128xf32>
    %cst_67 = arith.constant dense<0.000000e+00> : vector<4x128xf32>
    %67 = tpu.matmul %64, %53, %cst_67 {dimension_numbers = #tpu.dot_dimension_numbers<[1], [0], [0], [1], [0, 0, 1, 1], [], []>} : vector<4x128xbf16>, vector<128x128xbf16>, vector<4x128xf32> -> vector<4x128xf32>
    %68 = arith.addf %66, %67 : vector<4x128xf32>
    %c1_68 = arith.constant 1 : index
    %c0_69 = arith.constant 0 : index
    %c0_70 = arith.constant 0 : index
    %69 = vector.load %arg5[%c1_68, %c0_69, %c0_70] : memref<2x4x128xf32, #tpu.memory_space<vmem>>, vector<1x4x128xf32>
    %70 = vector.shape_cast %69 : vector<1x4x128xf32> to vector<4x128xf32>
    %71 = vector.shape_cast %68 : vector<4x128xf32> to vector<1x4x128xf32>
    tpu.vector_store %arg5[%c1_68, %c0_69, %c0_70], %71 {strides = array<i32>} : memref<2x4x128xf32, #tpu.memory_space<vmem>>, vector<1x4x128xf32>,
    %c2_i32_71 = arith.constant 2 : i32
    %72 = arith.cmpi eq, %arg1, %c2_i32_71 : i32
    %73 = arith.extui %72 : i1 to i32
    %c0_i32_72 = arith.constant 0 : i32
    %74 = arith.cmpi ne, %73, %c0_i32_72 : i32
    scf.if %74 {
      %c0_73 = arith.constant 0 : index
      %c0_74 = arith.constant 0 : index
      %c0_75 = arith.constant 0 : index
      %75 = vector.load %arg5[%c0_73, %c0_74, %c0_75] : memref<2x4x128xf32, #tpu.memory_space<vmem>>, vector<2x4x128xf32>
      %c0_76 = arith.constant 0 : index
      %c0_77 = arith.constant 0 : index
      %c0_78 = arith.constant 0 : index
      %c0_79 = arith.constant 0 : index
      %76 = vector.load %arg4[%c0_76, %c0_77, %c0_78, %c0_79] : memref<1x2x4x128xf32, #tpu.memory_space<vmem>>, vector<1x2x4x128xf32>
      %77 = vector.shape_cast %76 : vector<1x2x4x128xf32> to vector<2x4x128xf32>
      %78 = vector.shape_cast %75 : vector<2x4x128xf32> to vector<1x2x4x128xf32>
      tpu.vector_store %arg4[%c0_76, %c0_77, %c0_78, %c0_79], %78 {strides = array<i32>} : memref<1x2x4x128xf32, #tpu.memory_space<vmem>>, vector<1x2x4x128xf32>,
    } else {
    }
    return
  }
  func.func @transform_0(%arg0: i32, %arg1: i32) -> (i32, i32, i32, i32) {
    %c2_i32 = arith.constant 2 : i32
    %0 = arith.muli %c2_i32, %arg0 : i32
    %1 = arith.addi %0, %arg1 : i32
    %c0_i32 = arith.constant 0 : i32
    %c0_i32_0 = arith.constant 0 : i32
    %c0_i32_1 = arith.constant 0 : i32
    %c0_i32_2 = arith.constant 0 : i32
    return %1, %c0_i32, %c0_i32_0, %c0_i32_1 : i32, i32, i32, i32
  }
  func.func @transform_1(%arg0: i32, %arg1: i32) -> (i32, i32, i32) {
    %c0_i32 = arith.constant 0 : i32
    %c0_i32_0 = arith.constant 0 : i32
    %c0_i32_1 = arith.constant 0 : i32
    %c0_i32_2 = arith.constant 0 : i32
    return %c0_i32, %c0_i32_0, %c0_i32_1 : i32, i32, i32
  }
  func.func @transform_2(%arg0: i32, %arg1: i32) -> (i32, i32, i32, i32) {
    %c0_i32 = arith.constant 0 : i32
    %c0_i32_0 = arith.constant 0 : i32
    %c0_i32_1 = arith.constant 0 : i32
    %c0_i32_2 = arith.constant 0 : i32
    return %arg0, %c0_i32, %c0_i32_0, %c0_i32_1 : i32, i32, i32, i32
  }
}

module attributes {stable_mosaic.version = 11 : i64} {
  func.func @_bn_stats_kernel(%arg0: i32, %arg1: memref<32x128xf32, #tpu.memory_space<vmem>>, %arg2: memref<1x128xf32, #tpu.memory_space<vmem>>, %arg3: memref<1x128xf32, #tpu.memory_space<vmem>>) attributes {dimension_semantics = [#tpu.dimension_semantics<arbitrary>], iteration_bounds = array<i64: 1>, scalar_prefetch = 0 : i64, scratch_operands = 0 : i64, tpu.core_type = #tpu.core_type<tc>, window_params = [{transform_indices = @transform_0, window_bounds = array<i64: 32, 128>}, {pipeline_mode = #tpu.pipeline_mode<synchronous>, transform_indices = @transform_1, window_bounds = array<i64: 1, 128>}, {pipeline_mode = #tpu.pipeline_mode<synchronous>, transform_indices = @transform_2, window_bounds = array<i64: 1, 128>}]} {
    %c0_i32 = arith.constant 0 : i32
    %0 = arith.cmpi eq, %arg0, %c0_i32 : i32
    %1 = arith.extui %0 : i1 to i32
    %c0_i32_0 = arith.constant 0 : i32
    %2 = arith.cmpi ne, %1, %c0_i32_0 : i32
    scf.if %2 {
      %cst_11 = arith.constant 0.000000e+00 : f32
      %15 = vector.broadcast %cst_11 : f32 to vector<1x128xf32>
      %c0_12 = arith.constant 0 : index
      %c0_13 = arith.constant 0 : index
      %16 = vector.load %arg2[%c0_12, %c0_13] : memref<1x128xf32, #tpu.memory_space<vmem>>, vector<1x128xf32>
      tpu.vector_store %arg2[%c0_12, %c0_13], %15 {strides = array<i32>} : memref<1x128xf32, #tpu.memory_space<vmem>>, vector<1x128xf32>,
      %cst_14 = arith.constant 0.000000e+00 : f32
      %17 = vector.broadcast %cst_14 : f32 to vector<1x128xf32>
      %c0_15 = arith.constant 0 : index
      %c0_16 = arith.constant 0 : index
      %18 = vector.load %arg3[%c0_15, %c0_16] : memref<1x128xf32, #tpu.memory_space<vmem>>, vector<1x128xf32>
      tpu.vector_store %arg3[%c0_15, %c0_16], %17 {strides = array<i32>} : memref<1x128xf32, #tpu.memory_space<vmem>>, vector<1x128xf32>,
    } else {
    }
    %c0 = arith.constant 0 : index
    %c0_1 = arith.constant 0 : index
    %3 = vector.load %arg1[%c0, %c0_1] : memref<32x128xf32, #tpu.memory_space<vmem>>, vector<32x128xf32>
    %c0_2 = arith.constant 0 : index
    %c0_3 = arith.constant 0 : index
    %4 = vector.load %arg2[%c0_2, %c0_3] : memref<1x128xf32, #tpu.memory_space<vmem>>, vector<1x128xf32>
    %cst = arith.constant dense<0.000000e+00> : vector<128xf32>
    %5 = vector.multi_reduction <add>, %3, %cst [0] : vector<32x128xf32> to vector<128xf32>
    %6 = vector.shape_cast %5 : vector<128xf32> to vector<1x128xf32>
    %7 = arith.addf %4, %6 : vector<1x128xf32>
    %c0_4 = arith.constant 0 : index
    %c0_5 = arith.constant 0 : index
    %8 = vector.load %arg2[%c0_4, %c0_5] : memref<1x128xf32, #tpu.memory_space<vmem>>, vector<1x128xf32>
    tpu.vector_store %arg2[%c0_4, %c0_5], %7 {strides = array<i32>} : memref<1x128xf32, #tpu.memory_space<vmem>>, vector<1x128xf32>,
    %c0_6 = arith.constant 0 : index
    %c0_7 = arith.constant 0 : index
    %9 = vector.load %arg3[%c0_6, %c0_7] : memref<1x128xf32, #tpu.memory_space<vmem>>, vector<1x128xf32>
    %10 = arith.mulf %3, %3 : vector<32x128xf32>
    %cst_8 = arith.constant dense<0.000000e+00> : vector<128xf32>
    %11 = vector.multi_reduction <add>, %10, %cst_8 [0] : vector<32x128xf32> to vector<128xf32>
    %12 = vector.shape_cast %11 : vector<128xf32> to vector<1x128xf32>
    %13 = arith.addf %9, %12 : vector<1x128xf32>
    %c0_9 = arith.constant 0 : index
    %c0_10 = arith.constant 0 : index
    %14 = vector.load %arg3[%c0_9, %c0_10] : memref<1x128xf32, #tpu.memory_space<vmem>>, vector<1x128xf32>
    tpu.vector_store %arg3[%c0_9, %c0_10], %13 {strides = array<i32>} : memref<1x128xf32, #tpu.memory_space<vmem>>, vector<1x128xf32>,
    return
  }
  func.func @transform_0(%arg0: i32) -> (i32, i32) {
    %c0_i32 = arith.constant 0 : i32
    %c0_i32_0 = arith.constant 0 : i32
    return %arg0, %c0_i32 : i32, i32
  }
  func.func @transform_1(%arg0: i32) -> (i32, i32) {
    %c0_i32 = arith.constant 0 : i32
    %c0_i32_0 = arith.constant 0 : i32
    %c0_i32_1 = arith.constant 0 : i32
    return %c0_i32, %c0_i32_0 : i32, i32
  }
  func.func @transform_2(%arg0: i32) -> (i32, i32) {
    %c0_i32 = arith.constant 0 : i32
    %c0_i32_0 = arith.constant 0 : i32
    %c0_i32_1 = arith.constant 0 : i32
    return %c0_i32, %c0_i32_0 : i32, i32
  }
}

module attributes {stable_mosaic.version = 11 : i64} {
  func.func @kernel(%arg0: i32, %arg1: memref<32x128xf32, #tpu.memory_space<vmem>>, %arg2: memref<1x128xf32, #tpu.memory_space<vmem>>, %arg3: memref<1x128xf32, #tpu.memory_space<vmem>>, %arg4: memref<32x128xbf16, #tpu.memory_space<vmem>>) attributes {dimension_semantics = [#tpu.dimension_semantics<parallel>], iteration_bounds = array<i64: 1>, scalar_prefetch = 0 : i64, scratch_operands = 0 : i64, tpu.core_type = #tpu.core_type<tc>, window_params = [{transform_indices = @transform_0, window_bounds = array<i64: 32, 128>}, {pipeline_mode = #tpu.pipeline_mode<synchronous>, transform_indices = @transform_1, window_bounds = array<i64: 1, 128>}, {pipeline_mode = #tpu.pipeline_mode<synchronous>, transform_indices = @transform_2, window_bounds = array<i64: 1, 128>}, {transform_indices = @transform_3, window_bounds = array<i64: 32, 128>}]} {
    %c0 = arith.constant 0 : index
    %c0_0 = arith.constant 0 : index
    %0 = vector.load %arg2[%c0, %c0_0] : memref<1x128xf32, #tpu.memory_space<vmem>>, vector<1x128xf32>
    %cst = arith.constant 3.125000e-02 : f32
    %1 = vector.broadcast %cst : f32 to vector<1x128xf32>
    %2 = arith.mulf %0, %1 : vector<1x128xf32>
    %c0_1 = arith.constant 0 : index
    %c0_2 = arith.constant 0 : index
    %3 = vector.load %arg3[%c0_1, %c0_2] : memref<1x128xf32, #tpu.memory_space<vmem>>, vector<1x128xf32>
    %cst_3 = arith.constant 3.125000e-02 : f32
    %4 = vector.broadcast %cst_3 : f32 to vector<1x128xf32>
    %5 = arith.mulf %3, %4 : vector<1x128xf32>
    %6 = arith.mulf %2, %2 : vector<1x128xf32>
    %7 = arith.subf %5, %6 : vector<1x128xf32>
    %cst_4 = arith.constant 9.99999974E-6 : f32
    %8 = vector.broadcast %cst_4 : f32 to vector<1x128xf32>
    %9 = arith.addf %7, %8 : vector<1x128xf32>
    %10 = math.rsqrt %9 : vector<1x128xf32>
    %c0_5 = arith.constant 0 : index
    %c0_6 = arith.constant 0 : index
    %11 = vector.load %arg1[%c0_5, %c0_6] : memref<32x128xf32, #tpu.memory_space<vmem>>, vector<32x128xf32>
    %12 = vector.broadcast %2 : vector<1x128xf32> to vector<32x128xf32>
    %13 = arith.subf %11, %12 : vector<32x128xf32>
    %14 = vector.broadcast %10 : vector<1x128xf32> to vector<32x128xf32>
    %15 = arith.mulf %13, %14 : vector<32x128xf32>
    %cst_7 = arith.constant 0.000000e+00 : f32
    %16 = vector.broadcast %cst_7 : f32 to vector<32x128xf32>
    %17 = arith.maximumf %15, %16 : vector<32x128xf32>
    %18 = arith.truncf %17 : vector<32x128xf32> to vector<32x128xbf16>
    %c0_8 = arith.constant 0 : index
    %c0_9 = arith.constant 0 : index
    %19 = vector.load %arg4[%c0_8, %c0_9] : memref<32x128xbf16, #tpu.memory_space<vmem>>, vector<32x128xbf16>
    tpu.vector_store %arg4[%c0_8, %c0_9], %18 {strides = array<i32>} : memref<32x128xbf16, #tpu.memory_space<vmem>>, vector<32x128xbf16>,
    return
  }
  func.func @transform_0(%arg0: i32) -> (i32, i32) {
    %c0_i32 = arith.constant 0 : i32
    %c0_i32_0 = arith.constant 0 : i32
    return %arg0, %c0_i32 : i32, i32
  }
  func.func @transform_1(%arg0: i32) -> (i32, i32) {
    %c0_i32 = arith.constant 0 : i32
    %c0_i32_0 = arith.constant 0 : i32
    %c0_i32_1 = arith.constant 0 : i32
    return %c0_i32, %c0_i32_0 : i32, i32
  }
  func.func @transform_2(%arg0: i32) -> (i32, i32) {
    %c0_i32 = arith.constant 0 : i32
    %c0_i32_0 = arith.constant 0 : i32
    %c0_i32_1 = arith.constant 0 : i32
    return %c0_i32, %c0_i32_0 : i32, i32
  }
  func.func @transform_3(%arg0: i32) -> (i32, i32) {
    %c0_i32 = arith.constant 0 : i32
    %c0_i32_0 = arith.constant 0 : i32
    return %arg0, %c0_i32 : i32, i32
  }
}

module attributes {stable_mosaic.version = 11 : i64} {
  func.func @kernel(%arg0: i32, %arg1: memref<32x128xf32, #tpu.memory_space<vmem>>, %arg2: memref<1x128xf32, #tpu.memory_space<vmem>>, %arg3: memref<1x128xf32, #tpu.memory_space<vmem>>, %arg4: memref<32x128xbf16, #tpu.memory_space<vmem>>, %arg5: memref<32x128xbf16, #tpu.memory_space<vmem>>) attributes {dimension_semantics = [#tpu.dimension_semantics<parallel>], iteration_bounds = array<i64: 1>, scalar_prefetch = 0 : i64, scratch_operands = 0 : i64, tpu.core_type = #tpu.core_type<tc>, window_params = [{transform_indices = @transform_0, window_bounds = array<i64: 32, 128>}, {pipeline_mode = #tpu.pipeline_mode<synchronous>, transform_indices = @transform_1, window_bounds = array<i64: 1, 128>}, {pipeline_mode = #tpu.pipeline_mode<synchronous>, transform_indices = @transform_2, window_bounds = array<i64: 1, 128>}, {transform_indices = @transform_3, window_bounds = array<i64: 32, 128>}, {transform_indices = @transform_4, window_bounds = array<i64: 32, 128>}]} {
    %c0 = arith.constant 0 : index
    %c0_0 = arith.constant 0 : index
    %0 = vector.load %arg2[%c0, %c0_0] : memref<1x128xf32, #tpu.memory_space<vmem>>, vector<1x128xf32>
    %cst = arith.constant 3.125000e-02 : f32
    %1 = vector.broadcast %cst : f32 to vector<1x128xf32>
    %2 = arith.mulf %0, %1 : vector<1x128xf32>
    %c0_1 = arith.constant 0 : index
    %c0_2 = arith.constant 0 : index
    %3 = vector.load %arg3[%c0_1, %c0_2] : memref<1x128xf32, #tpu.memory_space<vmem>>, vector<1x128xf32>
    %cst_3 = arith.constant 3.125000e-02 : f32
    %4 = vector.broadcast %cst_3 : f32 to vector<1x128xf32>
    %5 = arith.mulf %3, %4 : vector<1x128xf32>
    %6 = arith.mulf %2, %2 : vector<1x128xf32>
    %7 = arith.subf %5, %6 : vector<1x128xf32>
    %cst_4 = arith.constant 9.99999974E-6 : f32
    %8 = vector.broadcast %cst_4 : f32 to vector<1x128xf32>
    %9 = arith.addf %7, %8 : vector<1x128xf32>
    %10 = math.rsqrt %9 : vector<1x128xf32>
    %c0_5 = arith.constant 0 : index
    %c0_6 = arith.constant 0 : index
    %11 = vector.load %arg1[%c0_5, %c0_6] : memref<32x128xf32, #tpu.memory_space<vmem>>, vector<32x128xf32>
    %12 = vector.broadcast %2 : vector<1x128xf32> to vector<32x128xf32>
    %13 = arith.subf %11, %12 : vector<32x128xf32>
    %14 = vector.broadcast %10 : vector<1x128xf32> to vector<32x128xf32>
    %15 = arith.mulf %13, %14 : vector<32x128xf32>
    %c0_7 = arith.constant 0 : index
    %c0_8 = arith.constant 0 : index
    %16 = vector.load %arg4[%c0_7, %c0_8] : memref<32x128xbf16, #tpu.memory_space<vmem>>, vector<32x128xbf16>
    %17 = arith.extf %16 : vector<32x128xbf16> to vector<32x128xf32>
    %18 = arith.addf %15, %17 : vector<32x128xf32>
    %19 = arith.truncf %18 : vector<32x128xf32> to vector<32x128xbf16>
    %c0_9 = arith.constant 0 : index
    %c0_10 = arith.constant 0 : index
    %20 = vector.load %arg5[%c0_9, %c0_10] : memref<32x128xbf16, #tpu.memory_space<vmem>>, vector<32x128xbf16>
    tpu.vector_store %arg5[%c0_9, %c0_10], %19 {strides = array<i32>} : memref<32x128xbf16, #tpu.memory_space<vmem>>, vector<32x128xbf16>,
    return
  }
  func.func @transform_0(%arg0: i32) -> (i32, i32) {
    %c0_i32 = arith.constant 0 : i32
    %c0_i32_0 = arith.constant 0 : i32
    return %arg0, %c0_i32 : i32, i32
  }
  func.func @transform_1(%arg0: i32) -> (i32, i32) {
    %c0_i32 = arith.constant 0 : i32
    %c0_i32_0 = arith.constant 0 : i32
    %c0_i32_1 = arith.constant 0 : i32
    return %c0_i32, %c0_i32_0 : i32, i32
  }
  func.func @transform_2(%arg0: i32) -> (i32, i32) {
    %c0_i32 = arith.constant 0 : i32
    %c0_i32_0 = arith.constant 0 : i32
    %c0_i32_1 = arith.constant 0 : i32
    return %c0_i32, %c0_i32_0 : i32, i32
  }
  func.func @transform_3(%arg0: i32) -> (i32, i32) {
    %c0_i32 = arith.constant 0 : i32
    %c0_i32_0 = arith.constant 0 : i32
    return %arg0, %c0_i32 : i32, i32
  }
  func.func @transform_4(%arg0: i32) -> (i32, i32) {
    %c0_i32 = arith.constant 0 : i32
    %c0_i32_0 = arith.constant 0 : i32
    return %arg0, %c0_i32 : i32, i32
  }
}

module attributes {stable_mosaic.version = 11 : i64} {
  func.func @kernel(%arg0: i32, %arg1: i32, %arg2: memref<1x2x6x128xbf16, #tpu.memory_space<vmem>>, %arg3: memref<9x128x128xbf16, #tpu.memory_space<vmem>>, %arg4: memref<1x2x4x128xf32, #tpu.memory_space<vmem>>, %arg5: memref<2x4x128xf32, #tpu.memory_space<vmem>>) attributes {dimension_semantics = [#tpu.dimension_semantics<parallel>, #tpu.dimension_semantics<arbitrary>], iteration_bounds = array<i64: 4, 3>, scalar_prefetch = 0 : i64, scratch_operands = 1 : i64, tpu.core_type = #tpu.core_type<tc>, window_params = [{transform_indices = @transform_0, window_bounds = array<i64: 1, 2, 6, 128>}, {pipeline_mode = #tpu.pipeline_mode<synchronous>, transform_indices = @transform_1, window_bounds = array<i64: 9, 128, 128>}, {transform_indices = @transform_2, window_bounds = array<i64: 1, 2, 4, 128>}]} {
    %c0_i32 = arith.constant 0 : i32
    %0 = arith.cmpi eq, %arg1, %c0_i32 : i32
    %1 = arith.extui %0 : i1 to i32
    %c0_i32_0 = arith.constant 0 : i32
    %2 = arith.cmpi ne, %1, %c0_i32_0 : i32
    scf.if %2 {
      %cst_74 = arith.constant 0.000000e+00 : f32
      %75 = vector.broadcast %cst_74 : f32 to vector<2x4x128xf32>
      %c0_75 = arith.constant 0 : index
      %c0_76 = arith.constant 0 : index
      %c0_77 = arith.constant 0 : index
      %76 = vector.load %arg5[%c0_75, %c0_76, %c0_77] : memref<2x4x128xf32, #tpu.memory_space<vmem>>, vector<2x4x128xf32>
      tpu.vector_store %arg5[%c0_75, %c0_76, %c0_77], %75 {strides = array<i32>} : memref<2x4x128xf32, #tpu.memory_space<vmem>>, vector<2x4x128xf32>,
    } else {
    }
    %c3_i32 = arith.constant 3 : i32
    %3 = arith.muli %arg1, %c3_i32 : i32
    %c0_i32_1 = arith.constant 0 : i32
    %4 = arith.addi %3, %c0_i32_1 : i32
    %5 = arith.index_cast %4 : i32 to index
    %c0 = arith.constant 0 : index
    %c0_2 = arith.constant 0 : index
    %6 = vector.load %arg3[%5, %c0, %c0_2] : memref<9x128x128xbf16, #tpu.memory_space<vmem>>, vector<1x128x128xbf16>
    %7 = vector.shape_cast %6 : vector<1x128x128xbf16> to vector<128x128xbf16>
    %c0_3 = arith.constant 0 : index
    %c0_4 = arith.constant 0 : index
    %c0_5 = arith.constant 0 : index
    %c0_6 = arith.constant 0 : index
    %8 = vector.load %arg2[%c0_3, %c0_4, %c0_5, %c0_6] : memref<1x2x6x128xbf16, #tpu.memory_space<vmem>>, vector<1x1x4x128xbf16>
    %9 = vector.shape_cast %8 : vector<1x1x4x128xbf16> to vector<4x128xbf16>
    %c0_7 = arith.constant 0 : index
    %c0_8 = arith.constant 0 : index
    %c0_9 = arith.constant 0 : index
    %10 = vector.load %arg5[%c0_7, %c0_8, %c0_9] : memref<2x4x128xf32, #tpu.memory_space<vmem>>, vector<1x4x128xf32>
    %11 = vector.shape_cast %10 : vector<1x4x128xf32> to vector<4x128xf32>
    %cst = arith.constant dense<0.000000e+00> : vector<4x128xf32>
    %12 = tpu.matmul %9, %7, %cst {dimension_numbers = #tpu.dot_dimension_numbers<[1], [0], [0], [1], [0, 0, 1, 1], [], []>} : vector<4x128xbf16>, vector<128x128xbf16>, vector<4x128xf32> -> vector<4x128xf32>
    %13 = arith.addf %11, %12 : vector<4x128xf32>
    %c0_10 = arith.constant 0 : index
    %c0_11 = arith.constant 0 : index
    %c0_12 = arith.constant 0 : index
    %14 = vector.load %arg5[%c0_10, %c0_11, %c0_12] : memref<2x4x128xf32, #tpu.memory_space<vmem>>, vector<1x4x128xf32>
    %15 = vector.shape_cast %14 : vector<1x4x128xf32> to vector<4x128xf32>
    %16 = vector.shape_cast %13 : vector<4x128xf32> to vector<1x4x128xf32>
    tpu.vector_store %arg5[%c0_10, %c0_11, %c0_12], %16 {strides = array<i32>} : memref<2x4x128xf32, #tpu.memory_space<vmem>>, vector<1x4x128xf32>,
    %c0_13 = arith.constant 0 : index
    %c1 = arith.constant 1 : index
    %c0_14 = arith.constant 0 : index
    %c0_15 = arith.constant 0 : index
    %17 = vector.load %arg2[%c0_13, %c1, %c0_14, %c0_15] : memref<1x2x6x128xbf16, #tpu.memory_space<vmem>>, vector<1x1x4x128xbf16>
    %18 = vector.shape_cast %17 : vector<1x1x4x128xbf16> to vector<4x128xbf16>
    %c1_16 = arith.constant 1 : index
    %c0_17 = arith.constant 0 : index
    %c0_18 = arith.constant 0 : index
    %19 = vector.load %arg5[%c1_16, %c0_17, %c0_18] : memref<2x4x128xf32, #tpu.memory_space<vmem>>, vector<1x4x128xf32>
    %20 = vector.shape_cast %19 : vector<1x4x128xf32> to vector<4x128xf32>
    %cst_19 = arith.constant dense<0.000000e+00> : vector<4x128xf32>
    %21 = tpu.matmul %18, %7, %cst_19 {dimension_numbers = #tpu.dot_dimension_numbers<[1], [0], [0], [1], [0, 0, 1, 1], [], []>} : vector<4x128xbf16>, vector<128x128xbf16>, vector<4x128xf32> -> vector<4x128xf32>
    %22 = arith.addf %20, %21 : vector<4x128xf32>
    %c1_20 = arith.constant 1 : index
    %c0_21 = arith.constant 0 : index
    %c0_22 = arith.constant 0 : index
    %23 = vector.load %arg5[%c1_20, %c0_21, %c0_22] : memref<2x4x128xf32, #tpu.memory_space<vmem>>, vector<1x4x128xf32>
    %24 = vector.shape_cast %23 : vector<1x4x128xf32> to vector<4x128xf32>
    %25 = vector.shape_cast %22 : vector<4x128xf32> to vector<1x4x128xf32>
    tpu.vector_store %arg5[%c1_20, %c0_21, %c0_22], %25 {strides = array<i32>} : memref<2x4x128xf32, #tpu.memory_space<vmem>>, vector<1x4x128xf32>,
    %c3_i32_23 = arith.constant 3 : i32
    %26 = arith.muli %arg1, %c3_i32_23 : i32
    %c1_i32 = arith.constant 1 : i32
    %27 = arith.addi %26, %c1_i32 : i32
    %28 = arith.index_cast %27 : i32 to index
    %c0_24 = arith.constant 0 : index
    %c0_25 = arith.constant 0 : index
    %29 = vector.load %arg3[%28, %c0_24, %c0_25] : memref<9x128x128xbf16, #tpu.memory_space<vmem>>, vector<1x128x128xbf16>
    %30 = vector.shape_cast %29 : vector<1x128x128xbf16> to vector<128x128xbf16>
    %c0_26 = arith.constant 0 : index
    %c0_27 = arith.constant 0 : index
    %c1_28 = arith.constant 1 : index
    %c0_29 = arith.constant 0 : index
    %31 = vector.load %arg2[%c0_26, %c0_27, %c1_28, %c0_29] : memref<1x2x6x128xbf16, #tpu.memory_space<vmem>>, vector<1x1x4x128xbf16>
    %32 = vector.shape_cast %31 : vector<1x1x4x128xbf16> to vector<4x128xbf16>
    %c0_30 = arith.constant 0 : index
    %c0_31 = arith.constant 0 : index
    %c0_32 = arith.constant 0 : index
    %33 = vector.load %arg5[%c0_30, %c0_31, %c0_32] : memref<2x4x128xf32, #tpu.memory_space<vmem>>, vector<1x4x128xf32>
    %34 = vector.shape_cast %33 : vector<1x4x128xf32> to vector<4x128xf32>
    %cst_33 = arith.constant dense<0.000000e+00> : vector<4x128xf32>
    %35 = tpu.matmul %32, %30, %cst_33 {dimension_numbers = #tpu.dot_dimension_numbers<[1], [0], [0], [1], [0, 0, 1, 1], [], []>} : vector<4x128xbf16>, vector<128x128xbf16>, vector<4x128xf32> -> vector<4x128xf32>
    %36 = arith.addf %34, %35 : vector<4x128xf32>
    %c0_34 = arith.constant 0 : index
    %c0_35 = arith.constant 0 : index
    %c0_36 = arith.constant 0 : index
    %37 = vector.load %arg5[%c0_34, %c0_35, %c0_36] : memref<2x4x128xf32, #tpu.memory_space<vmem>>, vector<1x4x128xf32>
    %38 = vector.shape_cast %37 : vector<1x4x128xf32> to vector<4x128xf32>
    %39 = vector.shape_cast %36 : vector<4x128xf32> to vector<1x4x128xf32>
    tpu.vector_store %arg5[%c0_34, %c0_35, %c0_36], %39 {strides = array<i32>} : memref<2x4x128xf32, #tpu.memory_space<vmem>>, vector<1x4x128xf32>,
    %c0_37 = arith.constant 0 : index
    %c1_38 = arith.constant 1 : index
    %c1_39 = arith.constant 1 : index
    %c0_40 = arith.constant 0 : index
    %40 = vector.load %arg2[%c0_37, %c1_38, %c1_39, %c0_40] : memref<1x2x6x128xbf16, #tpu.memory_space<vmem>>, vector<1x1x4x128xbf16>
    %41 = vector.shape_cast %40 : vector<1x1x4x128xbf16> to vector<4x128xbf16>
    %c1_41 = arith.constant 1 : index
    %c0_42 = arith.constant 0 : index
    %c0_43 = arith.constant 0 : index
    %42 = vector.load %arg5[%c1_41, %c0_42, %c0_43] : memref<2x4x128xf32, #tpu.memory_space<vmem>>, vector<1x4x128xf32>
    %43 = vector.shape_cast %42 : vector<1x4x128xf32> to vector<4x128xf32>
    %cst_44 = arith.constant dense<0.000000e+00> : vector<4x128xf32>
    %44 = tpu.matmul %41, %30, %cst_44 {dimension_numbers = #tpu.dot_dimension_numbers<[1], [0], [0], [1], [0, 0, 1, 1], [], []>} : vector<4x128xbf16>, vector<128x128xbf16>, vector<4x128xf32> -> vector<4x128xf32>
    %45 = arith.addf %43, %44 : vector<4x128xf32>
    %c1_45 = arith.constant 1 : index
    %c0_46 = arith.constant 0 : index
    %c0_47 = arith.constant 0 : index
    %46 = vector.load %arg5[%c1_45, %c0_46, %c0_47] : memref<2x4x128xf32, #tpu.memory_space<vmem>>, vector<1x4x128xf32>
    %47 = vector.shape_cast %46 : vector<1x4x128xf32> to vector<4x128xf32>
    %48 = vector.shape_cast %45 : vector<4x128xf32> to vector<1x4x128xf32>
    tpu.vector_store %arg5[%c1_45, %c0_46, %c0_47], %48 {strides = array<i32>} : memref<2x4x128xf32, #tpu.memory_space<vmem>>, vector<1x4x128xf32>,
    %c3_i32_48 = arith.constant 3 : i32
    %49 = arith.muli %arg1, %c3_i32_48 : i32
    %c2_i32 = arith.constant 2 : i32
    %50 = arith.addi %49, %c2_i32 : i32
    %51 = arith.index_cast %50 : i32 to index
    %c0_49 = arith.constant 0 : index
    %c0_50 = arith.constant 0 : index
    %52 = vector.load %arg3[%51, %c0_49, %c0_50] : memref<9x128x128xbf16, #tpu.memory_space<vmem>>, vector<1x128x128xbf16>
    %53 = vector.shape_cast %52 : vector<1x128x128xbf16> to vector<128x128xbf16>
    %c0_51 = arith.constant 0 : index
    %c0_52 = arith.constant 0 : index
    %c2 = arith.constant 2 : index
    %c0_53 = arith.constant 0 : index
    %54 = vector.load %arg2[%c0_51, %c0_52, %c2, %c0_53] : memref<1x2x6x128xbf16, #tpu.memory_space<vmem>>, vector<1x1x4x128xbf16>
    %55 = vector.shape_cast %54 : vector<1x1x4x128xbf16> to vector<4x128xbf16>
    %c0_54 = arith.constant 0 : index
    %c0_55 = arith.constant 0 : index
    %c0_56 = arith.constant 0 : index
    %56 = vector.load %arg5[%c0_54, %c0_55, %c0_56] : memref<2x4x128xf32, #tpu.memory_space<vmem>>, vector<1x4x128xf32>
    %57 = vector.shape_cast %56 : vector<1x4x128xf32> to vector<4x128xf32>
    %cst_57 = arith.constant dense<0.000000e+00> : vector<4x128xf32>
    %58 = tpu.matmul %55, %53, %cst_57 {dimension_numbers = #tpu.dot_dimension_numbers<[1], [0], [0], [1], [0, 0, 1, 1], [], []>} : vector<4x128xbf16>, vector<128x128xbf16>, vector<4x128xf32> -> vector<4x128xf32>
    %59 = arith.addf %57, %58 : vector<4x128xf32>
    %c0_58 = arith.constant 0 : index
    %c0_59 = arith.constant 0 : index
    %c0_60 = arith.constant 0 : index
    %60 = vector.load %arg5[%c0_58, %c0_59, %c0_60] : memref<2x4x128xf32, #tpu.memory_space<vmem>>, vector<1x4x128xf32>
    %61 = vector.shape_cast %60 : vector<1x4x128xf32> to vector<4x128xf32>
    %62 = vector.shape_cast %59 : vector<4x128xf32> to vector<1x4x128xf32>
    tpu.vector_store %arg5[%c0_58, %c0_59, %c0_60], %62 {strides = array<i32>} : memref<2x4x128xf32, #tpu.memory_space<vmem>>, vector<1x4x128xf32>,
    %c0_61 = arith.constant 0 : index
    %c1_62 = arith.constant 1 : index
    %c2_63 = arith.constant 2 : index
    %c0_64 = arith.constant 0 : index
    %63 = vector.load %arg2[%c0_61, %c1_62, %c2_63, %c0_64] : memref<1x2x6x128xbf16, #tpu.memory_space<vmem>>, vector<1x1x4x128xbf16>
    %64 = vector.shape_cast %63 : vector<1x1x4x128xbf16> to vector<4x128xbf16>
    %c1_65 = arith.constant 1 : index
    %c0_66 = arith.constant 0 : index
    %c0_67 = arith.constant 0 : index
    %65 = vector.load %arg5[%c1_65, %c0_66, %c0_67] : memref<2x4x128xf32, #tpu.memory_space<vmem>>, vector<1x4x128xf32>
    %66 = vector.shape_cast %65 : vector<1x4x128xf32> to vector<4x128xf32>
    %cst_68 = arith.constant dense<0.000000e+00> : vector<4x128xf32>
    %67 = tpu.matmul %64, %53, %cst_68 {dimension_numbers = #tpu.dot_dimension_numbers<[1], [0], [0], [1], [0, 0, 1, 1], [], []>} : vector<4x128xbf16>, vector<128x128xbf16>, vector<4x128xf32> -> vector<4x128xf32>
    %68 = arith.addf %66, %67 : vector<4x128xf32>
    %c1_69 = arith.constant 1 : index
    %c0_70 = arith.constant 0 : index
    %c0_71 = arith.constant 0 : index
    %69 = vector.load %arg5[%c1_69, %c0_70, %c0_71] : memref<2x4x128xf32, #tpu.memory_space<vmem>>, vector<1x4x128xf32>
    %70 = vector.shape_cast %69 : vector<1x4x128xf32> to vector<4x128xf32>
    %71 = vector.shape_cast %68 : vector<4x128xf32> to vector<1x4x128xf32>
    tpu.vector_store %arg5[%c1_69, %c0_70, %c0_71], %71 {strides = array<i32>} : memref<2x4x128xf32, #tpu.memory_space<vmem>>, vector<1x4x128xf32>,
    %c2_i32_72 = arith.constant 2 : i32
    %72 = arith.cmpi eq, %arg1, %c2_i32_72 : i32
    %73 = arith.extui %72 : i1 to i32
    %c0_i32_73 = arith.constant 0 : i32
    %74 = arith.cmpi ne, %73, %c0_i32_73 : i32
    scf.if %74 {
      %c0_74 = arith.constant 0 : index
      %c0_75 = arith.constant 0 : index
      %c0_76 = arith.constant 0 : index
      %75 = vector.load %arg5[%c0_74, %c0_75, %c0_76] : memref<2x4x128xf32, #tpu.memory_space<vmem>>, vector<2x4x128xf32>
      %c0_77 = arith.constant 0 : index
      %c0_78 = arith.constant 0 : index
      %c0_79 = arith.constant 0 : index
      %c0_80 = arith.constant 0 : index
      %76 = vector.load %arg4[%c0_77, %c0_78, %c0_79, %c0_80] : memref<1x2x4x128xf32, #tpu.memory_space<vmem>>, vector<1x2x4x128xf32>
      %77 = vector.shape_cast %76 : vector<1x2x4x128xf32> to vector<2x4x128xf32>
      %78 = vector.shape_cast %75 : vector<2x4x128xf32> to vector<1x2x4x128xf32>
      tpu.vector_store %arg4[%c0_77, %c0_78, %c0_79, %c0_80], %78 {strides = array<i32>} : memref<1x2x4x128xf32, #tpu.memory_space<vmem>>, vector<1x2x4x128xf32>,
    } else {
    }
    return
  }
  func.func @transform_0(%arg0: i32, %arg1: i32) -> (i32, i32, i32, i32) {
    %c1_i32 = arith.constant 1 : i32
    %0 = arith.muli %c1_i32, %arg0 : i32
    %1 = arith.addi %0, %arg1 : i32
    %c0_i32 = arith.constant 0 : i32
    %c0_i32_0 = arith.constant 0 : i32
    %c0_i32_1 = arith.constant 0 : i32
    %c0_i32_2 = arith.constant 0 : i32
    return %1, %c0_i32, %c0_i32_0, %c0_i32_1 : i32, i32, i32, i32
  }
  func.func @transform_1(%arg0: i32, %arg1: i32) -> (i32, i32, i32) {
    %c0_i32 = arith.constant 0 : i32
    %c0_i32_0 = arith.constant 0 : i32
    %c0_i32_1 = arith.constant 0 : i32
    %c0_i32_2 = arith.constant 0 : i32
    return %c0_i32, %c0_i32_0, %c0_i32_1 : i32, i32, i32
  }
  func.func @transform_2(%arg0: i32, %arg1: i32) -> (i32, i32, i32, i32) {
    %c0_i32 = arith.constant 0 : i32
    %c0_i32_0 = arith.constant 0 : i32
    %c0_i32_1 = arith.constant 0 : i32
    %c0_i32_2 = arith.constant 0 : i32
    return %arg0, %c0_i32, %c0_i32_0, %c0_i32_1 : i32, i32, i32, i32
  }
}

</mosaic_0001>

<bundles_post_ra>
// kernel: resnet_discriminator_forward.22
= control target key start
LH: loop header
LB: loop body
LE: loop exit
PB: predicated region body
PF: predicated region fallthrough
CT: control target
= control target key end

     0   :  { %v39_v5 = vlaneseq  ;;  %s379_s1 = inlined_call_operand.vmem [shape: f32[1,128], index: 1, kind: input, shape index: {}]   ;;  %s380_s2 = inlined_call_operand.vmem [shape: f32[1,128], index: 2, kind: input, shape index: {}]   ;;  %s381_s0 = inlined_call_operand.vmem [shape: f32[128,128], index: 0, kind: input, shape index: {}]   ;;  %s382_s3 = inlined_call_operand.vmem [shape: bf16[128,128], index: 3, kind: output, shape index: {}]  }
   0x1   :  { %v14_v0 = vld [vmem:[%s379_s1] sm:$0x1]  ;;  %v23_v12 = vld [vmem:[%s381_s0 + $0x8] sm:$0xff]  ;;  %v24_v13 = vld [vmem:[%s381_s0 + $0x10] sm:$0xff] }
   0x2   :  { %v16_v1 = vld [vmem:[%s380_s2] sm:$0x1]  ;;  %v15_v2 = vmul.f32 0.0078125, %v14_v0  ;;  %v40_v8 = vshrl.u32 %v39_v5, 7  ;;  %v25_v14 = vld [vmem:[%s381_s0 + $0x18] sm:$0xff]  ;;  %v27_v16 = vld [vmem:[%s381_s0 + $0x28] sm:$0xff] }
   0x3   :  { %v17_v3 = vmul.f32 0.0078125, %v16_v1  ;;  %v22_v10 = vld [vmem:[%s381_s0] sm:$0xff]  ;;  %v28_v17 = vld [vmem:[%s381_s0 + $0x30] sm:$0xff]  ;;  %v29_v18 = vld [vmem:[%s381_s0 + $0x38] sm:$0xff] }
   0x4   :  { %v18_v4 = vmul.f32 %v15_v2, %v15_v2  ;;  %v41_v9 = vsub.s32 0, %v40_v8  ;;  %v26_v15 = vld [vmem:[%s381_s0 + $0x20] sm:$0xff]  ;;  %v31_v20 = vld [vmem:[%s381_s0 + $0x48] sm:$0xff]  ;;  %v32_v22 = vld [vmem:[%s381_s0 + $0x50] sm:$0xff] }
   0x5   :  { %v30_v19 = vld [vmem:[%s381_s0 + $0x40] sm:$0xff]  ;;  %v33_v23 = vld [vmem:[%s381_s0 + $0x58] sm:$0xff]  ;;  %v35_v29 = vld [vmem:[%s381_s0 + $0x68] sm:$0xff] }
   0x6   :  { %v19_v6 = vsub.f32 %v17_v3, %v18_v4  ;;  %v292_v11 = vrot.slane %v15_v2, %v41_v9  ;;  %v34_v24 = vld [vmem:[%s381_s0 + $0x60] sm:$0xff]  ;;  %v36_v30 = vld [vmem:[%s381_s0 + $0x70] sm:$0xff]  ;;  %v37_v31 = vld [vmem:[%s381_s0 + $0x78] sm:$0xff] }
   0x8   :  { %v20_v7 = vadd.f32 1e-05, %v19_v6  ;;  %v44_v21 = vsub.f32 %v22_v10, %v292_v11  ;;  %v45_v25 = vsub.f32 %v23_v12, %v292_v11  ;;  %v46_v26 = vsub.f32 %v24_v13, %v292_v11 }
   0x9   :  { %v47_v27 = vsub.f32 %v25_v14, %v292_v11  ;;  %v48_v28 = vsub.f32 %v26_v15, %v292_v11  ;;  %v49_v33 = vsub.f32 %v27_v16, %v292_v11  ;;  %v50_v34 = vsub.f32 %v28_v17, %v292_v11 }
   0xa   :  { %261 = vrsqrt.f32 %v20_v7  ;;  %v51_v35 = vsub.f32 %v29_v18, %v292_v11  ;;  %v52_v36 = vsub.f32 %v30_v19, %v292_v11  ;;  %v53_v38 = vsub.f32 %v31_v20, %v292_v11 }
   0xb   :  { %v54_v39 = vsub.f32 %v32_v22, %v292_v11  ;;  %v55_v40 = vsub.f32 %v33_v23, %v292_v11  ;;  %v56_v41 = vsub.f32 %v34_v24, %v292_v11  ;;  %v57_v42 = vsub.f32 %v35_v29, %v292_v11 }
   0xc   :  { %v58_v43 = vsub.f32 %v36_v30, %v292_v11  ;;  %v59_v44 = vsub.f32 %v37_v31, %v292_v11 }
  0x17   :  { %v262_v32 = vpop.eup %261 }
  0x18   :  { %v64_v37 = vrot.slane %v262_v32, %v41_v9 }
  0x1a   :  { %v66_v45 = vmul.f32 %v64_v37, %v44_v21  ;;  %v67_v46 = vmul.f32 %v64_v37, %v45_v25  ;;  %v68_v47 = vmul.f32 %v64_v37, %v46_v26  ;;  %v69_v48 = vmul.f32 %v64_v37, %v47_v27 }
  0x1b   :  { %v70_v49 = vmul.f32 %v64_v37, %v48_v28  ;;  %v71_v50 = vmul.f32 %v64_v37, %v49_v33  ;;  %v72_v51 = vmul.f32 %v64_v37, %v50_v34  ;;  %v73_v52 = vmul.f32 %v64_v37, %v51_v35 }
  0x1c   :  { %v82_v53 = vmax.f32 %v66_v45, 0.0  ;;  %v83_v54 = vmax.f32 %v67_v46, 0.0  ;;  %v84_v55 = vmax.f32 %v68_v47, 0.0  ;;  %v85_v56 = vmax.f32 %v69_v48, 0.0 }
  0x1d   :  { %v86_v57 = vmax.f32 %v70_v49, 0.0  ;;  %v87_v58 = vmax.f32 %v71_v50, 0.0  ;;  %v88_v59 = vmax.f32 %v72_v51, 0.0  ;;  %v89_v60 = vmax.f32 %v73_v52, 0.0 }
  0x1e   :  { %v217_v61 = vpack.c.bf16 %v83_v54, %v82_v53  ;;  %v222_v62 = vpack.c.bf16 %v85_v56, %v84_v55  ;;  %v74_v63 = vmul.f32 %v64_v37, %v52_v36  ;;  %v75_v0 = vmul.f32 %v64_v37, %v53_v38 }
  0x1f   :  { %v227_v1 = vpack.c.bf16 %v87_v58, %v86_v57  ;;  %v232_v2 = vpack.c.bf16 %v89_v60, %v88_v59  ;;  %v76_v3 = vmul.f32 %v64_v37, %v54_v39  ;;  %v77_v4 = vmul.f32 %v64_v37, %v55_v40 }
  0x20   :  { %218 = vst [vmem:[%s382_s3] sm:$0xff] %v217_v61   ;;  %254 = vst [vmem:[%s382_s3 + $0x8] sm:$0xff] %v222_v62   ;;  %v90_v5 = vmax.f32 %v74_v63, 0.0  ;;  %v91_v6 = vmax.f32 %v75_v0, 0.0  ;;  %v78_v7 = vmul.f32 %v64_v37, %v56_v41  ;;  %v79_v8 = vmul.f32 %v64_v37, %v57_v42 }
  0x21   :  { %255 = vst [vmem:[%s382_s3 + $0x10] sm:$0xff] %v227_v1   ;;  %256 = vst [vmem:[%s382_s3 + $0x18] sm:$0xff] %v232_v2   ;;  %v92_v9 = vmax.f32 %v76_v3, 0.0  ;;  %v93_v10 = vmax.f32 %v77_v4, 0.0  ;;  %v80_v11 = vmul.f32 %v64_v37, %v58_v43  ;;  %v81_v12 = vmul.f32 %v64_v37, %v59_v44 }
  0x22   :  { %v237_v13 = vpack.c.bf16 %v91_v6, %v90_v5  ;;  %v94_v14 = vmax.f32 %v78_v7, 0.0  ;;  %v95_v15 = vmax.f32 %v79_v8, 0.0 }
  0x23   :  { %v242_v16 = vpack.c.bf16 %v93_v10, %v92_v9  ;;  %v96_v17 = vmax.f32 %v80_v11, 0.0  ;;  %v97_v18 = vmax.f32 %v81_v12, 0.0 }
  0x24   :  { %257 = vst [vmem:[%s382_s3 + $0x20] sm:$0xff] %v237_v13   ;;  %v247_v19 = vpack.c.bf16 %v95_v15, %v94_v14 }
  0x25   :  { %258 = vst [vmem:[%s382_s3 + $0x28] sm:$0xff] %v242_v16   ;;  %v252_v20 = vpack.c.bf16 %v97_v18, %v96_v17 }
  0x26   :  { %259 = vst [vmem:[%s382_s3 + $0x30] sm:$0xff] %v247_v19  }
  0x27   :  { %260 = vst [vmem:[%s382_s3 + $0x38] sm:$0xff] %v252_v20  }

// kernel: resnet_discriminator_forward.21
= control target key start
LH: loop header
LB: loop body
LE: loop exit
PB: predicated region body
PF: predicated region fallthrough
CT: control target
= control target key end

     0   :  { %v105_v0 = vmov 0.0   ;;  %s187_s1 = inlined_call_operand.vmem [shape: f32[1,128], index: 1, kind: output, shape index: {0}]   ;;  %s188_s2 = inlined_call_operand.vmem [shape: f32[1,128], index: 2, kind: output, shape index: {1}]   ;;  %s189_s0 = inlined_call_operand.vmem [shape: f32[128,128], index: 0, kind: input, shape index: {}]  }
   0x1   :  { %14 = vst [vmem:[%s187_s1] sm:$0x1] %v105_v0  ;;  %15 = vst [vmem:[%s188_s2] sm:$0x1] %v105_v0  ;;  %v16_v1 = vld [vmem:[%s189_s0] sm:$0xff]  ;;  %v17_v2 = vld [vmem:[%s189_s0 + $0x8] sm:$0xff] }
   0x2   :  { %v18_v3 = vld [vmem:[%s189_s0 + $0x10] sm:$0xff]  ;;  %v19_v4 = vld [vmem:[%s189_s0 + $0x18] sm:$0xff]  ;;  %v33_v5 = vadd.f32 %v17_v2, %v16_v1  ;;  %v57_v6 = vmul.f32 %v16_v1, %v16_v1  ;;  %v58_v7 = vmul.f32 %v17_v2, %v17_v2  ;;  %v20_v9 = vld [vmem:[%s189_s0 + $0x20] sm:$0xff] }
   0x3   :  { %v59_v8 = vmul.f32 %v18_v3, %v18_v3  ;;  %v60_v11 = vmul.f32 %v19_v4, %v19_v4  ;;  %v21_v13 = vld [vmem:[%s189_s0 + $0x28] sm:$0xff]  ;;  %v61_v15 = vmul.f32 %v20_v9, %v20_v9  ;;  %v22_v17 = vld [vmem:[%s189_s0 + $0x30] sm:$0xff]  ;;  %v23_v21 = vld [vmem:[%s189_s0 + $0x38] sm:$0xff] }
   0x4   :  { %v34_v10 = vadd.f32 %v33_v5, %v18_v3  ;;  %v73_v12 = vadd.f32 %v58_v7, %v57_v6  ;;  %v62_v19 = vmul.f32 %v21_v13, %v21_v13  ;;  %v63_v23 = vmul.f32 %v22_v17, %v22_v17  ;;  %v24_v25 = vld [vmem:[%s189_s0 + $0x40] sm:$0xff]  ;;  %v25_v29 = vld [vmem:[%s189_s0 + $0x48] sm:$0xff]  ;;  %v26_v33 = vld [vmem:[%s189_s0 + $0x50] sm:$0xff] }
   0x5   :  { %v64_v27 = vmul.f32 %v23_v21, %v23_v21  ;;  %v65_v31 = vmul.f32 %v24_v25, %v24_v25  ;;  %v66_v35 = vmul.f32 %v25_v29, %v25_v29  ;;  %v27_v37 = vld [vmem:[%s189_s0 + $0x58] sm:$0xff]  ;;  %v67_v39 = vmul.f32 %v26_v33, %v26_v33  ;;  %v28_v41 = vld [vmem:[%s189_s0 + $0x60] sm:$0xff]  ;;  %v29_v45 = vld [vmem:[%s189_s0 + $0x68] sm:$0xff] }
   0x6   :  { %v35_v14 = vadd.f32 %v34_v10, %v19_v4  ;;  %v74_v16 = vadd.f32 %v73_v12, %v59_v8  ;;  %v68_v43 = vmul.f32 %v27_v37, %v27_v37  ;;  %v69_v47 = vmul.f32 %v28_v41, %v28_v41  ;;  %v30_v49 = vld [vmem:[%s189_s0 + $0x70] sm:$0xff]  ;;  %v31_v53 = vld [vmem:[%s189_s0 + $0x78] sm:$0xff] }
   0x7   :  { %v70_v51 = vmul.f32 %v29_v45, %v29_v45  ;;  %v71_v55 = vmul.f32 %v30_v49, %v30_v49  ;;  %v72_v58 = vmul.f32 %v31_v53, %v31_v53 }
   0x8   :  { %v36_v18 = vadd.f32 %v35_v14, %v20_v9  ;;  %v75_v20 = vadd.f32 %v74_v16, %v60_v11  ;;  %v32_v7 = vld [vmem:[%s187_s1] sm:$0x1] }
   0x9   :  { %v56_v12 = vld [vmem:[%s188_s2] sm:$0x1] }
   0xa   :  { %v37_v22 = vadd.f32 %v36_v18, %v21_v13  ;;  %v76_v24 = vadd.f32 %v75_v20, %v61_v15 }
   0xc   :  { %v38_v26 = vadd.f32 %v37_v22, %v22_v17  ;;  %v77_v28 = vadd.f32 %v76_v24, %v62_v19 }
   0xe   :  { %v39_v30 = vadd.f32 %v38_v26, %v23_v21  ;;  %v78_v32 = vadd.f32 %v77_v28, %v63_v23 }
  0x10   :  { %v40_v34 = vadd.f32 %v39_v30, %v24_v25  ;;  %v79_v36 = vadd.f32 %v78_v32, %v64_v27 }
  0x12   :  { %v41_v38 = vadd.f32 %v40_v34, %v25_v29  ;;  %v80_v40 = vadd.f32 %v79_v36, %v65_v31 }
  0x14   :  { %v42_v42 = vadd.f32 %v41_v38, %v26_v33  ;;  %v81_v44 = vadd.f32 %v80_v40, %v66_v35 }
  0x16   :  { %v43_v46 = vadd.f32 %v42_v42, %v27_v37  ;;  %v82_v48 = vadd.f32 %v81_v44, %v67_v39 }
  0x18   :  { %v44_v50 = vadd.f32 %v43_v46, %v28_v41  ;;  %v83_v52 = vadd.f32 %v82_v48, %v68_v43 }
  0x1a   :  { %v45_v54 = vadd.f32 %v44_v50, %v29_v45  ;;  %v84_v56 = vadd.f32 %v83_v52, %v69_v47 }
  0x1c   :  { %v46_v57 = vadd.f32 %v45_v54, %v30_v49  ;;  %v85_v59 = vadd.f32 %v84_v56, %v70_v51 }
  0x1e   :  { %v47_v60 = vadd.f32 %v46_v57, %v31_v53  ;;  %v86_v61 = vadd.f32 %v85_v59, %v71_v55 }
  0x20   :  { %v48_v62 = vrot.slane %v47_v60, 4  ;;  %v87_v63 = vadd.f32 %v86_v61, %v72_v58 }
  0x22   :  { %v49_v0 = vadd.f32 %v48_v62, %v47_v60  ;;  %v88_v1 = vrot.slane %v87_v63, 4 }
  0x24   :  { %v50_v2 = vrot.slane %v49_v0, 2  ;;  %v89_v3 = vadd.f32 %v88_v1, %v87_v63 }
  0x26   :  { %v51_v4 = vadd.f32 %v50_v2, %v49_v0  ;;  %v90_v5 = vrot.slane %v89_v3, 2 }
  0x28   :  { %v52_v6 = vrot.slane %v51_v4, 1  ;;  %v91_v8 = vadd.f32 %v90_v5, %v89_v3 }
  0x2a   :  { %v53_v9 = vadd.f32 %v52_v6, %v51_v4  ;;  %v92_v10 = vrot.slane %v91_v8, 1 }
  0x2c   :  { %v54_v11 = vadd.f32 %v53_v9, %v32_v7  ;;  %v93_v13 = vadd.f32 %v92_v10, %v91_v8 }
  0x2e   :  { %55 = vst [vmem:[%s187_s1] sm:$0x1] %v54_v11  ;;  %v94_v14 = vadd.f32 %v93_v13, %v56_v12 }
  0x30   :  { %95 = vst [vmem:[%s188_s2] sm:$0x1] %v94_v14 }

// kernel: resnet_discriminator_forward.20
= control target key start
LH: loop header
LB: loop body
LE: loop exit
PB: predicated region body
PF: predicated region fallthrough
CT: control target
= control target key end

     0   :  { %s1148_s9 = smov 0   ;;  %s1150_s10 = smov 0   ;;  %s1306_s0 = inlined_call_operand.vmem [shape: bf16[18,4,9,128], index: 0, kind: input, shape index: {}]   ;;  %s1307_s1 = inlined_call_operand.vmem [shape: bf16[9,128,128], index: 1, kind: input, shape index: {}]   ;;  %s1308_s2 = inlined_call_operand.vmem [shape: f32[8,2,8,128], index: 2, kind: output, shape index: {}]  }
   0x1   :  { %s1152_s11 = smov 0   ;;  %s1154_s12 = smov 0  }
   0x2   :  { %s1156_s13 = smov 0  }
   0x3 LB: > { %s21_s14 = sadd.s32 1, %s1120_s11  ;;  %s24_s15 = sadd.s32 1, %s1124_s12  ;;  %s1128_s13 = sphi %s1156_s13, %s12_s13   ;;  %s1124_s12 = sphi %s1154_s12, %s1312_s12   ;;  %s1120_s11 = sphi %s1152_s11, %s1311_s11   ;;  %s1116_s10 = sphi %s1150_s10, %s1310_s10   ;;  %s1112_s9 = sphi %s1148_s9, %s1309_s9  }
   0x4   : > { %p22_p0 = scmp.ge.s32.totalorder %s21_s14, 3  ;;  %p767_p1 = scmp.ge.s32.totalorder %s1128_s13, 1 }
   0x5   : > { %p132_p2 = scmp.lt.s32.totalorder %s1128_s13, 25 }
   0x6   : > { %s1314_s14 = smov (%p22_p0, %s21_s14), 0  ;;  %s1316_s15 = smov (!%p22_p0, %s24_s15), %s1124_s12 }
   0x7   : > { %p133_p3 = pnand %p767_p1, %p132_p2  ;;  %p26_p4 = scmp.ge.s32.totalorder %s1316_s15, 8 }
   0x8   : > { %s768_s16 = sshll.u32 (!%p133_p3), %s1116_s10, 1  ;;  %p165_p5 = scmp.lt.s32.totalorder (!%p133_p3), %s1116_s10, 7 }
   0x9   : > { %s1318_s15 = smov (%p26_p4, %s1316_s15), 0  ;;  %136 = sbr.rel (%p133_p3) target bundleno = 327 (0x147), region = 28 }
   0xa   : > { %s157_s17 = sadd.s32 (!%p133_p3), %s1112_s9, %s768_s16  ;;  %p773_p7 = scmp.ne.s32.totalorder (!%p133_p3), %s1112_s9, 0 }
   0xb   : > { %p158_p6 = scmp.lt.s32.totalorder (!%p133_p3), %s157_s17, 17 }
   0xe   : > { %s1320_s10 = smov (!%p165_p5, %s1116_s10), 7  ;;  %s1322_s17 = smov (!%p158_p6, %s157_s17), 17 }
   0xf   : > { %s845_s18 = sshll.u32 %s1320_s10, 4  ;;  %s844_s19 = sshll.u32 %s1322_s17, 5 }
  0x10   : > { %s1184_s22 = scalar_lea.vmem %s1308_s2, %s845_s18  ;;  %s1189_s25 = scalar_lea.vmem %s1306_s0, %s844_s19 }
  0x11   : > { %174 = sbr.rel (%p773_p7) target bundleno = 24 (0x18), region = 32 }
  0x16   : > { %v1130_v0 = vmov 0.0  }
  0x17   : > { %175 = vst [vmem:[#allocation2] sm:$0xff] %v1130_v0  ;;  %176 = vst [vmem:[#allocation2 + $0x8] sm:$0xff] %v1130_v0 }
  0x18 PF: > { %s846_s26 = smul.u32 192, %s1112_s9  ;;  %v1131_v1 = vmov 0.0   ;;  %vm1132_vm0 = vmmov 0   ;;  %v197_v10 = vld [vmem:[%s1189_s25] sm:$0xf]  ;;  %p841_p8 = scmp.ne.s32.totalorder %s1112_s9, 2 }
  0x19   : > { %901 = vmatprep.subr.bf16.mxu0 %v1131_v1  ;;  %921 = vmatprep.subr.bf16.mxu1 %v1131_v1  ;;  %v784_v11 = vld [vmem:[%s1189_s25 + $0x8] sm:$0xf]  ;;  %v802_v20 = vld [vmem:[%s1189_s25 + $0x10] sm:$0xf]  ;;  %v811_v21 = vld [vmem:[%s1189_s25 + $0x18] sm:$0xf] }
  0x1a   : > { %s1198_s29 = scalar_lea.vmem %s1307_s1, %s846_s26  ;;  %917 = vmatprep.mubr.msk.bf16.mxu0 %vm1132_vm0, %v1131_v1  ;;  %937 = vmatprep.mubr.msk.bf16.mxu1 %vm1132_vm0, %v1131_v1  ;;  %v1088_v27 = vld [vmem:[%s1189_s25] sm:$0x1f]   ;;  %v1089_v28 = vld [vmem:[%s1189_s25 + $0x8] sm:$0x1f]  }
  0x1b   : > { %v1064_v2 = vld [vmem:[%s1198_s29 + $0x38] sm:$0xff]   ;;  %v1065_v3 = vld [vmem:[%s1198_s29 + $0x30] sm:$0xff]   ;;  %v1066_v4 = vld [vmem:[%s1198_s29 + $0x28] sm:$0xff]   ;;  %v524_v30 = vshll.u32 %v1088_v27, 16  ;;  %v630_v31 = vshll.u32 %v1089_v28, 16  ;;  %v522_v33 = vshrl.u32 %v1088_v27, 16 }
  0x1c   : > { %902 = vmatpush3.bf16.msra.mxu0 %v1064_v2  ;;  %922 = vmatpush3.bf16.msra.mxu1 %v1064_v2  ;;  %v1067_v5 = vld [vmem:[%s1198_s29 + $0x20] sm:$0xff]   ;;  %v1068_v6 = vld [vmem:[%s1198_s29 + $0x18] sm:$0xff]   ;;  %v1069_v7 = vld [vmem:[%s1198_s29 + $0x10] sm:$0xff]   ;;  %v628_v35 = vshrl.u32 %v1089_v28, 16 }
  0x1d   : > { %903 = vmatprep.subr.bf16.mxu0 %v1131_v1  ;;  %923 = vmatprep.subr.bf16.mxu1 %v1131_v1  ;;  %v1070_v8 = vld [vmem:[%s1198_s29 + $0x8] sm:$0xff]   ;;  %v1071_v9 = vld [vmem:[%s1198_s29] sm:$0xff]   ;;  %v1072_v12 = vld [vmem:[%s1198_s29 + $0x78] sm:$0xff]   ;;  %v526_v34 = vrot.slane %v524_v30, 1  ;;  %v632_v36 = vrot.slane %v630_v31, 1 }
  0x1e   : > { %v1073_v13 = vld [vmem:[%s1198_s29 + $0x70] sm:$0xff]   ;;  %v1074_v14 = vld [vmem:[%s1198_s29 + $0x68] sm:$0xff]   ;;  %v1075_v15 = vld [vmem:[%s1198_s29 + $0x60] sm:$0xff]  }
  0x1f   : > { %v1076_v16 = vld [vmem:[%s1198_s29 + $0x58] sm:$0xff]   ;;  %v1077_v17 = vld [vmem:[%s1198_s29 + $0x50] sm:$0xff]   ;;  %v1078_v18 = vld [vmem:[%s1198_s29 + $0x48] sm:$0xff]   ;;  %v527_v38 = vor.u32 %v526_v34, %v522_v33  ;;  %v633_v39 = vor.u32 %v632_v36, %v628_v35 }
  0x20   : > { %904 = vmatpush3.bf16.msra.mxu0 %v1065_v3  ;;  %924 = vmatpush3.bf16.msra.mxu1 %v1065_v3  ;;  %v1079_v19 = vld [vmem:[%s1198_s29 + $0x40] sm:$0xff]   ;;  %v1080_v22 = vld [vmem:[%s1198_s29 + $0xb8] sm:$0xff]   ;;  %v1081_v23 = vld [vmem:[%s1198_s29 + $0xb0] sm:$0xff]  }
  0x21   : > { %905 = vmatprep.subr.bf16.mxu0 %v1131_v1  ;;  %925 = vmatprep.subr.bf16.mxu1 %v1131_v1  ;;  %v1082_v24 = vld [vmem:[%s1198_s29 + $0xa8] sm:$0xff]   ;;  %v1083_v25 = vld [vmem:[%s1198_s29 + $0xa0] sm:$0xff]   ;;  %v1084_v26 = vld [vmem:[%s1198_s29 + $0x98] sm:$0xff]  }
  0x22   : > { %v1085_v29 = vld [vmem:[%s1198_s29 + $0x90] sm:$0xff]   ;;  %v1086_v32 = vld [vmem:[%s1198_s29 + $0x88] sm:$0xff]   ;;  %v1087_v37 = vld [vmem:[%s1198_s29 + $0x80] sm:$0xff]  }
  0x23   : > { %v198_v56 = vld [vmem:[#allocation2] sm:$0xff]  ;;  %v292_v57 = vld [vmem:[#allocation2 + $0x8] sm:$0xff] }
  0x24   : > { %906 = vmatpush3.bf16.msra.mxu0 %v1066_v4  ;;  %926 = vmatpush3.bf16.msra.mxu1 %v1066_v4 }
  0x25   : > { %907 = vmatprep.subr.bf16.mxu0 %v1131_v1  ;;  %927 = vmatprep.subr.bf16.mxu1 %v1131_v1 }
  0x28   : > { %908 = vmatpush3.bf16.msra.mxu0 %v1067_v5  ;;  %928 = vmatpush3.bf16.msra.mxu1 %v1067_v5 }
  0x29   : > { %909 = vmatprep.subr.bf16.mxu0 %v1131_v1  ;;  %929 = vmatprep.subr.bf16.mxu1 %v1131_v1 }
  0x2c   : > { %910 = vmatpush3.bf16.msra.mxu0 %v1068_v6  ;;  %930 = vmatpush3.bf16.msra.mxu1 %v1068_v6 }
  0x2d   : > { %911 = vmatprep.subr.bf16.mxu0 %v1131_v1  ;;  %931 = vmatprep.subr.bf16.mxu1 %v1131_v1 }
  0x30   : > { %912 = vmatpush3.bf16.msra.mxu0 %v1069_v7  ;;  %932 = vmatpush3.bf16.msra.mxu1 %v1069_v7 }
  0x31   : > { %913 = vmatprep.subr.bf16.mxu0 %v1131_v1  ;;  %933 = vmatprep.subr.bf16.mxu1 %v1131_v1 }
  0x34   : > { %914 = vmatpush3.bf16.msra.mxu0 %v1070_v8  ;;  %934 = vmatpush3.bf16.msra.mxu1 %v1070_v8 }
  0x35   : > { %915 = vmatprep.subr.bf16.mxu0 %v1131_v1  ;;  %935 = vmatprep.subr.bf16.mxu1 %v1131_v1 }
  0x38   : > { %916 = vmatpush3.bf16.msra.mxu0 %v1071_v9  ;;  %936 = vmatpush3.bf16.msra.mxu1 %v1071_v9 }
  0x39   : > { %941 = vmatprep.subr.bf16.mxu0 %v1131_v1  ;;  %961 = vmatprep.subr.bf16.mxu1 %v1131_v1 }
  0x3b   : > { %918 = vmatmul.mubr.bf16.vlgmr.msra.gmra.mxu0 %v197_v10  ;;  %938 = vmatmul.mubr.bf16.vlgmr.msra.gmra.mxu1 %v784_v11 }
  0x3c   : > { %942 = vmatpush3.bf16.msra.mxu0 %v1072_v12  ;;  %962 = vmatpush3.bf16.msra.mxu1 %v1072_v12 }
  0x3d   : > { %943 = vmatprep.subr.bf16.mxu0 %v1131_v1  ;;  %963 = vmatprep.subr.bf16.mxu1 %v1131_v1 }
  0x3e   : > { %957 = vmatprep.mubr.msk.bf16.mxu0 %vm1132_vm0, %v1131_v1  ;;  %977 = vmatprep.mubr.msk.bf16.mxu1 %vm1132_vm0, %v1131_v1 }
  0x40   : > { %944 = vmatpush3.bf16.msra.mxu0 %v1073_v13  ;;  %964 = vmatpush3.bf16.msra.mxu1 %v1073_v13 }
  0x41   : > { %945 = vmatprep.subr.bf16.mxu0 %v1131_v1  ;;  %965 = vmatprep.subr.bf16.mxu1 %v1131_v1 }
  0x44   : > { %946 = vmatpush3.bf16.msra.mxu0 %v1074_v14  ;;  %966 = vmatpush3.bf16.msra.mxu1 %v1074_v14 }
  0x45   : > { %947 = vmatprep.subr.bf16.mxu0 %v1131_v1  ;;  %967 = vmatprep.subr.bf16.mxu1 %v1131_v1 }
  0x48   : > { %948 = vmatpush3.bf16.msra.mxu0 %v1075_v15  ;;  %968 = vmatpush3.bf16.msra.mxu1 %v1075_v15 }
  0x49   : > { %949 = vmatprep.subr.bf16.mxu0 %v1131_v1  ;;  %969 = vmatprep.subr.bf16.mxu1 %v1131_v1 }
  0x4c   : > { %950 = vmatpush3.bf16.msra.mxu0 %v1076_v16  ;;  %970 = vmatpush3.bf16.msra.mxu1 %v1076_v16 }
  0x4d   : > { %951 = vmatprep.subr.bf16.mxu0 %v1131_v1  ;;  %971 = vmatprep.subr.bf16.mxu1 %v1131_v1 }
  0x50   : > { %952 = vmatpush3.bf16.msra.mxu0 %v1077_v17  ;;  %972 = vmatpush3.bf16.msra.mxu1 %v1077_v17 }
  0x51   : > { %953 = vmatprep.subr.bf16.mxu0 %v1131_v1  ;;  %973 = vmatprep.subr.bf16.mxu1 %v1131_v1 }
  0x54   : > { %954 = vmatpush3.bf16.msra.mxu0 %v1078_v18  ;;  %974 = vmatpush3.bf16.msra.mxu1 %v1078_v18 }
  0x55   : > { %955 = vmatprep.subr.bf16.mxu0 %v1131_v1  ;;  %975 = vmatprep.subr.bf16.mxu1 %v1131_v1 }
  0x58   : > { %956 = vmatpush3.bf16.msra.mxu0 %v1079_v19  ;;  %976 = vmatpush3.bf16.msra.mxu1 %v1079_v19 }
  0x59   : > { %981 = vmatprep.subr.bf16.mxu0 %v1131_v1  ;;  %1001 = vmatprep.subr.bf16.mxu1 %v1131_v1 }
  0x5b   : > { %958 = vmatmul.mubr.bf16.vlgmr.msra.gmra.mxu0 %v802_v20  ;;  %978 = vmatmul.mubr.bf16.vlgmr.msra.gmra.mxu1 %v811_v21 }
  0x5c   : > { %982 = vmatpush3.bf16.msra.mxu0 %v1080_v22  ;;  %1002 = vmatpush3.bf16.msra.mxu1 %v1080_v22 }
  0x5d   : > { %983 = vmatprep.subr.bf16.mxu0 %v1131_v1  ;;  %1003 = vmatprep.subr.bf16.mxu1 %v1131_v1 }
  0x5e   : > { %997 = vmatprep.mubr.msk.bf16.mxu0 %vm1132_vm0, %v1131_v1  ;;  %1017 = vmatprep.mubr.msk.bf16.mxu1 %vm1132_vm0, %v1131_v1 }
  0x60   : > { %984 = vmatpush3.bf16.msra.mxu0 %v1081_v23  ;;  %1004 = vmatpush3.bf16.msra.mxu1 %v1081_v23 }
  0x61   : > { %985 = vmatprep.subr.bf16.mxu0 %v1131_v1  ;;  %1005 = vmatprep.subr.bf16.mxu1 %v1131_v1 }
  0x64   : > { %986 = vmatpush3.bf16.msra.mxu0 %v1082_v24  ;;  %1006 = vmatpush3.bf16.msra.mxu1 %v1082_v24 }
  0x65   : > { %987 = vmatprep.subr.bf16.mxu0 %v1131_v1  ;;  %1007 = vmatprep.subr.bf16.mxu1 %v1131_v1 }
  0x68   : > { %988 = vmatpush3.bf16.msra.mxu0 %v1083_v25  ;;  %1008 = vmatpush3.bf16.msra.mxu1 %v1083_v25 }
  0x69   : > { %989 = vmatprep.subr.bf16.mxu0 %v1131_v1  ;;  %1009 = vmatprep.subr.bf16.mxu1 %v1131_v1 }
  0x6c   : > { %990 = vmatpush3.bf16.msra.mxu0 %v1084_v26  ;;  %1010 = vmatpush3.bf16.msra.mxu1 %v1084_v26 }
  0x6d   : > { %991 = vmatprep.subr.bf16.mxu0 %v1131_v1  ;;  %1011 = vmatprep.subr.bf16.mxu1 %v1131_v1 }
  0x70   : > { %992 = vmatpush3.bf16.msra.mxu0 %v1085_v29  ;;  %1012 = vmatpush3.bf16.msra.mxu1 %v1085_v29 }
  0x71   : > { %993 = vmatprep.subr.bf16.mxu0 %v1131_v1  ;;  %1013 = vmatprep.subr.bf16.mxu1 %v1131_v1 }
  0x74   : > { %994 = vmatpush3.bf16.msra.mxu0 %v1086_v32  ;;  %1014 = vmatpush3.bf16.msra.mxu1 %v1086_v32 }
  0x75   : > { %995 = vmatprep.subr.bf16.mxu0 %v1131_v1  ;;  %1015 = vmatprep.subr.bf16.mxu1 %v1131_v1 }
  0x78   : > { %996 = vmatpush3.bf16.msra.mxu0 %v1087_v37  ;;  %1016 = vmatpush3.bf16.msra.mxu1 %v1087_v37 }
  0x7b   : > { %998 = vmatmul.mubr.bf16.vlgmr.msra.gmra.mxu0 %v527_v38  ;;  %1018 = vmatmul.mubr.bf16.vlgmr.msra.gmra.mxu1 %v633_v39 }
  0xfb   : > { %v281_v40 = vpop.f32.mrf.mxu0  ;;  %v327_v41 = vpop.f32.mrf.mxu1 }
  0xfc   : > { %v287_v58 = vadd.f32 %v281_v40, %v198_v56  ;;  %v333_v59 = vadd.f32 %v327_v41, %v292_v57 }
  0xfd   : > { %v919_v42 = vpop.f32.mrf.mxu0  ;;  %v939_v43 = vpop.f32.mrf.mxu1 }
  0xff   : > { %v284_v44 = vpop.f32.mrf.mxu0  ;;  %v330_v45 = vpop.f32.mrf.mxu1 }
 0x101   : > { %v920_v46 = vpop.f32.mrf.mxu0  ;;  %v940_v47 = vpop.f32.mrf.mxu1 }
 0x11b   : > { %v440_v48 = vpop.f32.mrf.mxu0  ;;  %v485_v49 = vpop.f32.mrf.mxu1 }
 0x11c   : > { %v446_v60 = vadd.f32 %v440_v48, %v287_v58  ;;  %v491_v61 = vadd.f32 %v485_v49, %v333_v59 }
 0x11d   : > { %v959_v50 = vpop.f32.mrf.mxu0  ;;  %v979_v51 = vpop.f32.mrf.mxu1 }
 0x11f   : > { %v443_v52 = vpop.f32.mrf.mxu0  ;;  %v488_v53 = vpop.f32.mrf.mxu1 }
 0x121   : > { %v960_v54 = vpop.f32.mrf.mxu0  ;;  %v980_v55 = vpop.f32.mrf.mxu1 }
 0x13b   : > { %v611_v62 = vpop.f32.mrf.mxu0  ;;  %v669_v63 = vpop.f32.mrf.mxu1 }
 0x13c   : > { %v617_v0 = vadd.f32 %v611_v62, %v446_v60  ;;  %v675_v1 = vadd.f32 %v669_v63, %v491_v61 }
 0x13d   : > { %v999_v2 = vpop.f32.mrf.mxu0  ;;  %v1019_v3 = vpop.f32.mrf.mxu1  ;;  %680 = sbr.rel (%p841_p8) target bundleno = 327 (0x147), region = 36 }
 0x13e   : > { %618 = vst [vmem:[#allocation2] sm:$0xff] %v617_v0  ;;  %676 = vst [vmem:[#allocation2 + $0x8] sm:$0xff] %v675_v1 }
 0x13f   : > { %v614_v4 = vpop.f32.mrf.mxu0  ;;  %v672_v5 = vpop.f32.mrf.mxu1 }
 0x141   : > { %v1000_v6 = vpop.f32.mrf.mxu0  ;;  %v1020_v7 = vpop.f32.mrf.mxu1 }
 0x145   : > { %v681_v8 = vld [vmem:[#allocation2] sm:$0xff]  ;;  %v682_v9 = vld [vmem:[#allocation2 + $0x8] sm:$0xff] }
 0x146   : > { %683 = vst [vmem:[%s1184_s22] sm:$0xff] %v681_v8  ;;  %684 = vst [vmem:[%s1184_s22 + $0x8] sm:$0xff] %v682_v9 }
 0x147 PF: > { %s12_s13 = sadd.s32 1, %s1128_s13   ;;  %s1309_s9 = smov %s1120_s11 }
 0x148   : > { %p9_p9 = scmp.ge.s32.totalorder %s12_s13, 26   ;;  %s1310_s10 = smov %s1124_s12 }
 0x149   : > { %s1311_s11 = smov %s1314_s14  ;;  %s1312_s12 = smov %s1318_s15 }
 0x14a   :  { %11 = sbr.rel (!%p9_p9) target bundleno = 3 (0x3), region = 73 }

// kernel: resnet_discriminator_forward.19
= control target key start
LH: loop header
LB: loop body
LE: loop exit
PB: predicated region body
PF: predicated region fallthrough
CT: control target
= control target key end

     0   :  { %s2537_s9 = smov 0   ;;  %s2539_s10 = smov 0   ;;  %s2827_s0 = inlined_call_operand.vmem [shape: bf16[22,2,22,128], index: 0, kind: input, shape index: {}]   ;;  %s2828_s1 = inlined_call_operand.vmem [shape: bf16[49,128,128], index: 1, kind: input, shape index: {}]   ;;  %s2829_s2 = inlined_call_operand.vmem [shape: bf16[16,2,16,128], index: 2, kind: output, shape index: {}]  }
   0x1   :  { %s2541_s11 = smov 0   ;;  %s2543_s12 = smov 0  }
   0x2   :  { %s2545_s13 = smov 0  }
   0x3 LB: > { %s21_s14 = sadd.s32 1, %s2509_s11  ;;  %s24_s15 = sadd.s32 1, %s2513_s12  ;;  %s2517_s13 = sphi %s2545_s13, %s12_s13   ;;  %s2513_s12 = sphi %s2543_s12, %s2833_s12   ;;  %s2509_s11 = sphi %s2541_s11, %s2832_s11   ;;  %s2505_s10 = sphi %s2539_s10, %s2831_s10   ;;  %s2501_s9 = sphi %s2537_s9, %s2830_s9  }
   0x4   : > { %p22_p0 = scmp.ge.s32.totalorder %s21_s14, 7  ;;  %p1712_p1 = scmp.ge.s32.totalorder %s2517_s13, 1 }
   0x5   : > { %p128_p2 = scmp.lt.s32.totalorder %s2517_s13, 113 }
   0x6   : > { %s2835_s14 = smov (%p22_p0, %s21_s14), 0  ;;  %s2837_s15 = smov (!%p22_p0, %s24_s15), %s2513_s12 }
   0x7   : > { %p129_p3 = pnand %p1712_p1, %p128_p2  ;;  %p26_p4 = scmp.ge.s32.totalorder %s2837_s15, 16 }
   0x8   : > { %s151_s16 = sadd.s32 (!%p129_p3), %s2501_s9, %s2505_s10  ;;  %p158_p5 = scmp.lt.s32.totalorder (!%p129_p3), %s2505_s10, 15 }
   0x9   : > { %s2839_s15 = smov (%p26_p4, %s2837_s15), 0  ;;  %132 = sbr.rel (%p129_p3) target bundleno = 463 (0x1cf), region = 28 }
   0xa   : > { %p152_p6 = scmp.lt.s32.totalorder (!%p129_p3), %s151_s16, 21  ;;  %p1716_p7 = scmp.ne.s32.totalorder (!%p129_p3), %s2501_s9, 0 }
   0xe   : > { %s2841_s10 = smov (!%p158_p5, %s2505_s10), 15  ;;  %s2843_s16 = smov (!%p152_p6, %s151_s16), 21 }
   0xf   : > { %s1930_s17 = sshll.u32 %s2841_s10, 4  ;;  %s2353_s18 = smul.u32 24, %s2843_s16 }
  0x10   : > { %s2573_s21 = scalar_lea.vmem %s2829_s2, %s1930_s17  ;;  %167 = sbr.rel (%p1716_p7) target bundleno = 24 (0x18), region = 32 }
  0x11   : > { %s2578_s24 = scalar_lea.vmem %s2827_s0, %s2353_s18 }
  0x15   : > { %v2519_v0 = vmov 0.0  }
  0x16   : > { %168 = vst [vmem:[#allocation2 + $0x10] sm:$0xff] %v2519_v0  ;;  %169 = vst [vmem:[#allocation2] sm:$0xff] %v2519_v0 }
  0x17   : > { %170 = vst [vmem:[#allocation2 + $0x18] sm:$0xff] %v2519_v0  ;;  %171 = vst [vmem:[#allocation2 + $0x8] sm:$0xff] %v2519_v0 }
  0x18 PF: > { %s1931_s25 = smul.u32 448, %s2501_s9  ;;  %v2520_v1 = vmov 0.0   ;;  %vm2521_vm0 = vmmov 0   ;;  %v2405_v10 = vld [vmem:[%s2578_s24] sm:$0xff]   ;;  %v2406_v11 = vld [vmem:[%s2578_s24 + $0xc] sm:$0xff]   ;;  %vm596_vm2 = vcmask 1046528  }
  0x19   : > { %2073 = vmatprep.subr.bf16.mxu0 %v2520_v1  ;;  %2093 = vmatprep.subr.bf16.mxu1 %v2520_v1  ;;  %v2415_v16 = vld [vmem:[%s2578_s24] sm:$0xff]   ;;  %v2416_v18 = vld [vmem:[%s2578_s24 + $0x8] ss:$0 sps:$4 sm:$0x11]   ;;  %v2417_v19 = vld [vmem:[%s2578_s24 + $0xc] sm:$0xff]   ;;  %vm1010_vm4 = vcmask 1045504  }
  0x1a   : > { %s2587_s28 = scalar_lea.vmem %s2828_s1, %s1931_s25  ;;  %2089 = vmatprep.mubr.msk.bf16.mxu0 %vm2521_vm0, %v2520_v1  ;;  %2109 = vmatprep.mubr.msk.bf16.mxu1 %vm2521_vm0, %v2520_v1  ;;  %v389_v20 = vshll.u32 %v2415_v16, 16  ;;  %v2418_v21 = vld [vmem:[%s2578_s24 + $0x14] ss:$0 sps:$4 sm:$0x11]   ;;  %v508_v23 = vshll.u32 %v2417_v19, 16  ;;  %v387_v25 = vshrl.u32 %v2415_v16, 16 }
  0x1b   : > { %v2397_v2 = vld [vmem:[%s2587_s28 + $0x38] sm:$0xff]   ;;  %v2398_v3 = vld [vmem:[%s2587_s28 + $0x30] sm:$0xff]   ;;  %v2399_v4 = vld [vmem:[%s2587_s28 + $0x28] sm:$0xff]   ;;  %v394_v26 = vshll.u32 %v2416_v18, 16  ;;  %v513_v28 = vshll.u32 %v2418_v21, 16  ;;  %v506_v29 = vshrl.u32 %v2417_v19, 16 }
  0x1c   : > { %2074 = vmatpush3.bf16.msra.mxu0 %v2397_v2  ;;  %2094 = vmatpush3.bf16.msra.mxu1 %v2397_v2  ;;  %v2400_v5 = vld [vmem:[%s2587_s28 + $0x20] sm:$0xff]   ;;  %v2401_v6 = vld [vmem:[%s2587_s28 + $0x18] sm:$0xff]   ;;  %v2402_v7 = vld [vmem:[%s2587_s28 + $0x10] sm:$0xff]   ;;  %v391_v27 = vrot.slane %v389_v20, 1  ;;  %v510_v30 = vrot.slane %v508_v23, 1  ;;  %vm1424_vm6 = vcmask 1044480  }
  0x1d   : > { %2075 = vmatprep.subr.bf16.mxu0 %v2520_v1  ;;  %2095 = vmatprep.subr.bf16.mxu1 %v2520_v1  ;;  %v2403_v8 = vld [vmem:[%s2587_s28 + $0x8] sm:$0xff]   ;;  %v2404_v9 = vld [vmem:[%s2587_s28] sm:$0xff]   ;;  %v2407_v12 = vld [vmem:[%s2587_s28 + $0x78] sm:$0xff]   ;;  %v396_v32 = vrot.slane %v394_v26, 1  ;;  %v515_v33 = vrot.slane %v513_v28, 1  ;;  %p1923_p8 = scmp.ne.s32.totalorder %s2501_s9, 6 }
  0x1e   : > { %v2408_v13 = vld [vmem:[%s2587_s28 + $0x70] sm:$0xff]   ;;  %v2409_v14 = vld [vmem:[%s2587_s28 + $0x68] sm:$0xff]   ;;  %v2410_v15 = vld [vmem:[%s2587_s28 + $0x60] sm:$0xff]   ;;  %v392_v34 = vor.u32 %v391_v27, %v387_v25  ;;  %v511_v35 = vor.u32 %v510_v30, %v506_v29  ;;  %vm385_vm1 = vsmask.f32 7424 }
  0x1f   : > { %v2411_v17 = vld [vmem:[%s2587_s28 + $0x58] sm:$0xff]   ;;  %v2412_v22 = vld [vmem:[%s2587_s28 + $0x50] sm:$0xff]   ;;  %v2413_v24 = vld [vmem:[%s2587_s28 + $0x48] sm:$0xff]   ;;  %vm789_vm3 = vsmask.f32 6400 }
  0x20   : > { %2076 = vmatpush3.bf16.msra.mxu0 %v2398_v3  ;;  %2096 = vmatpush3.bf16.msra.mxu1 %v2398_v3  ;;  %v2414_v31 = vld [vmem:[%s2587_s28 + $0x40] sm:$0xff]   ;;  %v397_v36 = vsel %vm385_vm1, %v392_v34, %v396_v32  ;;  %v516_v37 = vsel %vm385_vm1, %v511_v35, %v515_v33  ;;  %v2419_v38 = vld [vmem:[%s2587_s28 + $0xb8] sm:$0xff]   ;;  %v2420_v39 = vld [vmem:[%s2587_s28 + $0xb0] sm:$0xff]   ;;  %vm1203_vm5 = vsmask.f32 5376 }
  0x21   : > { %2077 = vmatprep.subr.bf16.mxu0 %v2520_v1  ;;  %2097 = vmatprep.subr.bf16.mxu1 %v2520_v1  ;;  %v2421_v40 = vld [vmem:[%s2587_s28 + $0xa8] sm:$0xff]   ;;  %v2422_v41 = vld [vmem:[%s2587_s28 + $0xa0] sm:$0xff]   ;;  %v2423_v42 = vld [vmem:[%s2587_s28 + $0x98] sm:$0xff]  }
  0x22   : > { %v2424_v43 = vld [vmem:[%s2587_s28 + $0x90] sm:$0xff]   ;;  %v2427_v44 = vld [vmem:[%s2578_s24] sm:$0xfe]   ;;  %v2428_v45 = vld [vmem:[%s2578_s24 + $0x8] ss:$0 sps:$4 sm:$0x11]  }
  0x23   : > { %v2425_v46 = vld [vmem:[%s2587_s28 + $0x88] sm:$0xff]   ;;  %v2430_v48 = vld [vmem:[%s2578_s24 + $0x14] ss:$0 sps:$4 sm:$0x11]   ;;  %v2426_v49 = vld [vmem:[%s2587_s28 + $0x80] sm:$0xff]   ;;  %v597_v50 = vrot.slane %v2427_v44, 1 }
  0x24   : > { %2078 = vmatpush3.bf16.msra.mxu0 %v2399_v4  ;;  %2098 = vmatpush3.bf16.msra.mxu1 %v2399_v4  ;;  %v2429_v47 = vld [vmem:[%s2578_s24 + $0xc] sm:$0xfe]   ;;  %v598_v51 = vrot.slane %v2428_v45, 1  ;;  %v708_v53 = vrot.slane %v2430_v48, 1  ;;  %v2431_v56 = vld [vmem:[%s2587_s28 + $0xf8] sm:$0xff]   ;;  %v2434_v59 = vld [vmem:[%s2587_s28 + $0xe0] sm:$0xff]  }
  0x25   : > { %2079 = vmatprep.subr.bf16.mxu0 %v2520_v1  ;;  %2099 = vmatprep.subr.bf16.mxu1 %v2520_v1  ;;  %v707_v52 = vrot.slane %v2429_v47, 1  ;;  %v2432_v57 = vld [vmem:[%s2587_s28 + $0xf0] sm:$0xff]   ;;  %v2433_v58 = vld [vmem:[%s2587_s28 + $0xe8] sm:$0xff]   ;;  %v2439_v60 = vld [vmem:[%s2578_s24] sm:$0xfe]  }
  0x26   : > { %v599_v54 = vsel %vm596_vm2, %v597_v50, %v598_v51  ;;  %v2440_v61 = vld [vmem:[%s2578_s24 + $0x8] ss:$0 sps:$4 sm:$0x33]   ;;  %v2435_v62 = vld [vmem:[%s2587_s28 + $0xd8] sm:$0xff]   ;;  %v2441_v63 = vld [vmem:[%s2578_s24 + $0xc] sm:$0xfe]  }
  0x27   : > { %v709_v55 = vsel %vm596_vm2, %v707_v52, %v708_v53  ;;  %v2442_v0 = vld [vmem:[%s2578_s24 + $0x14] ss:$0 sps:$4 sm:$0x33]   ;;  %v791_v2 = vshrl.u32 %v2439_v60, 16  ;;  %v794_v3 = vshll.u32 %v2439_v60, 16  ;;  %v799_v4 = vshrl.u32 %v2440_v61, 16 }
  0x28   : > { %2080 = vmatpush3.bf16.msra.mxu0 %v2400_v5  ;;  %2100 = vmatpush3.bf16.msra.mxu1 %v2400_v5  ;;  %v802_v5 = vshll.u32 %v2440_v61, 16  ;;  %v2438_v21 = vld [vmem:[%s2587_s28 + $0xc0] sm:$0xff]   ;;  %v2443_v27 = vld [vmem:[%s2587_s28 + $0x138] sm:$0xff]   ;;  %v2444_v28 = vld [vmem:[%s2587_s28 + $0x130] sm:$0xff]  }
  0x29   : > { %2081 = vmatprep.subr.bf16.mxu0 %v2520_v1  ;;  %2101 = vmatprep.subr.bf16.mxu1 %v2520_v1  ;;  %v2445_v29 = vld [vmem:[%s2587_s28 + $0x128] sm:$0xff]   ;;  %v2446_v30 = vld [vmem:[%s2587_s28 + $0x120] sm:$0xff]   ;;  %v2448_v32 = vld [vmem:[%s2587_s28 + $0x110] sm:$0xff]  }
  0x2a   : > { %v2451_v33 = vld [vmem:[%s2578_s24] sm:$0xfc]   ;;  %v2452_v34 = vld [vmem:[%s2578_s24 + $0x8] ss:$0 sps:$4 sm:$0x33]   ;;  %v2455_v45 = vld [vmem:[%s2587_s28 + $0x178] sm:$0xff]  }
  0x2b   : > { %v2449_v35 = vld [vmem:[%s2587_s28 + $0x108] sm:$0xff]   ;;  %v2458_v48 = vld [vmem:[%s2587_s28 + $0x160] sm:$0xff]   ;;  %v2459_v51 = vld [vmem:[%s2587_s28 + $0x158] sm:$0xff]  }
  0x2c   : > { %2082 = vmatpush3.bf16.msra.mxu0 %v2401_v6  ;;  %2102 = vmatpush3.bf16.msra.mxu1 %v2401_v6  ;;  %v2436_v6 = vld [vmem:[%s2587_s28 + $0xd0] sm:$0xff]   ;;  %v2457_v47 = vld [vmem:[%s2587_s28 + $0x168] sm:$0xff]  }
  0x2d   : > { %2083 = vmatprep.subr.bf16.mxu0 %v2520_v1  ;;  %2103 = vmatprep.subr.bf16.mxu1 %v2520_v1  ;;  %v2464_v50 = vld [vmem:[%s2578_s24 + $0x8] ss:$0 sps:$4 sm:$0x77]   ;;  %v2465_v52 = vld [vmem:[%s2578_s24 + $0xc] sm:$0xfc]  }
  0x2e   : > { %v2466_v53 = vld [vmem:[%s2578_s24 + $0x14] ss:$0 sps:$4 sm:$0x77]   ;;  %v1332_v60 = vshll.u32 %v2465_v52, 16 }
  0x2f   : > { %v1337_v61 = vshrl.u32 %v2466_v53, 16 }
  0x30   : > { %2084 = vmatpush3.bf16.msra.mxu0 %v2402_v7  ;;  %2104 = vmatpush3.bf16.msra.mxu1 %v2402_v7  ;;  %v915_v7 = vshrl.u32 %v2441_v63, 16 }
  0x31   : > { %2085 = vmatprep.subr.bf16.mxu0 %v2520_v1  ;;  %2105 = vmatprep.subr.bf16.mxu1 %v2520_v1 }
  0x32   : > { %v917_v16 = vrot.slane %v915_v7, 1  ;;  %v1339_v7 = vrot.slane %v1337_v61, 2 }
  0x34   : > { %2086 = vmatpush3.bf16.msra.mxu0 %v2403_v8  ;;  %2106 = vmatpush3.bf16.msra.mxu1 %v2403_v8  ;;  %v918_v8 = vshll.u32 %v2441_v63, 16 }
  0x35   : > { %2087 = vmatprep.subr.bf16.mxu0 %v2520_v1  ;;  %2107 = vmatprep.subr.bf16.mxu1 %v2520_v1 }
  0x38   : > { %2088 = vmatpush3.bf16.msra.mxu0 %v2404_v9  ;;  %2108 = vmatpush3.bf16.msra.mxu1 %v2404_v9  ;;  %v923_v9 = vshrl.u32 %v2442_v0, 16 }
  0x39   : > { %2113 = vmatprep.subr.bf16.mxu0 %v2520_v1  ;;  %2133 = vmatprep.subr.bf16.mxu1 %v2520_v1 }
  0x3a   : > { %v925_v18 = vrot.slane %v923_v9, 1 }
  0x3b   : > { %2090 = vmatmul.mubr.bf16.vlgmr.msra.gmra.mxu0 %v2405_v10  ;;  %2110 = vmatmul.mubr.bf16.vlgmr.msra.gmra.mxu1 %v2406_v11  ;;  %v926_v10 = vshll.u32 %v2442_v0, 16  ;;  %v793_v11 = vrot.slane %v791_v2, 1 }
  0x3c   : > { %2114 = vmatpush3.bf16.msra.mxu0 %v2407_v12  ;;  %2134 = vmatpush3.bf16.msra.mxu1 %v2407_v12  ;;  %v796_v12 = vrot.slane %v794_v3, 2 }
  0x3d   : > { %2115 = vmatprep.subr.bf16.mxu0 %v2520_v1  ;;  %2135 = vmatprep.subr.bf16.mxu1 %v2520_v1  ;;  %v928_v19 = vrot.slane %v926_v10, 2  ;;  %v2462_v10 = vld [vmem:[%s2587_s28 + $0x140] sm:$0xff]  }
  0x3e   : > { %2129 = vmatprep.mubr.msk.bf16.mxu0 %vm2521_vm0, %v2520_v1  ;;  %2149 = vmatprep.mubr.msk.bf16.mxu1 %vm2521_vm0, %v2520_v1  ;;  %v797_v20 = vor.u32 %v796_v12, %v793_v11 }
  0x40   : > { %2116 = vmatpush3.bf16.msra.mxu0 %v2408_v13  ;;  %2136 = vmatpush3.bf16.msra.mxu1 %v2408_v13  ;;  %v801_v13 = vrot.slane %v799_v4, 1  ;;  %v2461_v4 = vld [vmem:[%s2587_s28 + $0x148] sm:$0xff]  }
  0x41   : > { %2117 = vmatprep.subr.bf16.mxu0 %v2520_v1  ;;  %2137 = vmatprep.subr.bf16.mxu1 %v2520_v1 }
  0x44   : > { %2118 = vmatpush3.bf16.msra.mxu0 %v2409_v14  ;;  %2138 = vmatpush3.bf16.msra.mxu1 %v2409_v14  ;;  %v804_v14 = vrot.slane %v802_v5, 2 }
  0x45   : > { %2119 = vmatprep.subr.bf16.mxu0 %v2520_v1  ;;  %2139 = vmatprep.subr.bf16.mxu1 %v2520_v1 }
  0x48   : > { %2120 = vmatpush3.bf16.msra.mxu0 %v2410_v15  ;;  %2140 = vmatpush3.bf16.msra.mxu1 %v2410_v15  ;;  %v2437_v15 = vld [vmem:[%s2587_s28 + $0xc8] sm:$0xff]  }
  0x49   : > { %2121 = vmatprep.subr.bf16.mxu0 %v2520_v1  ;;  %2141 = vmatprep.subr.bf16.mxu1 %v2520_v1 }
  0x4c   : > { %2122 = vmatpush3.bf16.msra.mxu0 %v2411_v17  ;;  %2142 = vmatpush3.bf16.msra.mxu1 %v2411_v17  ;;  %v920_v17 = vrot.slane %v918_v8, 2 }
  0x4d   : > { %2123 = vmatprep.subr.bf16.mxu0 %v2520_v1  ;;  %2143 = vmatprep.subr.bf16.mxu1 %v2520_v1 }
  0x4e   : > { %v921_v23 = vor.u32 %v920_v17, %v917_v16  ;;  %v2467_v16 = vld [vmem:[%s2587_s28 + $0x1b8] sm:$0xff]   ;;  %v2468_v17 = vld [vmem:[%s2587_s28 + $0x1b0] sm:$0xff]  }
  0x50   : > { %2124 = vmatpush3.bf16.msra.mxu0 %v2412_v22  ;;  %2144 = vmatpush3.bf16.msra.mxu1 %v2412_v22  ;;  %v805_v22 = vor.u32 %v804_v14, %v801_v13 }
  0x51   : > { %2125 = vmatprep.subr.bf16.mxu0 %v2520_v1  ;;  %2145 = vmatprep.subr.bf16.mxu1 %v2520_v1 }
  0x52   : > { %v806_v25 = vsel %vm789_vm3, %v797_v20, %v805_v22  ;;  %v2471_v20 = vld [vmem:[%s2587_s28 + $0x198] sm:$0xff]   ;;  %v2475_v22 = vld [vmem:[%s2578_s24] sm:$0xf8]  }
  0x54   : > { %2126 = vmatpush3.bf16.msra.mxu0 %v2413_v24  ;;  %2146 = vmatpush3.bf16.msra.mxu1 %v2413_v24  ;;  %v929_v24 = vor.u32 %v928_v19, %v925_v18  ;;  %v2469_v18 = vld [vmem:[%s2587_s28 + $0x1a8] sm:$0xff]   ;;  %v2470_v19 = vld [vmem:[%s2587_s28 + $0x1a0] sm:$0xff]  }
  0x55   : > { %2127 = vmatprep.subr.bf16.mxu0 %v2520_v1  ;;  %2147 = vmatprep.subr.bf16.mxu1 %v2520_v1 }
  0x56   : > { %v930_v26 = vsel %vm789_vm3, %v921_v23, %v929_v24  ;;  %v2476_v23 = vld [vmem:[%s2578_s24 + $0x8] ss:$0 sps:$4 sm:$0x77]  }
  0x57   : > { %v2473_v24 = vld [vmem:[%s2587_s28 + $0x188] sm:$0xff]  }
  0x58   : > { %2128 = vmatpush3.bf16.msra.mxu0 %v2414_v31  ;;  %2148 = vmatpush3.bf16.msra.mxu1 %v2414_v31  ;;  %v2447_v31 = vld [vmem:[%s2587_s28 + $0x118] sm:$0xff]  }
  0x59   : > { %2153 = vmatprep.subr.bf16.mxu0 %v2520_v1  ;;  %2173 = vmatprep.subr.bf16.mxu1 %v2520_v1 }
  0x5b   : > { %2130 = vmatmul.mubr.bf16.vlgmr.msra.gmra.mxu0 %v397_v36  ;;  %2150 = vmatmul.mubr.bf16.vlgmr.msra.gmra.mxu1 %v516_v37  ;;  %v2453_v36 = vld [vmem:[%s2578_s24 + $0xc] sm:$0xfc]   ;;  %v2454_v37 = vld [vmem:[%s2578_s24 + $0x14] ss:$0 sps:$4 sm:$0x33]  }
  0x5c   : > { %2154 = vmatpush3.bf16.msra.mxu0 %v2419_v38  ;;  %2174 = vmatpush3.bf16.msra.mxu1 %v2419_v38  ;;  %v2450_v38 = vld [vmem:[%s2587_s28 + $0x100] sm:$0xff]  }
  0x5d   : > { %2155 = vmatprep.subr.bf16.mxu0 %v2520_v1  ;;  %2175 = vmatprep.subr.bf16.mxu1 %v2520_v1 }
  0x5e   : > { %2169 = vmatprep.mubr.msk.bf16.mxu0 %vm2521_vm0, %v2520_v1  ;;  %2189 = vmatprep.mubr.msk.bf16.mxu1 %vm2521_vm0, %v2520_v1 }
  0x60   : > { %2156 = vmatpush3.bf16.msra.mxu0 %v2420_v39  ;;  %2176 = vmatpush3.bf16.msra.mxu1 %v2420_v39  ;;  %v1011_v39 = vrot.slane %v2451_v33, 2 }
  0x61   : > { %2157 = vmatprep.subr.bf16.mxu0 %v2520_v1  ;;  %2177 = vmatprep.subr.bf16.mxu1 %v2520_v1 }
  0x64   : > { %2158 = vmatpush3.bf16.msra.mxu0 %v2421_v40  ;;  %2178 = vmatpush3.bf16.msra.mxu1 %v2421_v40  ;;  %v1012_v40 = vrot.slane %v2452_v34, 2 }
  0x65   : > { %2159 = vmatprep.subr.bf16.mxu0 %v2520_v1  ;;  %2179 = vmatprep.subr.bf16.mxu1 %v2520_v1 }
  0x68   : > { %2160 = vmatpush3.bf16.msra.mxu0 %v2422_v41  ;;  %2180 = vmatpush3.bf16.msra.mxu1 %v2422_v41  ;;  %v1121_v41 = vrot.slane %v2453_v36, 2 }
  0x69   : > { %2161 = vmatprep.subr.bf16.mxu0 %v2520_v1  ;;  %2181 = vmatprep.subr.bf16.mxu1 %v2520_v1 }
  0x6c   : > { %2162 = vmatpush3.bf16.msra.mxu0 %v2423_v42  ;;  %2182 = vmatpush3.bf16.msra.mxu1 %v2423_v42  ;;  %v1122_v42 = vrot.slane %v2454_v37, 2 }
  0x6d   : > { %2163 = vmatprep.subr.bf16.mxu0 %v2520_v1  ;;  %2183 = vmatprep.subr.bf16.mxu1 %v2520_v1 }
  0x6e   : > { %v1123_v44 = vsel %vm1010_vm4, %v1121_v41, %v1122_v42  ;;  %v194_v42 = vld [vmem:[#allocation2 + $0x10] sm:$0xff] }
  0x70   : > { %2164 = vmatpush3.bf16.msra.mxu0 %v2424_v43  ;;  %2184 = vmatpush3.bf16.msra.mxu1 %v2424_v43  ;;  %v1013_v43 = vsel %vm1010_vm4, %v1011_v39, %v1012_v40 }
  0x71   : > { %2165 = vmatprep.subr.bf16.mxu0 %v2520_v1  ;;  %2185 = vmatprep.subr.bf16.mxu1 %v2520_v1 }
  0x74   : > { %2166 = vmatpush3.bf16.msra.mxu0 %v2425_v46  ;;  %2186 = vmatpush3.bf16.msra.mxu1 %v2425_v46  ;;  %v2456_v46 = vld [vmem:[%s2587_s28 + $0x170] sm:$0xff]  }
  0x75   : > { %2167 = vmatprep.subr.bf16.mxu0 %v2520_v1  ;;  %2187 = vmatprep.subr.bf16.mxu1 %v2520_v1 }
  0x78   : > { %2168 = vmatpush3.bf16.msra.mxu0 %v2426_v49  ;;  %2188 = vmatpush3.bf16.msra.mxu1 %v2426_v49  ;;  %v2463_v49 = vld [vmem:[%s2578_s24] sm:$0xfc]  }
  0x79   : > { %2193 = vmatprep.subr.bf16.mxu0 %v2520_v1  ;;  %2213 = vmatprep.subr.bf16.mxu1 %v2520_v1 }
  0x7b   : > { %2170 = vmatmul.mubr.bf16.vlgmr.msra.gmra.mxu0 %v599_v54  ;;  %2190 = vmatmul.mubr.bf16.vlgmr.msra.gmra.mxu1 %v709_v55  ;;  %v1205_v54 = vshrl.u32 %v2463_v49, 16  ;;  %v1208_v55 = vshll.u32 %v2463_v49, 16 }
  0x7c   : > { %2194 = vmatpush3.bf16.msra.mxu0 %v2431_v56  ;;  %2214 = vmatpush3.bf16.msra.mxu1 %v2431_v56  ;;  %v1213_v56 = vshrl.u32 %v2464_v50, 16 }
  0x7d   : > { %2195 = vmatprep.subr.bf16.mxu0 %v2520_v1  ;;  %2215 = vmatprep.subr.bf16.mxu1 %v2520_v1  ;;  %v1207_v63 = vrot.slane %v1205_v54, 2  ;;  %v1210_v0 = vrot.slane %v1208_v55, 3 }
  0x7e   : > { %2209 = vmatprep.mubr.msk.bf16.mxu0 %vm2521_vm0, %v2520_v1  ;;  %2229 = vmatprep.mubr.msk.bf16.mxu1 %vm2521_vm0, %v2520_v1  ;;  %v1215_v2 = vrot.slane %v1213_v56, 2 }
  0x7f   : > { %v1211_v9 = vor.u32 %v1210_v0, %v1207_v63 }
  0x80   : > { %2196 = vmatpush3.bf16.msra.mxu0 %v2432_v57  ;;  %2216 = vmatpush3.bf16.msra.mxu1 %v2432_v57  ;;  %v1216_v57 = vshll.u32 %v2464_v50, 16 }
  0x81   : > { %2197 = vmatprep.subr.bf16.mxu0 %v2520_v1  ;;  %2217 = vmatprep.subr.bf16.mxu1 %v2520_v1 }
  0x82   : > { %v1218_v3 = vrot.slane %v1216_v57, 3 }
  0x84   : > { %2198 = vmatpush3.bf16.msra.mxu0 %v2433_v58  ;;  %2218 = vmatpush3.bf16.msra.mxu1 %v2433_v58  ;;  %v2460_v58 = vld [vmem:[%s2587_s28 + $0x150] sm:$0xff]   ;;  %v1219_v11 = vor.u32 %v1218_v3, %v1215_v2 }
  0x85   : > { %2199 = vmatprep.subr.bf16.mxu0 %v2520_v1  ;;  %2219 = vmatprep.subr.bf16.mxu1 %v2520_v1 }
  0x86   : > { %v1220_v14 = vsel %vm1203_vm5, %v1211_v9, %v1219_v11 }
  0x88   : > { %2200 = vmatpush3.bf16.msra.mxu0 %v2434_v59  ;;  %2220 = vmatpush3.bf16.msra.mxu1 %v2434_v59  ;;  %v1329_v59 = vshrl.u32 %v2465_v52, 16 }
  0x89   : > { %2201 = vmatprep.subr.bf16.mxu0 %v2520_v1  ;;  %2221 = vmatprep.subr.bf16.mxu1 %v2520_v1 }
  0x8a   : > { %v1331_v5 = vrot.slane %v1329_v59, 2 }
  0x8c   : > { %2202 = vmatpush3.bf16.msra.mxu0 %v2435_v62  ;;  %2222 = vmatpush3.bf16.msra.mxu1 %v2435_v62  ;;  %v1340_v62 = vshll.u32 %v2466_v53, 16 }
  0x8d   : > { %2203 = vmatprep.subr.bf16.mxu0 %v2520_v1  ;;  %2223 = vmatprep.subr.bf16.mxu1 %v2520_v1 }
  0x8e   : > { %v1342_v8 = vrot.slane %v1340_v62, 3 }
  0x90   : > { %2204 = vmatpush3.bf16.msra.mxu0 %v2436_v6  ;;  %2224 = vmatpush3.bf16.msra.mxu1 %v2436_v6  ;;  %v1334_v6 = vrot.slane %v1332_v60, 3  ;;  %v1343_v13 = vor.u32 %v1342_v8, %v1339_v7 }
  0x91   : > { %2205 = vmatprep.subr.bf16.mxu0 %v2520_v1  ;;  %2225 = vmatprep.subr.bf16.mxu1 %v2520_v1 }
  0x92   : > { %v1335_v12 = vor.u32 %v1334_v6, %v1331_v5 }
  0x94   : > { %2206 = vmatpush3.bf16.msra.mxu0 %v2437_v15  ;;  %2226 = vmatpush3.bf16.msra.mxu1 %v2437_v15  ;;  %v1344_v15 = vsel %vm1203_vm5, %v1335_v12, %v1343_v13 }
  0x95   : > { %2207 = vmatprep.subr.bf16.mxu0 %v2520_v1  ;;  %2227 = vmatprep.subr.bf16.mxu1 %v2520_v1 }
  0x98   : > { %2208 = vmatpush3.bf16.msra.mxu0 %v2438_v21  ;;  %2228 = vmatpush3.bf16.msra.mxu1 %v2438_v21  ;;  %v2472_v21 = vld [vmem:[%s2587_s28 + $0x190] sm:$0xff]  }
  0x99   : > { %2233 = vmatprep.subr.bf16.mxu0 %v2520_v1  ;;  %2253 = vmatprep.subr.bf16.mxu1 %v2520_v1 }
  0x9b   : > { %2210 = vmatmul.mubr.bf16.vlgmr.msra.gmra.mxu0 %v806_v25  ;;  %2230 = vmatmul.mubr.bf16.vlgmr.msra.gmra.mxu1 %v930_v26  ;;  %v2477_v25 = vld [vmem:[%s2578_s24 + $0xc] sm:$0xf8]   ;;  %v2478_v26 = vld [vmem:[%s2578_s24 + $0x14] ss:$0 sps:$4 sm:$0x77]  }
  0x9c   : > { %2234 = vmatpush3.bf16.msra.mxu0 %v2443_v27  ;;  %2254 = vmatpush3.bf16.msra.mxu1 %v2443_v27  ;;  %v2474_v27 = vld [vmem:[%s2587_s28 + $0x180] sm:$0xff]  }
  0x9d   : > { %2235 = vmatprep.subr.bf16.mxu0 %v2520_v1  ;;  %2255 = vmatprep.subr.bf16.mxu1 %v2520_v1 }
  0x9e   : > { %2249 = vmatprep.mubr.msk.bf16.mxu0 %vm2521_vm0, %v2520_v1  ;;  %2269 = vmatprep.mubr.msk.bf16.mxu1 %vm2521_vm0, %v2520_v1 }
  0xa0   : > { %2236 = vmatpush3.bf16.msra.mxu0 %v2444_v28  ;;  %2256 = vmatpush3.bf16.msra.mxu1 %v2444_v28  ;;  %v1425_v28 = vrot.slane %v2475_v22, 3 }
  0xa1   : > { %2237 = vmatprep.subr.bf16.mxu0 %v2520_v1  ;;  %2257 = vmatprep.subr.bf16.mxu1 %v2520_v1 }
  0xa4   : > { %2238 = vmatpush3.bf16.msra.mxu0 %v2445_v29  ;;  %2258 = vmatpush3.bf16.msra.mxu1 %v2445_v29  ;;  %v1426_v29 = vrot.slane %v2476_v23, 3 }
  0xa5   : > { %2239 = vmatprep.subr.bf16.mxu0 %v2520_v1  ;;  %2259 = vmatprep.subr.bf16.mxu1 %v2520_v1 }
  0xa8   : > { %2240 = vmatpush3.bf16.msra.mxu0 %v2446_v30  ;;  %2260 = vmatpush3.bf16.msra.mxu1 %v2446_v30  ;;  %v1535_v30 = vrot.slane %v2477_v25, 3 }
  0xa9   : > { %2241 = vmatprep.subr.bf16.mxu0 %v2520_v1  ;;  %2261 = vmatprep.subr.bf16.mxu1 %v2520_v1 }
  0xac   : > { %2242 = vmatpush3.bf16.msra.mxu0 %v2447_v31  ;;  %2262 = vmatpush3.bf16.msra.mxu1 %v2447_v31  ;;  %v1536_v31 = vrot.slane %v2478_v26, 3 }
  0xad   : > { %2243 = vmatprep.subr.bf16.mxu0 %v2520_v1  ;;  %2263 = vmatprep.subr.bf16.mxu1 %v2520_v1 }
  0xae   : > { %v1537_v33 = vsel %vm1424_vm6, %v1535_v30, %v1536_v31 }
  0xb0   : > { %2244 = vmatpush3.bf16.msra.mxu0 %v2448_v32  ;;  %2264 = vmatpush3.bf16.msra.mxu1 %v2448_v32  ;;  %v1427_v32 = vsel %vm1424_vm6, %v1425_v28, %v1426_v29 }
  0xb1   : > { %2245 = vmatprep.subr.bf16.mxu0 %v2520_v1  ;;  %2265 = vmatprep.subr.bf16.mxu1 %v2520_v1 }
  0xb4   : > { %2246 = vmatpush3.bf16.msra.mxu0 %v2449_v35  ;;  %2266 = vmatpush3.bf16.msra.mxu1 %v2449_v35 }
  0xb5   : > { %2247 = vmatprep.subr.bf16.mxu0 %v2520_v1  ;;  %2267 = vmatprep.subr.bf16.mxu1 %v2520_v1 }
  0xb8   : > { %2248 = vmatpush3.bf16.msra.mxu0 %v2450_v38  ;;  %2268 = vmatpush3.bf16.msra.mxu1 %v2450_v38 }
  0xb9   : > { %2273 = vmatprep.subr.bf16.mxu0 %v2520_v1  ;;  %2293 = vmatprep.subr.bf16.mxu1 %v2520_v1 }
  0xbb   : > { %2250 = vmatmul.mubr.bf16.vlgmr.msra.gmra.mxu0 %v1013_v43  ;;  %2270 = vmatmul.mubr.bf16.vlgmr.msra.gmra.mxu1 %v1123_v44  ;;  %v299_v43 = vld [vmem:[#allocation2 + $0x18] sm:$0xff] }
  0xbc   : > { %2274 = vmatpush3.bf16.msra.mxu0 %v2455_v45  ;;  %2294 = vmatpush3.bf16.msra.mxu1 %v2455_v45 }
  0xbd   : > { %2275 = vmatprep.subr.bf16.mxu0 %v2520_v1  ;;  %2295 = vmatprep.subr.bf16.mxu1 %v2520_v1 }
  0xbe   : > { %2289 = vmatprep.mubr.msk.bf16.mxu0 %vm2521_vm0, %v2520_v1  ;;  %2309 = vmatprep.mubr.msk.bf16.mxu1 %vm2521_vm0, %v2520_v1 }
  0xc0   : > { %2276 = vmatpush3.bf16.msra.mxu0 %v2456_v46  ;;  %2296 = vmatpush3.bf16.msra.mxu1 %v2456_v46  ;;  %v300_v46 = vld [vmem:[#allocation2 + $0x8] sm:$0xff] }
  0xc1   : > { %2277 = vmatprep.subr.bf16.mxu0 %v2520_v1  ;;  %2297 = vmatprep.subr.bf16.mxu1 %v2520_v1 }
  0xc4   : > { %2278 = vmatpush3.bf16.msra.mxu0 %v2457_v47  ;;  %2298 = vmatpush3.bf16.msra.mxu1 %v2457_v47 }
  0xc5   : > { %2279 = vmatprep.subr.bf16.mxu0 %v2520_v1  ;;  %2299 = vmatprep.subr.bf16.mxu1 %v2520_v1 }
  0xc8   : > { %2280 = vmatpush3.bf16.msra.mxu0 %v2458_v48  ;;  %2300 = vmatpush3.bf16.msra.mxu1 %v2458_v48 }
  0xc9   : > { %2281 = vmatprep.subr.bf16.mxu0 %v2520_v1  ;;  %2301 = vmatprep.subr.bf16.mxu1 %v2520_v1 }
  0xcc   : > { %2282 = vmatpush3.bf16.msra.mxu0 %v2459_v51  ;;  %2302 = vmatpush3.bf16.msra.mxu1 %v2459_v51 }
  0xcd   : > { %2283 = vmatprep.subr.bf16.mxu0 %v2520_v1  ;;  %2303 = vmatprep.subr.bf16.mxu1 %v2520_v1 }
  0xd0   : > { %2284 = vmatpush3.bf16.msra.mxu0 %v2460_v58  ;;  %2304 = vmatpush3.bf16.msra.mxu1 %v2460_v58 }
  0xd1   : > { %2285 = vmatprep.subr.bf16.mxu0 %v2520_v1  ;;  %2305 = vmatprep.subr.bf16.mxu1 %v2520_v1 }
  0xd4   : > { %2286 = vmatpush3.bf16.msra.mxu0 %v2461_v4  ;;  %2306 = vmatpush3.bf16.msra.mxu1 %v2461_v4 }
  0xd5   : > { %2287 = vmatprep.subr.bf16.mxu0 %v2520_v1  ;;  %2307 = vmatprep.subr.bf16.mxu1 %v2520_v1 }
  0xd8   : > { %2288 = vmatpush3.bf16.msra.mxu0 %v2462_v10  ;;  %2308 = vmatpush3.bf16.msra.mxu1 %v2462_v10 }
  0xd9   : > { %2313 = vmatprep.subr.bf16.mxu0 %v2520_v1  ;;  %2333 = vmatprep.subr.bf16.mxu1 %v2520_v1 }
  0xdb   : > { %2290 = vmatmul.mubr.bf16.vlgmr.msra.gmra.mxu0 %v1220_v14  ;;  %2310 = vmatmul.mubr.bf16.vlgmr.msra.gmra.mxu1 %v1344_v15 }
  0xdc   : > { %2314 = vmatpush3.bf16.msra.mxu0 %v2467_v16  ;;  %2334 = vmatpush3.bf16.msra.mxu1 %v2467_v16 }
  0xdd   : > { %2315 = vmatprep.subr.bf16.mxu0 %v2520_v1  ;;  %2335 = vmatprep.subr.bf16.mxu1 %v2520_v1 }
  0xde   : > { %2329 = vmatprep.mubr.msk.bf16.mxu0 %vm2521_vm0, %v2520_v1  ;;  %2349 = vmatprep.mubr.msk.bf16.mxu1 %vm2521_vm0, %v2520_v1 }
  0xe0   : > { %2316 = vmatpush3.bf16.msra.mxu0 %v2468_v17  ;;  %2336 = vmatpush3.bf16.msra.mxu1 %v2468_v17 }
  0xe1   : > { %2317 = vmatprep.subr.bf16.mxu0 %v2520_v1  ;;  %2337 = vmatprep.subr.bf16.mxu1 %v2520_v1 }
  0xe4   : > { %2318 = vmatpush3.bf16.msra.mxu0 %v2469_v18  ;;  %2338 = vmatpush3.bf16.msra.mxu1 %v2469_v18 }
  0xe5   : > { %2319 = vmatprep.subr.bf16.mxu0 %v2520_v1  ;;  %2339 = vmatprep.subr.bf16.mxu1 %v2520_v1 }
  0xe8   : > { %2320 = vmatpush3.bf16.msra.mxu0 %v2470_v19  ;;  %2340 = vmatpush3.bf16.msra.mxu1 %v2470_v19 }
  0xe9   : > { %2321 = vmatprep.subr.bf16.mxu0 %v2520_v1  ;;  %2341 = vmatprep.subr.bf16.mxu1 %v2520_v1 }
  0xec   : > { %2322 = vmatpush3.bf16.msra.mxu0 %v2471_v20  ;;  %2342 = vmatpush3.bf16.msra.mxu1 %v2471_v20 }
  0xed   : > { %2323 = vmatprep.subr.bf16.mxu0 %v2520_v1  ;;  %2343 = vmatprep.subr.bf16.mxu1 %v2520_v1 }
  0xf0   : > { %2324 = vmatpush3.bf16.msra.mxu0 %v2472_v21  ;;  %2344 = vmatpush3.bf16.msra.mxu1 %v2472_v21 }
  0xf1   : > { %2325 = vmatprep.subr.bf16.mxu0 %v2520_v1  ;;  %2345 = vmatprep.subr.bf16.mxu1 %v2520_v1 }
  0xf4   : > { %2326 = vmatpush3.bf16.msra.mxu0 %v2473_v24  ;;  %2346 = vmatpush3.bf16.msra.mxu1 %v2473_v24 }
  0xf5   : > { %2327 = vmatprep.subr.bf16.mxu0 %v2520_v1  ;;  %2347 = vmatprep.subr.bf16.mxu1 %v2520_v1  ;;  %v195_v1 = vld [vmem:[#allocation2] sm:$0xff] }
  0xf8   : > { %2328 = vmatpush3.bf16.msra.mxu0 %v2474_v27  ;;  %2348 = vmatpush3.bf16.msra.mxu1 %v2474_v27 }
  0xfb   : > { %v284_v34 = vpop.f32.mrf.mxu0  ;;  %v341_v35 = vpop.f32.mrf.mxu1  ;;  %2330 = vmatmul.mubr.bf16.vlgmr.msra.gmra.mxu0 %v1427_v32  ;;  %2350 = vmatmul.mubr.bf16.vlgmr.msra.gmra.mxu1 %v1537_v33 }
  0xfc   : > { %v291_v44 = vadd.f32 %v284_v34, %v194_v42  ;;  %v348_v45 = vadd.f32 %v341_v35, %v299_v43 }
  0xfd   : > { %v2091_v36 = vpop.f32.mrf.mxu0  ;;  %v2111_v37 = vpop.f32.mrf.mxu1 }
  0xff   : > { %v287_v38 = vpop.f32.mrf.mxu0  ;;  %v344_v39 = vpop.f32.mrf.mxu1 }
 0x100   : > { %v292_v53 = vadd.f32 %v287_v38, %v195_v1  ;;  %v349_v54 = vadd.f32 %v344_v39, %v300_v46 }
 0x101   : > { %v2092_v40 = vpop.f32.mrf.mxu0  ;;  %v2112_v41 = vpop.f32.mrf.mxu1 }
 0x11b   : > { %v481_v47 = vpop.f32.mrf.mxu0  ;;  %v552_v48 = vpop.f32.mrf.mxu1 }
 0x11c   : > { %v488_v49 = vadd.f32 %v481_v47, %v291_v44  ;;  %v559_v50 = vadd.f32 %v552_v48, %v348_v45 }
 0x11d   : > { %v2131_v51 = vpop.f32.mrf.mxu0  ;;  %v2151_v52 = vpop.f32.mrf.mxu1 }
 0x11f   : > { %v484_v55 = vpop.f32.mrf.mxu0  ;;  %v555_v56 = vpop.f32.mrf.mxu1 }
 0x120   : > { %v489_v57 = vadd.f32 %v484_v55, %v292_v53  ;;  %v560_v58 = vadd.f32 %v555_v56, %v349_v54 }
 0x121   : > { %v2132_v59 = vpop.f32.mrf.mxu0  ;;  %v2152_v60 = vpop.f32.mrf.mxu1 }
 0x13b   : > { %v683_v61 = vpop.f32.mrf.mxu0  ;;  %v745_v62 = vpop.f32.mrf.mxu1 }
 0x13c   : > { %v690_v63 = vadd.f32 %v683_v61, %v488_v49  ;;  %v752_v0 = vadd.f32 %v745_v62, %v559_v50 }
 0x13d   : > { %v2171_v2 = vpop.f32.mrf.mxu0  ;;  %v2191_v3 = vpop.f32.mrf.mxu1 }
 0x13f   : > { %v686_v4 = vpop.f32.mrf.mxu0  ;;  %v748_v5 = vpop.f32.mrf.mxu1 }
 0x140   : > { %v691_v6 = vadd.f32 %v686_v4, %v489_v57  ;;  %v753_v7 = vadd.f32 %v748_v5, %v560_v58 }
 0x141   : > { %v2172_v8 = vpop.f32.mrf.mxu0  ;;  %v2192_v9 = vpop.f32.mrf.mxu1 }
 0x15b   : > { %v890_v10 = vpop.f32.mrf.mxu0  ;;  %v966_v11 = vpop.f32.mrf.mxu1 }
 0x15c   : > { %v897_v12 = vadd.f32 %v890_v10, %v690_v63  ;;  %v973_v13 = vadd.f32 %v966_v11, %v752_v0 }
 0x15d   : > { %v2211_v14 = vpop.f32.mrf.mxu0  ;;  %v2231_v15 = vpop.f32.mrf.mxu1 }
 0x15f   : > { %v893_v16 = vpop.f32.mrf.mxu0  ;;  %v969_v17 = vpop.f32.mrf.mxu1 }
 0x160   : > { %v898_v18 = vadd.f32 %v893_v16, %v691_v6  ;;  %v974_v19 = vadd.f32 %v969_v17, %v753_v7 }
 0x161   : > { %v2212_v20 = vpop.f32.mrf.mxu0  ;;  %v2232_v21 = vpop.f32.mrf.mxu1 }
 0x17b   : > { %v1097_v22 = vpop.f32.mrf.mxu0  ;;  %v1159_v23 = vpop.f32.mrf.mxu1 }
 0x17c   : > { %v1104_v38 = vadd.f32 %v1097_v22, %v897_v12  ;;  %v1166_v39 = vadd.f32 %v1159_v23, %v973_v13 }
 0x17d   : > { %v2251_v24 = vpop.f32.mrf.mxu0  ;;  %v2271_v25 = vpop.f32.mrf.mxu1 }
 0x17f   : > { %v1100_v26 = vpop.f32.mrf.mxu0  ;;  %v1162_v27 = vpop.f32.mrf.mxu1 }
 0x180   : > { %v1105_v44 = vadd.f32 %v1100_v26, %v898_v18  ;;  %v1167_v45 = vadd.f32 %v1162_v27, %v974_v19 }
 0x181   : > { %v2252_v28 = vpop.f32.mrf.mxu0  ;;  %v2272_v29 = vpop.f32.mrf.mxu1 }
 0x19b   : > { %v1304_v30 = vpop.f32.mrf.mxu0  ;;  %v1380_v31 = vpop.f32.mrf.mxu1 }
 0x19c   : > { %v1311_v40 = vadd.f32 %v1304_v30, %v1104_v38  ;;  %v1387_v41 = vadd.f32 %v1380_v31, %v1166_v39 }
 0x19d   : > { %v2291_v32 = vpop.f32.mrf.mxu0  ;;  %v2311_v33 = vpop.f32.mrf.mxu1 }
 0x19f   : > { %v1307_v34 = vpop.f32.mrf.mxu0  ;;  %v1383_v35 = vpop.f32.mrf.mxu1 }
 0x1a0   : > { %v1312_v49 = vadd.f32 %v1307_v34, %v1105_v44  ;;  %v1388_v50 = vadd.f32 %v1383_v35, %v1167_v45 }
 0x1a1   : > { %v2292_v36 = vpop.f32.mrf.mxu0  ;;  %v2312_v37 = vpop.f32.mrf.mxu1 }
 0x1bb   : > { %v1511_v42 = vpop.f32.mrf.mxu0  ;;  %v1573_v43 = vpop.f32.mrf.mxu1 }
 0x1bc   : > { %v1518_v1 = vadd.f32 %v1511_v42, %v1311_v40  ;;  %v1580_v46 = vadd.f32 %v1573_v43, %v1387_v41 }
 0x1bd   : > { %v2331_v47 = vpop.f32.mrf.mxu0  ;;  %v2351_v48 = vpop.f32.mrf.mxu1 }
 0x1be   : > { %1520 = vst [vmem:[#allocation2 + $0x10] sm:$0xff] %v1518_v1  ;;  %1582 = vst [vmem:[#allocation2 + $0x18] sm:$0xff] %v1580_v46  ;;  %1587 = sbr.rel (%p1923_p8) target bundleno = 463 (0x1cf), region = 36 }
 0x1bf   : > { %v1514_v51 = vpop.f32.mrf.mxu0  ;;  %v1576_v52 = vpop.f32.mrf.mxu1 }
 0x1c0   : > { %v1519_v53 = vadd.f32 %v1514_v51, %v1312_v49  ;;  %v1581_v54 = vadd.f32 %v1576_v52, %v1388_v50 }
 0x1c1   : > { %v2332_v55 = vpop.f32.mrf.mxu0  ;;  %v2352_v56 = vpop.f32.mrf.mxu1 }
 0x1c2   : > { %1521 = vst [vmem:[#allocation2] sm:$0xff] %v1519_v53  ;;  %1583 = vst [vmem:[#allocation2 + $0x8] sm:$0xff] %v1581_v54 }
 0x1c5   : > { %v1588_v57 = vld [vmem:[#allocation2 + $0x10] sm:$0xff]  ;;  %v1590_v59 = vld [vmem:[#allocation2 + $0x18] sm:$0xff] }
 0x1c6   : > { %v1592_v60 = vmax.f32 %v1588_v57, 0.0  ;;  %v1594_v63 = vmax.f32 %v1590_v59, 0.0 }
 0x1c9   : > { %v1589_v58 = vld [vmem:[#allocation2] sm:$0xff]  ;;  %v1591_v62 = vld [vmem:[#allocation2 + $0x8] sm:$0xff] }
 0x1ca   : > { %v1593_v61 = vmax.f32 %v1589_v58, 0.0  ;;  %v1595_v0 = vmax.f32 %v1591_v62, 0.0 }
 0x1cc   : > { %v1939_v2 = vpack.c.bf16 %v1593_v61, %v1592_v60  ;;  %v1944_v3 = vpack.c.bf16 %v1595_v0, %v1594_v63 }
 0x1ce   : > { %1940 = vst [vmem:[%s2573_s21] sm:$0xff] %v1939_v2   ;;  %1946 = vst [vmem:[%s2573_s21 + $0x8] sm:$0xff] %v1944_v3  }
 0x1cf PF: > { %s12_s13 = sadd.s32 1, %s2517_s13   ;;  %s2830_s9 = smov %s2509_s11 }
 0x1d0   : > { %p9_p9 = scmp.ge.s32.totalorder %s12_s13, 114   ;;  %s2831_s10 = smov %s2513_s12 }
 0x1d1   : > { %s2832_s11 = smov %s2835_s14  ;;  %s2833_s12 = smov %s2839_s15 }
 0x1d2   :  { %11 = sbr.rel (!%p9_p9) target bundleno = 3 (0x3), region = 75 }

// kernel: resnet_discriminator_forward.24
= control target key start
LH: loop header
LB: loop body
LE: loop exit
PB: predicated region body
PF: predicated region fallthrough
CT: control target
= control target key end

     0   :  { %v57_v0 = vmov 0.0   ;;  %s103_s1 = inlined_call_operand.vmem [shape: f32[1,128], index: 1, kind: output, shape index: {0}]   ;;  %s104_s2 = inlined_call_operand.vmem [shape: f32[1,128], index: 2, kind: output, shape index: {1}]   ;;  %s105_s0 = inlined_call_operand.vmem [shape: f32[32,128], index: 0, kind: input, shape index: {}]  }
   0x1   :  { %14 = vst [vmem:[%s103_s1] sm:$0x1] %v57_v0  ;;  %15 = vst [vmem:[%s104_s2] sm:$0x1] %v57_v0  ;;  %v16_v1 = vld [vmem:[%s105_s0] sm:$0xff]  ;;  %v17_v2 = vld [vmem:[%s105_s0 + $0x8] sm:$0xff] }
   0x2   :  { %v18_v3 = vld [vmem:[%s105_s0 + $0x10] sm:$0xff]  ;;  %v19_v4 = vld [vmem:[%s105_s0 + $0x18] sm:$0xff]  ;;  %v21_v5 = vadd.f32 %v17_v2, %v16_v1  ;;  %v33_v6 = vmul.f32 %v16_v1, %v16_v1  ;;  %v34_v7 = vmul.f32 %v17_v2, %v17_v2 }
   0x3   :  { %v35_v8 = vmul.f32 %v18_v3, %v18_v3  ;;  %v36_v10 = vmul.f32 %v19_v4, %v19_v4 }
   0x4   :  { %v22_v9 = vadd.f32 %v21_v5, %v18_v3  ;;  %v37_v11 = vadd.f32 %v34_v7, %v33_v6 }
   0x6   :  { %v23_v12 = vadd.f32 %v22_v9, %v19_v4  ;;  %v38_v13 = vadd.f32 %v37_v11, %v35_v8 }
   0x8   :  { %v24_v14 = vrot.slane %v23_v12, 4  ;;  %v39_v15 = vadd.f32 %v38_v13, %v36_v10  ;;  %v20_v24 = vld [vmem:[%s103_s1] sm:$0x1] }
   0x9   :  { %v32_v27 = vld [vmem:[%s104_s2] sm:$0x1] }
   0xa   :  { %v25_v16 = vadd.f32 %v24_v14, %v23_v12  ;;  %v40_v17 = vrot.slane %v39_v15, 4 }
   0xc   :  { %v26_v18 = vrot.slane %v25_v16, 2  ;;  %v41_v19 = vadd.f32 %v40_v17, %v39_v15 }
   0xe   :  { %v27_v20 = vadd.f32 %v26_v18, %v25_v16  ;;  %v42_v21 = vrot.slane %v41_v19, 2 }
  0x10   :  { %v28_v22 = vrot.slane %v27_v20, 1  ;;  %v43_v23 = vadd.f32 %v42_v21, %v41_v19 }
  0x12   :  { %v29_v25 = vadd.f32 %v28_v22, %v27_v20  ;;  %v44_v26 = vrot.slane %v43_v23, 1 }
  0x14   :  { %v30_v28 = vadd.f32 %v29_v25, %v20_v24  ;;  %v45_v29 = vadd.f32 %v44_v26, %v43_v23 }
  0x16   :  { %31 = vst [vmem:[%s103_s1] sm:$0x1] %v30_v28  ;;  %v46_v30 = vadd.f32 %v45_v29, %v32_v27 }
  0x18   :  { %47 = vst [vmem:[%s104_s2] sm:$0x1] %v46_v30 }

// kernel: resnet_discriminator_forward.25
= control target key start
LH: loop header
LB: loop body
LE: loop exit
PB: predicated region body
PF: predicated region fallthrough
CT: control target
= control target key end

     0   :  { %v27_v6 = vlaneseq  ;;  %s139_s1 = inlined_call_operand.vmem [shape: f32[1,128], index: 1, kind: input, shape index: {}]   ;;  %s140_s2 = inlined_call_operand.vmem [shape: f32[1,128], index: 2, kind: input, shape index: {}]   ;;  %s141_s0 = inlined_call_operand.vmem [shape: f32[32,128], index: 0, kind: input, shape index: {}]   ;;  %s142_s3 = inlined_call_operand.vmem [shape: bf16[32,128], index: 3, kind: output, shape index: {}]  }
   0x1   :  { %v14_v0 = vld [vmem:[%s139_s1] sm:$0x1]  ;;  %v23_v12 = vld [vmem:[%s141_s0 + $0x8] sm:$0xff]  ;;  %v24_v13 = vld [vmem:[%s141_s0 + $0x10] sm:$0xff] }
   0x2   :  { %v16_v1 = vld [vmem:[%s140_s2] sm:$0x1]  ;;  %v15_v2 = vmul.f32 0.03125, %v14_v0  ;;  %v28_v8 = vshrl.u32 %v27_v6, 7  ;;  %v25_v14 = vld [vmem:[%s141_s0 + $0x18] sm:$0xff] }
   0x3   :  { %v17_v3 = vmul.f32 0.03125, %v16_v1  ;;  %v22_v10 = vld [vmem:[%s141_s0] sm:$0xff] }
   0x4   :  { %v18_v4 = vmul.f32 %v15_v2, %v15_v2  ;;  %v29_v9 = vsub.s32 0, %v28_v8 }
   0x6   :  { %v19_v5 = vsub.f32 %v17_v3, %v18_v4  ;;  %v30_v11 = vrot.slane %v15_v2, %v29_v9 }
   0x8   :  { %v20_v7 = vadd.f32 1e-05, %v19_v5  ;;  %v32_v15 = vsub.f32 %v22_v10, %v30_v11  ;;  %v33_v16 = vsub.f32 %v23_v12, %v30_v11  ;;  %v34_v17 = vsub.f32 %v24_v13, %v30_v11 }
   0x9   :  { %v35_v18 = vsub.f32 %v25_v14, %v30_v11 }
   0xa   :  { %93 = vrsqrt.f32 %v20_v7 }
  0x17   :  { %v94_v19 = vpop.eup %93 }
  0x18   :  { %v40_v20 = vrot.slane %v94_v19, %v29_v9 }
  0x1a   :  { %v42_v21 = vmul.f32 %v40_v20, %v32_v15  ;;  %v43_v22 = vmul.f32 %v40_v20, %v33_v16  ;;  %v44_v23 = vmul.f32 %v40_v20, %v34_v17  ;;  %v45_v24 = vmul.f32 %v40_v20, %v35_v18 }
  0x1c   :  { %v46_v25 = vmax.f32 %v42_v21, 0.0  ;;  %v47_v26 = vmax.f32 %v43_v22, 0.0  ;;  %v48_v27 = vmax.f32 %v44_v23, 0.0  ;;  %v49_v28 = vmax.f32 %v45_v24, 0.0 }
  0x1e   :  { %v85_v29 = vpack.c.bf16 %v47_v26, %v46_v25  ;;  %v90_v30 = vpack.c.bf16 %v49_v28, %v48_v27 }
  0x20   :  { %86 = vst [vmem:[%s142_s3] sm:$0xff] %v85_v29   ;;  %92 = vst [vmem:[%s142_s3 + $0x8] sm:$0xff] %v90_v30  }

// kernel: resnet_discriminator_forward.23
= control target key start
LH: loop header
LB: loop body
LE: loop exit
PB: predicated region body
PF: predicated region fallthrough
CT: control target
= control target key end

     0   :  { %s1141_s9 = smov 0   ;;  %s1143_s10 = smov 0   ;;  %s1298_s0 = inlined_call_operand.vmem [shape: bf16[10,4,5,128], index: 0, kind: input, shape index: {}]   ;;  %s1299_s1 = inlined_call_operand.vmem [shape: bf16[9,128,128], index: 1, kind: input, shape index: {}]   ;;  %s1300_s2 = inlined_call_operand.vmem [shape: f32[4,2,4,128], index: 2, kind: output, shape index: {}]  }
   0x1   :  { %s1145_s11 = smov 0   ;;  %s1147_s12 = smov 0  }
   0x2   :  { %s1149_s13 = smov 0  }
   0x3 LB: > { %s21_s14 = sadd.s32 1, %s1113_s11  ;;  %s24_s15 = sadd.s32 1, %s1117_s12  ;;  %s1121_s13 = sphi %s1149_s13, %s12_s13   ;;  %s1117_s12 = sphi %s1147_s12, %s1304_s12   ;;  %s1113_s11 = sphi %s1145_s11, %s1303_s11   ;;  %s1109_s10 = sphi %s1143_s10, %s1302_s10   ;;  %s1105_s9 = sphi %s1141_s9, %s1301_s9  }
   0x4   : > { %p22_p0 = scmp.ge.s32.totalorder %s21_s14, 3  ;;  %p761_p1 = scmp.ge.s32.totalorder %s1121_s13, 1 }
   0x5   : > { %p132_p2 = scmp.lt.s32.totalorder %s1121_s13, 13 }
   0x6   : > { %s1306_s14 = smov (%p22_p0, %s21_s14), 0  ;;  %s1308_s15 = smov (!%p22_p0, %s24_s15), %s1117_s12 }
   0x7   : > { %p133_p3 = pnand %p761_p1, %p132_p2  ;;  %p26_p4 = scmp.ge.s32.totalorder %s1308_s15, 4 }
   0x8   : > { %s762_s16 = sshll.u32 (!%p133_p3), %s1109_s10, 1  ;;  %p165_p5 = scmp.lt.s32.totalorder (!%p133_p3), %s1109_s10, 3 }
   0x9   : > { %s1310_s15 = smov (%p26_p4, %s1308_s15), 0  ;;  %136 = sbr.rel (%p133_p3) target bundleno = 327 (0x147), region = 28 }
   0xa   : > { %s157_s17 = sadd.s32 (!%p133_p3), %s1105_s9, %s762_s16  ;;  %p767_p7 = scmp.ne.s32.totalorder (!%p133_p3), %s1105_s9, 0 }
   0xb   : > { %p158_p6 = scmp.lt.s32.totalorder (!%p133_p3), %s157_s17, 9 }
   0xe   : > { %s1312_s10 = smov (!%p165_p5, %s1109_s10), 3  ;;  %s1314_s17 = smov (!%p158_p6, %s157_s17), 9 }
   0xf   : > { %s838_s18 = sshll.u32 %s1312_s10, 3  ;;  %s837_s19 = sshll.u32 %s1314_s17, 4 }
  0x10   : > { %s1177_s22 = scalar_lea.vmem %s1300_s2, %s838_s18  ;;  %s1182_s25 = scalar_lea.vmem %s1298_s0, %s837_s19 }
  0x11   : > { %174 = sbr.rel (%p767_p7) target bundleno = 24 (0x18), region = 32 }
  0x16   : > { %v1123_v0 = vmov 0.0  }
  0x17   : > { %175 = vst [vmem:[#allocation2] sm:$0xf] %v1123_v0  ;;  %176 = vst [vmem:[#allocation2 + $0x4] sm:$0xf] %v1123_v0 }
  0x18 PF: > { %s839_s26 = smul.u32 192, %s1105_s9  ;;  %v1124_v1 = vmov 0.0   ;;  %vm1125_vm0 = vmmov 0   ;;  %v197_v10 = vld [vmem:[%s1182_s25] sm:$0x3]  ;;  %p834_p8 = scmp.ne.s32.totalorder %s1105_s9, 2 }
  0x19   : > { %894 = vmatprep.subr.bf16.mxu0 %v1124_v1  ;;  %914 = vmatprep.subr.bf16.mxu1 %v1124_v1  ;;  %v778_v11 = vld [vmem:[%s1182_s25 + $0x4] sm:$0x3]  ;;  %v796_v20 = vld [vmem:[%s1182_s25 + $0x8] sm:$0x3]  ;;  %v805_v21 = vld [vmem:[%s1182_s25 + $0xc] sm:$0x3] }
  0x1a   : > { %s1191_s29 = scalar_lea.vmem %s1299_s1, %s839_s26  ;;  %910 = vmatprep.mubr.msk.bf16.mxu0 %vm1125_vm0, %v1124_v1  ;;  %930 = vmatprep.mubr.msk.bf16.mxu1 %vm1125_vm0, %v1124_v1  ;;  %v1081_v27 = vld [vmem:[%s1182_s25] ss:$0 sps:$4 sm:$0x77]   ;;  %v1082_v28 = vld [vmem:[%s1182_s25 + $0x4] ss:$0 sps:$4 sm:$0x77]  }
  0x1b   : > { %v1057_v2 = vld [vmem:[%s1191_s29 + $0x38] sm:$0xff]   ;;  %v1058_v3 = vld [vmem:[%s1191_s29 + $0x30] sm:$0xff]   ;;  %v1059_v4 = vld [vmem:[%s1191_s29 + $0x28] sm:$0xff]   ;;  %v521_v30 = vshll.u32 %v1081_v27, 16  ;;  %v624_v31 = vshll.u32 %v1082_v28, 16  ;;  %v519_v33 = vshrl.u32 %v1081_v27, 16 }
  0x1c   : > { %895 = vmatpush3.bf16.msra.mxu0 %v1057_v2  ;;  %915 = vmatpush3.bf16.msra.mxu1 %v1057_v2  ;;  %v1060_v5 = vld [vmem:[%s1191_s29 + $0x20] sm:$0xff]   ;;  %v1061_v6 = vld [vmem:[%s1191_s29 + $0x18] sm:$0xff]   ;;  %v1062_v7 = vld [vmem:[%s1191_s29 + $0x10] sm:$0xff]   ;;  %v622_v35 = vshrl.u32 %v1082_v28, 16 }
  0x1d   : > { %896 = vmatprep.subr.bf16.mxu0 %v1124_v1  ;;  %916 = vmatprep.subr.bf16.mxu1 %v1124_v1  ;;  %v1063_v8 = vld [vmem:[%s1191_s29 + $0x8] sm:$0xff]   ;;  %v1064_v9 = vld [vmem:[%s1191_s29] sm:$0xff]   ;;  %v1065_v12 = vld [vmem:[%s1191_s29 + $0x78] sm:$0xff]   ;;  %v523_v34 = vrot.slane %v521_v30, 1  ;;  %v626_v36 = vrot.slane %v624_v31, 1 }
  0x1e   : > { %v1066_v13 = vld [vmem:[%s1191_s29 + $0x70] sm:$0xff]   ;;  %v1067_v14 = vld [vmem:[%s1191_s29 + $0x68] sm:$0xff]   ;;  %v1068_v15 = vld [vmem:[%s1191_s29 + $0x60] sm:$0xff]  }
  0x1f   : > { %v1069_v16 = vld [vmem:[%s1191_s29 + $0x58] sm:$0xff]   ;;  %v1070_v17 = vld [vmem:[%s1191_s29 + $0x50] sm:$0xff]   ;;  %v1071_v18 = vld [vmem:[%s1191_s29 + $0x48] sm:$0xff]   ;;  %v524_v38 = vor.u32 %v523_v34, %v519_v33  ;;  %v627_v39 = vor.u32 %v626_v36, %v622_v35 }
  0x20   : > { %897 = vmatpush3.bf16.msra.mxu0 %v1058_v3  ;;  %917 = vmatpush3.bf16.msra.mxu1 %v1058_v3  ;;  %v1072_v19 = vld [vmem:[%s1191_s29 + $0x40] sm:$0xff]   ;;  %v1073_v22 = vld [vmem:[%s1191_s29 + $0xb8] sm:$0xff]   ;;  %v1074_v23 = vld [vmem:[%s1191_s29 + $0xb0] sm:$0xff]  }
  0x21   : > { %898 = vmatprep.subr.bf16.mxu0 %v1124_v1  ;;  %918 = vmatprep.subr.bf16.mxu1 %v1124_v1  ;;  %v1075_v24 = vld [vmem:[%s1191_s29 + $0xa8] sm:$0xff]   ;;  %v1076_v25 = vld [vmem:[%s1191_s29 + $0xa0] sm:$0xff]   ;;  %v1077_v26 = vld [vmem:[%s1191_s29 + $0x98] sm:$0xff]  }
  0x22   : > { %v1078_v29 = vld [vmem:[%s1191_s29 + $0x90] sm:$0xff]   ;;  %v1079_v32 = vld [vmem:[%s1191_s29 + $0x88] sm:$0xff]   ;;  %v1080_v37 = vld [vmem:[%s1191_s29 + $0x80] sm:$0xff]  }
  0x23   : > { %v198_v40 = vld [vmem:[#allocation2] sm:$0xf]  ;;  %v292_v41 = vld [vmem:[#allocation2 + $0x4] sm:$0xf] }
  0x24   : > { %899 = vmatpush3.bf16.msra.mxu0 %v1059_v4  ;;  %919 = vmatpush3.bf16.msra.mxu1 %v1059_v4 }
  0x25   : > { %900 = vmatprep.subr.bf16.mxu0 %v1124_v1  ;;  %920 = vmatprep.subr.bf16.mxu1 %v1124_v1 }
  0x28   : > { %901 = vmatpush3.bf16.msra.mxu0 %v1060_v5  ;;  %921 = vmatpush3.bf16.msra.mxu1 %v1060_v5 }
  0x29   : > { %902 = vmatprep.subr.bf16.mxu0 %v1124_v1  ;;  %922 = vmatprep.subr.bf16.mxu1 %v1124_v1 }
  0x2c   : > { %903 = vmatpush3.bf16.msra.mxu0 %v1061_v6  ;;  %923 = vmatpush3.bf16.msra.mxu1 %v1061_v6 }
  0x2d   : > { %904 = vmatprep.subr.bf16.mxu0 %v1124_v1  ;;  %924 = vmatprep.subr.bf16.mxu1 %v1124_v1 }
  0x30   : > { %905 = vmatpush3.bf16.msra.mxu0 %v1062_v7  ;;  %925 = vmatpush3.bf16.msra.mxu1 %v1062_v7 }
  0x31   : > { %906 = vmatprep.subr.bf16.mxu0 %v1124_v1  ;;  %926 = vmatprep.subr.bf16.mxu1 %v1124_v1 }
  0x34   : > { %907 = vmatpush3.bf16.msra.mxu0 %v1063_v8  ;;  %927 = vmatpush3.bf16.msra.mxu1 %v1063_v8 }
  0x35   : > { %908 = vmatprep.subr.bf16.mxu0 %v1124_v1  ;;  %928 = vmatprep.subr.bf16.mxu1 %v1124_v1 }
  0x38   : > { %909 = vmatpush3.bf16.msra.mxu0 %v1064_v9  ;;  %929 = vmatpush3.bf16.msra.mxu1 %v1064_v9 }
  0x39   : > { %934 = vmatprep.subr.bf16.mxu0 %v1124_v1  ;;  %954 = vmatprep.subr.bf16.mxu1 %v1124_v1 }
  0x3b   : > { %911 = vmatmul.mubr.bf16.vlgmr.msra.gmra.mxu0 %v197_v10  ;;  %931 = vmatmul.mubr.bf16.vlgmr.msra.gmra.mxu1 %v778_v11 }
  0x3c   : > { %935 = vmatpush3.bf16.msra.mxu0 %v1065_v12  ;;  %955 = vmatpush3.bf16.msra.mxu1 %v1065_v12 }
  0x3d   : > { %936 = vmatprep.subr.bf16.mxu0 %v1124_v1  ;;  %956 = vmatprep.subr.bf16.mxu1 %v1124_v1 }
  0x3e   : > { %950 = vmatprep.mubr.msk.bf16.mxu0 %vm1125_vm0, %v1124_v1  ;;  %970 = vmatprep.mubr.msk.bf16.mxu1 %vm1125_vm0, %v1124_v1 }
  0x40   : > { %937 = vmatpush3.bf16.msra.mxu0 %v1066_v13  ;;  %957 = vmatpush3.bf16.msra.mxu1 %v1066_v13 }
  0x41   : > { %938 = vmatprep.subr.bf16.mxu0 %v1124_v1  ;;  %958 = vmatprep.subr.bf16.mxu1 %v1124_v1 }
  0x44   : > { %939 = vmatpush3.bf16.msra.mxu0 %v1067_v14  ;;  %959 = vmatpush3.bf16.msra.mxu1 %v1067_v14 }
  0x45   : > { %940 = vmatprep.subr.bf16.mxu0 %v1124_v1  ;;  %960 = vmatprep.subr.bf16.mxu1 %v1124_v1 }
  0x48   : > { %941 = vmatpush3.bf16.msra.mxu0 %v1068_v15  ;;  %961 = vmatpush3.bf16.msra.mxu1 %v1068_v15 }
  0x49   : > { %942 = vmatprep.subr.bf16.mxu0 %v1124_v1  ;;  %962 = vmatprep.subr.bf16.mxu1 %v1124_v1 }
  0x4c   : > { %943 = vmatpush3.bf16.msra.mxu0 %v1069_v16  ;;  %963 = vmatpush3.bf16.msra.mxu1 %v1069_v16 }
  0x4d   : > { %944 = vmatprep.subr.bf16.mxu0 %v1124_v1  ;;  %964 = vmatprep.subr.bf16.mxu1 %v1124_v1 }
  0x50   : > { %945 = vmatpush3.bf16.msra.mxu0 %v1070_v17  ;;  %965 = vmatpush3.bf16.msra.mxu1 %v1070_v17 }
  0x51   : > { %946 = vmatprep.subr.bf16.mxu0 %v1124_v1  ;;  %966 = vmatprep.subr.bf16.mxu1 %v1124_v1 }
  0x54   : > { %947 = vmatpush3.bf16.msra.mxu0 %v1071_v18  ;;  %967 = vmatpush3.bf16.msra.mxu1 %v1071_v18 }
  0x55   : > { %948 = vmatprep.subr.bf16.mxu0 %v1124_v1  ;;  %968 = vmatprep.subr.bf16.mxu1 %v1124_v1 }
  0x58   : > { %949 = vmatpush3.bf16.msra.mxu0 %v1072_v19  ;;  %969 = vmatpush3.bf16.msra.mxu1 %v1072_v19 }
  0x59   : > { %974 = vmatprep.subr.bf16.mxu0 %v1124_v1  ;;  %994 = vmatprep.subr.bf16.mxu1 %v1124_v1 }
  0x5b   : > { %951 = vmatmul.mubr.bf16.vlgmr.msra.gmra.mxu0 %v796_v20  ;;  %971 = vmatmul.mubr.bf16.vlgmr.msra.gmra.mxu1 %v805_v21 }
  0x5c   : > { %975 = vmatpush3.bf16.msra.mxu0 %v1073_v22  ;;  %995 = vmatpush3.bf16.msra.mxu1 %v1073_v22 }
  0x5d   : > { %976 = vmatprep.subr.bf16.mxu0 %v1124_v1  ;;  %996 = vmatprep.subr.bf16.mxu1 %v1124_v1 }
  0x5e   : > { %990 = vmatprep.mubr.msk.bf16.mxu0 %vm1125_vm0, %v1124_v1  ;;  %1010 = vmatprep.mubr.msk.bf16.mxu1 %vm1125_vm0, %v1124_v1 }
  0x60   : > { %977 = vmatpush3.bf16.msra.mxu0 %v1074_v23  ;;  %997 = vmatpush3.bf16.msra.mxu1 %v1074_v23 }
  0x61   : > { %978 = vmatprep.subr.bf16.mxu0 %v1124_v1  ;;  %998 = vmatprep.subr.bf16.mxu1 %v1124_v1 }
  0x64   : > { %979 = vmatpush3.bf16.msra.mxu0 %v1075_v24  ;;  %999 = vmatpush3.bf16.msra.mxu1 %v1075_v24 }
  0x65   : > { %980 = vmatprep.subr.bf16.mxu0 %v1124_v1  ;;  %1000 = vmatprep.subr.bf16.mxu1 %v1124_v1 }
  0x68   : > { %981 = vmatpush3.bf16.msra.mxu0 %v1076_v25  ;;  %1001 = vmatpush3.bf16.msra.mxu1 %v1076_v25 }
  0x69   : > { %982 = vmatprep.subr.bf16.mxu0 %v1124_v1  ;;  %1002 = vmatprep.subr.bf16.mxu1 %v1124_v1 }
  0x6c   : > { %983 = vmatpush3.bf16.msra.mxu0 %v1077_v26  ;;  %1003 = vmatpush3.bf16.msra.mxu1 %v1077_v26 }
  0x6d   : > { %984 = vmatprep.subr.bf16.mxu0 %v1124_v1  ;;  %1004 = vmatprep.subr.bf16.mxu1 %v1124_v1 }
  0x70   : > { %985 = vmatpush3.bf16.msra.mxu0 %v1078_v29  ;;  %1005 = vmatpush3.bf16.msra.mxu1 %v1078_v29 }
  0x71   : > { %986 = vmatprep.subr.bf16.mxu0 %v1124_v1  ;;  %1006 = vmatprep.subr.bf16.mxu1 %v1124_v1 }
  0x74   : > { %987 = vmatpush3.bf16.msra.mxu0 %v1079_v32  ;;  %1007 = vmatpush3.bf16.msra.mxu1 %v1079_v32 }
  0x75   : > { %988 = vmatprep.subr.bf16.mxu0 %v1124_v1  ;;  %1008 = vmatprep.subr.bf16.mxu1 %v1124_v1 }
  0x78   : > { %989 = vmatpush3.bf16.msra.mxu0 %v1080_v37  ;;  %1009 = vmatpush3.bf16.msra.mxu1 %v1080_v37 }
  0x7b   : > { %991 = vmatmul.mubr.bf16.vlgmr.msra.gmra.mxu0 %v524_v38  ;;  %1011 = vmatmul.mubr.bf16.vlgmr.msra.gmra.mxu1 %v627_v39 }
  0xfb   : > { %v281_v42 = vpop.f32.mrf.mxu0  ;;  %v327_v43 = vpop.f32.mrf.mxu1 }
  0xfc   : > { %v287_v44 = vadd.f32 %v281_v42, %v198_v40  ;;  %v333_v45 = vadd.f32 %v327_v43, %v292_v41 }
  0xfd   : > { %v912_v46 = vpop.f32.mrf.mxu0  ;;  %v932_v47 = vpop.f32.mrf.mxu1 }
  0xfe   : > { %288 = vst [vmem:[#allocation2] sm:$0xf] %v287_v44  ;;  %334 = vst [vmem:[#allocation2 + $0x4] sm:$0xf] %v333_v45 }
  0xff   : > { %v284_v48 = vpop.f32.mrf.mxu0  ;;  %v330_v49 = vpop.f32.mrf.mxu1 }
 0x101   : > { %v913_v50 = vpop.f32.mrf.mxu0  ;;  %v933_v51 = vpop.f32.mrf.mxu1 }
 0x105   : > { %v357_v52 = vld [vmem:[#allocation2] sm:$0xf]  ;;  %v450_v54 = vld [vmem:[#allocation2 + $0x4] sm:$0xf] }
 0x11b   : > { %v440_v53 = vpop.f32.mrf.mxu0  ;;  %v485_v55 = vpop.f32.mrf.mxu1 }
 0x11c   : > { %v446_v56 = vadd.f32 %v440_v53, %v357_v52  ;;  %v491_v57 = vadd.f32 %v485_v55, %v450_v54 }
 0x11d   : > { %v952_v58 = vpop.f32.mrf.mxu0  ;;  %v972_v59 = vpop.f32.mrf.mxu1 }
 0x11e   : > { %447 = vst [vmem:[#allocation2] sm:$0xf] %v446_v56  ;;  %492 = vst [vmem:[#allocation2 + $0x4] sm:$0xf] %v491_v57 }
 0x11f   : > { %v443_v60 = vpop.f32.mrf.mxu0  ;;  %v488_v61 = vpop.f32.mrf.mxu1 }
 0x121   : > { %v953_v62 = vpop.f32.mrf.mxu0  ;;  %v973_v63 = vpop.f32.mrf.mxu1 }
 0x125   : > { %v514_v0 = vld [vmem:[#allocation2] sm:$0xf]  ;;  %v617_v2 = vld [vmem:[#allocation2 + $0x4] sm:$0xf] }
 0x13b   : > { %v608_v1 = vpop.f32.mrf.mxu0  ;;  %v663_v3 = vpop.f32.mrf.mxu1 }
 0x13c   : > { %v614_v4 = vadd.f32 %v608_v1, %v514_v0  ;;  %v669_v5 = vadd.f32 %v663_v3, %v617_v2 }
 0x13d   : > { %v992_v6 = vpop.f32.mrf.mxu0  ;;  %v1012_v7 = vpop.f32.mrf.mxu1  ;;  %674 = sbr.rel (%p834_p8) target bundleno = 327 (0x147), region = 36 }
 0x13e   : > { %615 = vst [vmem:[#allocation2] sm:$0xf] %v614_v4  ;;  %670 = vst [vmem:[#allocation2 + $0x4] sm:$0xf] %v669_v5 }
 0x13f   : > { %v611_v8 = vpop.f32.mrf.mxu0  ;;  %v666_v9 = vpop.f32.mrf.mxu1 }
 0x141   : > { %v993_v10 = vpop.f32.mrf.mxu0  ;;  %v1013_v11 = vpop.f32.mrf.mxu1 }
 0x145   : > { %v675_v12 = vld [vmem:[#allocation2] sm:$0xff]  }
 0x146   : > { %677 = vst [vmem:[%s1177_s22] sm:$0xff] %v675_v12  }
 0x147 PF: > { %s12_s13 = sadd.s32 1, %s1121_s13   ;;  %s1301_s9 = smov %s1113_s11 }
 0x148   : > { %p9_p9 = scmp.ge.s32.totalorder %s12_s13, 14   ;;  %s1302_s10 = smov %s1117_s12 }
 0x149   : > { %s1303_s11 = smov %s1306_s14  ;;  %s1304_s12 = smov %s1310_s15 }
 0x14a   :  { %11 = sbr.rel (!%p9_p9) target bundleno = 3 (0x3), region = 73 }

// kernel: resnet_discriminator_forward.31
= control target key start
LH: loop header
LB: loop body
LE: loop exit
PB: predicated region body
PF: predicated region fallthrough
CT: control target
= control target key end

     0   :  { %v30_v6 = vlaneseq  ;;  %s170_s1 = inlined_call_operand.vmem [shape: f32[1,128], index: 1, kind: input, shape index: {}]   ;;  %s171_s2 = inlined_call_operand.vmem [shape: f32[1,128], index: 2, kind: input, shape index: {}]   ;;  %s172_s0 = inlined_call_operand.vmem [shape: f32[32,128], index: 0, kind: input, shape index: {}]   ;;  %s173_s3 = inlined_call_operand.vmem [shape: bf16[32,128], index: 3, kind: input, shape index: {}]   ;;  %s174_s4 = inlined_call_operand.vmem [shape: bf16[32,128], index: 4, kind: output, shape index: {}]  }
   0x1   :  { %v17_v0 = vld [vmem:[%s170_s1] sm:$0x1]  ;;  %v26_v12 = vld [vmem:[%s172_s0 + $0x8] sm:$0xff]  ;;  %v27_v13 = vld [vmem:[%s172_s0 + $0x10] sm:$0xff] }
   0x2   :  { %v19_v1 = vld [vmem:[%s171_s2] sm:$0x1]  ;;  %v18_v2 = vmul.f32 0.03125, %v17_v0  ;;  %v31_v8 = vshrl.u32 %v30_v6, 7  ;;  %v28_v14 = vld [vmem:[%s172_s0 + $0x18] sm:$0xff]  ;;  %v111_v16 = vld [vmem:[%s173_s3 + $0x8] sm:$0xff]  }
   0x3   :  { %v20_v3 = vmul.f32 0.03125, %v19_v1  ;;  %v25_v10 = vld [vmem:[%s172_s0] sm:$0xff]  ;;  %v99_v25 = vunpack.c.l.bf16 %v111_v16  ;;  %v100_v26 = vunpack.c.h.bf16 %v111_v16 }
   0x4   :  { %v21_v4 = vmul.f32 %v18_v2, %v18_v2  ;;  %v32_v9 = vsub.s32 0, %v31_v8  ;;  %v94_v15 = vld [vmem:[%s173_s3] sm:$0xff]  }
   0x5   :  { %v95_v22 = vunpack.c.l.bf16 %v94_v15  ;;  %v96_v24 = vunpack.c.h.bf16 %v94_v15 }
   0x6   :  { %v22_v5 = vsub.f32 %v20_v3, %v21_v4  ;;  %v33_v11 = vrot.slane %v18_v2, %v32_v9 }
   0x8   :  { %v23_v7 = vadd.f32 1e-05, %v22_v5  ;;  %v35_v17 = vsub.f32 %v25_v10, %v33_v11  ;;  %v36_v18 = vsub.f32 %v26_v12, %v33_v11  ;;  %v37_v19 = vsub.f32 %v27_v13, %v33_v11 }
   0x9   :  { %v38_v20 = vsub.f32 %v28_v14, %v33_v11 }
   0xa   :  { %113 = vrsqrt.f32 %v23_v7 }
  0x17   :  { %v114_v21 = vpop.eup %113 }
  0x18   :  { %v43_v23 = vrot.slane %v114_v21, %v32_v9 }
  0x1a   :  { %v45_v27 = vmul.f32 %v43_v23, %v35_v17  ;;  %v46_v28 = vmul.f32 %v43_v23, %v36_v18  ;;  %v47_v29 = vmul.f32 %v43_v23, %v37_v19  ;;  %v48_v30 = vmul.f32 %v43_v23, %v38_v20 }
  0x1c   :  { %v57_v31 = vadd.f32 %v95_v22, %v45_v27  ;;  %v58_v32 = vadd.f32 %v96_v24, %v46_v28  ;;  %v59_v33 = vadd.f32 %v99_v25, %v47_v29  ;;  %v60_v34 = vadd.f32 %v100_v26, %v48_v30 }
  0x1e   :  { %v104_v35 = vpack.c.bf16 %v58_v32, %v57_v31  ;;  %v109_v36 = vpack.c.bf16 %v60_v34, %v59_v33 }
  0x20   :  { %105 = vst [vmem:[%s174_s4] sm:$0xff] %v104_v35   ;;  %112 = vst [vmem:[%s174_s4 + $0x8] sm:$0xff] %v109_v36  }

// kernel: resnet_discriminator_forward.26
= control target key start
LH: loop header
LB: loop body
LE: loop exit
PB: predicated region body
PF: predicated region fallthrough
CT: control target
= control target key end

     0   :  { %s1142_s9 = smov 0   ;;  %s1144_s10 = smov 0   ;;  %s1299_s0 = inlined_call_operand.vmem [shape: bf16[6,2,6,128], index: 0, kind: input, shape index: {}]   ;;  %s1300_s1 = inlined_call_operand.vmem [shape: bf16[9,128,128], index: 1, kind: input, shape index: {}]   ;;  %s1301_s2 = inlined_call_operand.vmem [shape: f32[4,2,4,128], index: 2, kind: output, shape index: {}]  }
   0x1   :  { %s1146_s11 = smov 0   ;;  %s1148_s12 = smov 0  }
   0x2   :  { %s1150_s13 = smov 0  }
   0x3 LB: > { %s21_s14 = sadd.s32 1, %s1114_s11  ;;  %s24_s15 = sadd.s32 1, %s1118_s12  ;;  %s1122_s13 = sphi %s1150_s13, %s12_s13   ;;  %s1118_s12 = sphi %s1148_s12, %s1305_s12   ;;  %s1114_s11 = sphi %s1146_s11, %s1304_s11   ;;  %s1110_s10 = sphi %s1144_s10, %s1303_s10   ;;  %s1106_s9 = sphi %s1142_s9, %s1302_s9  }
   0x4   : > { %p22_p0 = scmp.ge.s32.totalorder %s21_s14, 3  ;;  %p760_p1 = scmp.ge.s32.totalorder %s1122_s13, 1 }
   0x5   : > { %p128_p2 = scmp.lt.s32.totalorder %s1122_s13, 13 }
   0x6   : > { %s1307_s14 = smov (%p22_p0, %s21_s14), 0  ;;  %s1309_s15 = smov (!%p22_p0, %s24_s15), %s1118_s12 }
   0x7   : > { %p129_p3 = pnand %p760_p1, %p128_p2  ;;  %p26_p4 = scmp.ge.s32.totalorder %s1309_s15, 4 }
   0x8   : > { %s151_s16 = sadd.s32 (!%p129_p3), %s1106_s9, %s1110_s10  ;;  %p158_p5 = scmp.lt.s32.totalorder (!%p129_p3), %s1110_s10, 3 }
   0x9   : > { %s1311_s15 = smov (%p26_p4, %s1309_s15), 0  ;;  %132 = sbr.rel (%p129_p3) target bundleno = 327 (0x147), region = 28 }
   0xa   : > { %p152_p6 = scmp.lt.s32.totalorder (!%p129_p3), %s151_s16, 5  ;;  %p765_p7 = scmp.ne.s32.totalorder (!%p129_p3), %s1106_s9, 0 }
   0xe   : > { %s1313_s10 = smov (!%p158_p5, %s1110_s10), 3  ;;  %s1315_s16 = smov (!%p152_p6, %s151_s16), 5 }
   0xf   : > { %s837_s17 = sshll.u32 %s1313_s10, 3  ;;  %s836_s18 = sshll.u32 %s1315_s16, 3 }
  0x10   : > { %s1178_s21 = scalar_lea.vmem %s1301_s2, %s837_s17  ;;  %s1183_s24 = scalar_lea.vmem %s1299_s0, %s836_s18 }
  0x11   : > { %167 = sbr.rel (%p765_p7) target bundleno = 24 (0x18), region = 32 }
  0x16   : > { %v1124_v0 = vmov 0.0  }
  0x17   : > { %168 = vst [vmem:[#allocation2] sm:$0xf] %v1124_v0  ;;  %169 = vst [vmem:[#allocation2 + $0x4] sm:$0xf] %v1124_v0 }
  0x18 PF: > { %s838_s25 = smul.u32 192, %s1106_s9  ;;  %v1125_v1 = vmov 0.0   ;;  %vm1126_vm0 = vmmov 0   ;;  %v190_v10 = vld [vmem:[%s1183_s24] sm:$0x3]  ;;  %p833_p8 = scmp.ne.s32.totalorder %s1106_s9, 2 }
  0x19   : > { %893 = vmatprep.subr.bf16.mxu0 %v1125_v1  ;;  %913 = vmatprep.subr.bf16.mxu1 %v1125_v1  ;;  %v776_v11 = vld [vmem:[%s1183_s24 + $0x4] sm:$0x3]  ;;  %v1072_v17 = vld [vmem:[%s1183_s24] ss:$0 sps:$4 sm:$0x77]  }
  0x1a   : > { %s1192_s28 = scalar_lea.vmem %s1300_s1, %s838_s25  ;;  %909 = vmatprep.mubr.msk.bf16.mxu0 %vm1126_vm0, %v1125_v1  ;;  %929 = vmatprep.mubr.msk.bf16.mxu1 %vm1126_vm0, %v1125_v1  ;;  %v1073_v18 = vld [vmem:[%s1183_s24 + $0x4] ss:$0 sps:$4 sm:$0x77]   ;;  %v356_v20 = vshll.u32 %v1072_v17, 16  ;;  %v354_v23 = vshrl.u32 %v1072_v17, 16 }
  0x1b   : > { %v1056_v2 = vld [vmem:[%s1192_s28 + $0x38] sm:$0xff]   ;;  %v1057_v3 = vld [vmem:[%s1192_s28 + $0x30] sm:$0xff]   ;;  %v1058_v4 = vld [vmem:[%s1192_s28 + $0x28] sm:$0xff]   ;;  %v459_v21 = vshll.u32 %v1073_v18, 16  ;;  %v457_v25 = vshrl.u32 %v1073_v18, 16 }
  0x1c   : > { %894 = vmatpush3.bf16.msra.mxu0 %v1056_v2  ;;  %914 = vmatpush3.bf16.msra.mxu1 %v1056_v2  ;;  %v1059_v5 = vld [vmem:[%s1192_s28 + $0x20] sm:$0xff]   ;;  %v1060_v6 = vld [vmem:[%s1192_s28 + $0x18] sm:$0xff]   ;;  %v1061_v7 = vld [vmem:[%s1192_s28 + $0x10] sm:$0xff]   ;;  %v358_v24 = vrot.slane %v356_v20, 1 }
  0x1d   : > { %895 = vmatprep.subr.bf16.mxu0 %v1125_v1  ;;  %915 = vmatprep.subr.bf16.mxu1 %v1125_v1  ;;  %v1062_v8 = vld [vmem:[%s1192_s28 + $0x8] sm:$0xff]   ;;  %v1063_v9 = vld [vmem:[%s1192_s28] sm:$0xff]   ;;  %v1064_v12 = vld [vmem:[%s1192_s28 + $0x78] sm:$0xff]   ;;  %v461_v26 = vrot.slane %v459_v21, 1 }
  0x1e   : > { %v1065_v13 = vld [vmem:[%s1192_s28 + $0x70] sm:$0xff]   ;;  %v1066_v14 = vld [vmem:[%s1192_s28 + $0x68] sm:$0xff]   ;;  %v1067_v15 = vld [vmem:[%s1192_s28 + $0x60] sm:$0xff]   ;;  %v359_v28 = vor.u32 %v358_v24, %v354_v23 }
  0x1f   : > { %v1068_v16 = vld [vmem:[%s1192_s28 + $0x58] sm:$0xff]   ;;  %v1069_v19 = vld [vmem:[%s1192_s28 + $0x50] sm:$0xff]   ;;  %v1070_v22 = vld [vmem:[%s1192_s28 + $0x48] sm:$0xff]   ;;  %v462_v29 = vor.u32 %v461_v26, %v457_v25 }
  0x20   : > { %896 = vmatpush3.bf16.msra.mxu0 %v1057_v3  ;;  %916 = vmatpush3.bf16.msra.mxu1 %v1057_v3  ;;  %v1071_v27 = vld [vmem:[%s1192_s28 + $0x40] sm:$0xff]   ;;  %v1074_v30 = vld [vmem:[%s1192_s28 + $0xb8] sm:$0xff]   ;;  %v1075_v31 = vld [vmem:[%s1192_s28 + $0xb0] sm:$0xff]  }
  0x21   : > { %897 = vmatprep.subr.bf16.mxu0 %v1125_v1  ;;  %917 = vmatprep.subr.bf16.mxu1 %v1125_v1  ;;  %v1076_v32 = vld [vmem:[%s1192_s28 + $0xa8] sm:$0xff]   ;;  %v1077_v33 = vld [vmem:[%s1192_s28 + $0xa0] sm:$0xff]   ;;  %v1078_v34 = vld [vmem:[%s1192_s28 + $0x98] sm:$0xff]  }
  0x22   : > { %v1079_v35 = vld [vmem:[%s1192_s28 + $0x90] sm:$0xff]   ;;  %v1080_v36 = vld [vmem:[%s1192_s28 + $0x88] sm:$0xff]   ;;  %v1082_v37 = vld [vmem:[%s1183_s24] ss:$0 sps:$4 sm:$0x66]  }
  0x23   : > { %v1083_v38 = vld [vmem:[%s1183_s24 + $0x4] ss:$0 sps:$4 sm:$0x66]   ;;  %v531_v40 = vrot.slane %v1082_v37, 1  ;;  %v191_v42 = vld [vmem:[#allocation2] sm:$0xf] }
  0x24   : > { %898 = vmatpush3.bf16.msra.mxu0 %v1058_v4  ;;  %918 = vmatpush3.bf16.msra.mxu1 %v1058_v4  ;;  %v1081_v39 = vld [vmem:[%s1192_s28 + $0x80] sm:$0xff]   ;;  %v628_v41 = vrot.slane %v1083_v38, 1 }
  0x25   : > { %899 = vmatprep.subr.bf16.mxu0 %v1125_v1  ;;  %919 = vmatprep.subr.bf16.mxu1 %v1125_v1  ;;  %v285_v43 = vld [vmem:[#allocation2 + $0x4] sm:$0xf] }
  0x28   : > { %900 = vmatpush3.bf16.msra.mxu0 %v1059_v5  ;;  %920 = vmatpush3.bf16.msra.mxu1 %v1059_v5 }
  0x29   : > { %901 = vmatprep.subr.bf16.mxu0 %v1125_v1  ;;  %921 = vmatprep.subr.bf16.mxu1 %v1125_v1 }
  0x2c   : > { %902 = vmatpush3.bf16.msra.mxu0 %v1060_v6  ;;  %922 = vmatpush3.bf16.msra.mxu1 %v1060_v6 }
  0x2d   : > { %903 = vmatprep.subr.bf16.mxu0 %v1125_v1  ;;  %923 = vmatprep.subr.bf16.mxu1 %v1125_v1 }
  0x30   : > { %904 = vmatpush3.bf16.msra.mxu0 %v1061_v7  ;;  %924 = vmatpush3.bf16.msra.mxu1 %v1061_v7 }
  0x31   : > { %905 = vmatprep.subr.bf16.mxu0 %v1125_v1  ;;  %925 = vmatprep.subr.bf16.mxu1 %v1125_v1 }
  0x34   : > { %906 = vmatpush3.bf16.msra.mxu0 %v1062_v8  ;;  %926 = vmatpush3.bf16.msra.mxu1 %v1062_v8 }
  0x35   : > { %907 = vmatprep.subr.bf16.mxu0 %v1125_v1  ;;  %927 = vmatprep.subr.bf16.mxu1 %v1125_v1 }
  0x38   : > { %908 = vmatpush3.bf16.msra.mxu0 %v1063_v9  ;;  %928 = vmatpush3.bf16.msra.mxu1 %v1063_v9 }
  0x39   : > { %933 = vmatprep.subr.bf16.mxu0 %v1125_v1  ;;  %953 = vmatprep.subr.bf16.mxu1 %v1125_v1 }
  0x3b   : > { %910 = vmatmul.mubr.bf16.vlgmr.msra.gmra.mxu0 %v190_v10  ;;  %930 = vmatmul.mubr.bf16.vlgmr.msra.gmra.mxu1 %v776_v11 }
  0x3c   : > { %934 = vmatpush3.bf16.msra.mxu0 %v1064_v12  ;;  %954 = vmatpush3.bf16.msra.mxu1 %v1064_v12 }
  0x3d   : > { %935 = vmatprep.subr.bf16.mxu0 %v1125_v1  ;;  %955 = vmatprep.subr.bf16.mxu1 %v1125_v1 }
  0x3e   : > { %949 = vmatprep.mubr.msk.bf16.mxu0 %vm1126_vm0, %v1125_v1  ;;  %969 = vmatprep.mubr.msk.bf16.mxu1 %vm1126_vm0, %v1125_v1 }
  0x40   : > { %936 = vmatpush3.bf16.msra.mxu0 %v1065_v13  ;;  %956 = vmatpush3.bf16.msra.mxu1 %v1065_v13 }
  0x41   : > { %937 = vmatprep.subr.bf16.mxu0 %v1125_v1  ;;  %957 = vmatprep.subr.bf16.mxu1 %v1125_v1 }
  0x44   : > { %938 = vmatpush3.bf16.msra.mxu0 %v1066_v14  ;;  %958 = vmatpush3.bf16.msra.mxu1 %v1066_v14 }
  0x45   : > { %939 = vmatprep.subr.bf16.mxu0 %v1125_v1  ;;  %959 = vmatprep.subr.bf16.mxu1 %v1125_v1 }
  0x48   : > { %940 = vmatpush3.bf16.msra.mxu0 %v1067_v15  ;;  %960 = vmatpush3.bf16.msra.mxu1 %v1067_v15 }
  0x49   : > { %941 = vmatprep.subr.bf16.mxu0 %v1125_v1  ;;  %961 = vmatprep.subr.bf16.mxu1 %v1125_v1 }
  0x4c   : > { %942 = vmatpush3.bf16.msra.mxu0 %v1068_v16  ;;  %962 = vmatpush3.bf16.msra.mxu1 %v1068_v16 }
  0x4d   : > { %943 = vmatprep.subr.bf16.mxu0 %v1125_v1  ;;  %963 = vmatprep.subr.bf16.mxu1 %v1125_v1 }
  0x50   : > { %944 = vmatpush3.bf16.msra.mxu0 %v1069_v19  ;;  %964 = vmatpush3.bf16.msra.mxu1 %v1069_v19 }
  0x51   : > { %945 = vmatprep.subr.bf16.mxu0 %v1125_v1  ;;  %965 = vmatprep.subr.bf16.mxu1 %v1125_v1 }
  0x54   : > { %946 = vmatpush3.bf16.msra.mxu0 %v1070_v22  ;;  %966 = vmatpush3.bf16.msra.mxu1 %v1070_v22 }
  0x55   : > { %947 = vmatprep.subr.bf16.mxu0 %v1125_v1  ;;  %967 = vmatprep.subr.bf16.mxu1 %v1125_v1 }
  0x58   : > { %948 = vmatpush3.bf16.msra.mxu0 %v1071_v27  ;;  %968 = vmatpush3.bf16.msra.mxu1 %v1071_v27 }
  0x59   : > { %973 = vmatprep.subr.bf16.mxu0 %v1125_v1  ;;  %993 = vmatprep.subr.bf16.mxu1 %v1125_v1 }
  0x5b   : > { %950 = vmatmul.mubr.bf16.vlgmr.msra.gmra.mxu0 %v359_v28  ;;  %970 = vmatmul.mubr.bf16.vlgmr.msra.gmra.mxu1 %v462_v29 }
  0x5c   : > { %974 = vmatpush3.bf16.msra.mxu0 %v1074_v30  ;;  %994 = vmatpush3.bf16.msra.mxu1 %v1074_v30 }
  0x5d   : > { %975 = vmatprep.subr.bf16.mxu0 %v1125_v1  ;;  %995 = vmatprep.subr.bf16.mxu1 %v1125_v1 }
  0x5e   : > { %989 = vmatprep.mubr.msk.bf16.mxu0 %vm1126_vm0, %v1125_v1  ;;  %1009 = vmatprep.mubr.msk.bf16.mxu1 %vm1126_vm0, %v1125_v1 }
  0x60   : > { %976 = vmatpush3.bf16.msra.mxu0 %v1075_v31  ;;  %996 = vmatpush3.bf16.msra.mxu1 %v1075_v31 }
  0x61   : > { %977 = vmatprep.subr.bf16.mxu0 %v1125_v1  ;;  %997 = vmatprep.subr.bf16.mxu1 %v1125_v1 }
  0x64   : > { %978 = vmatpush3.bf16.msra.mxu0 %v1076_v32  ;;  %998 = vmatpush3.bf16.msra.mxu1 %v1076_v32 }
  0x65   : > { %979 = vmatprep.subr.bf16.mxu0 %v1125_v1  ;;  %999 = vmatprep.subr.bf16.mxu1 %v1125_v1 }
  0x68   : > { %980 = vmatpush3.bf16.msra.mxu0 %v1077_v33  ;;  %1000 = vmatpush3.bf16.msra.mxu1 %v1077_v33 }
  0x69   : > { %981 = vmatprep.subr.bf16.mxu0 %v1125_v1  ;;  %1001 = vmatprep.subr.bf16.mxu1 %v1125_v1 }
  0x6c   : > { %982 = vmatpush3.bf16.msra.mxu0 %v1078_v34  ;;  %1002 = vmatpush3.bf16.msra.mxu1 %v1078_v34 }
  0x6d   : > { %983 = vmatprep.subr.bf16.mxu0 %v1125_v1  ;;  %1003 = vmatprep.subr.bf16.mxu1 %v1125_v1 }
  0x70   : > { %984 = vmatpush3.bf16.msra.mxu0 %v1079_v35  ;;  %1004 = vmatpush3.bf16.msra.mxu1 %v1079_v35 }
  0x71   : > { %985 = vmatprep.subr.bf16.mxu0 %v1125_v1  ;;  %1005 = vmatprep.subr.bf16.mxu1 %v1125_v1 }
  0x74   : > { %986 = vmatpush3.bf16.msra.mxu0 %v1080_v36  ;;  %1006 = vmatpush3.bf16.msra.mxu1 %v1080_v36 }
  0x75   : > { %987 = vmatprep.subr.bf16.mxu0 %v1125_v1  ;;  %1007 = vmatprep.subr.bf16.mxu1 %v1125_v1 }
  0x78   : > { %988 = vmatpush3.bf16.msra.mxu0 %v1081_v39  ;;  %1008 = vmatpush3.bf16.msra.mxu1 %v1081_v39 }
  0x7b   : > { %990 = vmatmul.mubr.bf16.vlgmr.msra.gmra.mxu0 %v531_v40  ;;  %1010 = vmatmul.mubr.bf16.vlgmr.msra.gmra.mxu1 %v628_v41 }
  0xfb   : > { %v274_v44 = vpop.f32.mrf.mxu0  ;;  %v320_v45 = vpop.f32.mrf.mxu1 }
  0xfc   : > { %v280_v46 = vadd.f32 %v274_v44, %v191_v42  ;;  %v326_v47 = vadd.f32 %v320_v45, %v285_v43 }
  0xfd   : > { %v911_v48 = vpop.f32.mrf.mxu0  ;;  %v931_v49 = vpop.f32.mrf.mxu1 }
  0xfe   : > { %281 = vst [vmem:[#allocation2] sm:$0xf] %v280_v46  ;;  %327 = vst [vmem:[#allocation2 + $0x4] sm:$0xf] %v326_v47 }
  0xff   : > { %v277_v50 = vpop.f32.mrf.mxu0  ;;  %v323_v51 = vpop.f32.mrf.mxu1 }
 0x101   : > { %v912_v52 = vpop.f32.mrf.mxu0  ;;  %v932_v53 = vpop.f32.mrf.mxu1 }
 0x105   : > { %v349_v54 = vld [vmem:[#allocation2] sm:$0xf]  ;;  %v452_v56 = vld [vmem:[#allocation2 + $0x4] sm:$0xf] }
 0x11b   : > { %v443_v55 = vpop.f32.mrf.mxu0  ;;  %v498_v57 = vpop.f32.mrf.mxu1 }
 0x11c   : > { %v449_v58 = vadd.f32 %v443_v55, %v349_v54  ;;  %v504_v59 = vadd.f32 %v498_v57, %v452_v56 }
 0x11d   : > { %v951_v60 = vpop.f32.mrf.mxu0  ;;  %v971_v61 = vpop.f32.mrf.mxu1 }
 0x11e   : > { %450 = vst [vmem:[#allocation2] sm:$0xf] %v449_v58  ;;  %505 = vst [vmem:[#allocation2 + $0x4] sm:$0xf] %v504_v59 }
 0x11f   : > { %v446_v62 = vpop.f32.mrf.mxu0  ;;  %v501_v63 = vpop.f32.mrf.mxu1 }
 0x121   : > { %v952_v0 = vpop.f32.mrf.mxu0  ;;  %v972_v1 = vpop.f32.mrf.mxu1 }
 0x125   : > { %v527_v2 = vld [vmem:[#allocation2] sm:$0xf]  ;;  %v624_v4 = vld [vmem:[#allocation2 + $0x4] sm:$0xf] }
 0x13b   : > { %v615_v3 = vpop.f32.mrf.mxu0  ;;  %v664_v5 = vpop.f32.mrf.mxu1 }
 0x13c   : > { %v621_v6 = vadd.f32 %v615_v3, %v527_v2  ;;  %v670_v7 = vadd.f32 %v664_v5, %v624_v4 }
 0x13d   : > { %v991_v8 = vpop.f32.mrf.mxu0  ;;  %v1011_v9 = vpop.f32.mrf.mxu1  ;;  %675 = sbr.rel (%p833_p8) target bundleno = 327 (0x147), region = 36 }
 0x13e   : > { %622 = vst [vmem:[#allocation2] sm:$0xf] %v621_v6  ;;  %671 = vst [vmem:[#allocation2 + $0x4] sm:$0xf] %v670_v7 }
 0x13f   : > { %v618_v10 = vpop.f32.mrf.mxu0  ;;  %v667_v11 = vpop.f32.mrf.mxu1 }
 0x141   : > { %v992_v12 = vpop.f32.mrf.mxu0  ;;  %v1012_v13 = vpop.f32.mrf.mxu1 }
 0x145   : > { %v676_v14 = vld [vmem:[#allocation2] sm:$0xff]  }
 0x146   : > { %678 = vst [vmem:[%s1178_s21] sm:$0xff] %v676_v14  }
 0x147 PF: > { %s12_s13 = sadd.s32 1, %s1122_s13   ;;  %s1302_s9 = smov %s1114_s11 }
 0x148   : > { %p9_p9 = scmp.ge.s32.totalorder %s12_s13, 14   ;;  %s1303_s10 = smov %s1118_s12 }
 0x149   : > { %s1304_s11 = smov %s1307_s14  ;;  %s1305_s12 = smov %s1311_s15 }
 0x14a   :  { %11 = sbr.rel (!%p9_p9) target bundleno = 3 (0x3), region = 71 }

</bundles_post_ra>
